<compile_context>
chip_gen: v5e
topology: v5e:2x2
jax: 0.10.0
libtpu: 0.0.40
codegen_flags: <defaults>
</compile_context>

<pallas_src>
import functools

import jax
import jax.numpy as jnp
import numpy as np
from jax import lax
from jax.experimental import pallas as pl
from jax.experimental.pallas import tpu as pltpu

# ---------------- configuration ----------------------------------------------
N_LAYER = 3
LAYER_SIZE = 32
INPUT_DIM = 3
OUTPUT_DIM = 3
ADDITIONAL_INPUT_DIM = 5
C_IN = INPUT_DIM + ADDITIONAL_INPUT_DIM

DATA_INPUT_RANGE_MIN = 0.0
DATA_INPUT_RANGE_MAX = 1.0
MLP_INPUT_RANGE_MIN = -1.0
MLP_INPUT_RANGE_MAX = 1.0
OUTPUT_RANGE_MIN = -2.0
OUTPUT_RANGE_MAX = 2.0

X_CENTER = (DATA_INPUT_RANGE_MAX + DATA_INPUT_RANGE_MIN) / 2.0
X_SCALE = (DATA_INPUT_RANGE_MAX - DATA_INPUT_RANGE_MIN) / 2.0
IN_CENTER = (MLP_INPUT_RANGE_MAX + MLP_INPUT_RANGE_MIN) / 2.0
IN_SCALE = (MLP_INPUT_RANGE_MAX - MLP_INPUT_RANGE_MIN) / 2.0
OUT_CENTER = (OUTPUT_RANGE_MAX + OUTPUT_RANGE_MIN) / 2.0
OUT_SCALE = (OUTPUT_RANGE_MAX - OUTPUT_RANGE_MIN) / 2.0

# Inner sub-tile (columns) per compute pass: keeps h=[32, SUB_N] register-
# resident.  Multiple of 128 (v5e) and 256 (v6e/v7x) lane tiles.
SUB_N = 512
# Cap on points per grid step (double-buffered f32 input tile ~1 MB at cap).
MAX_TILE_N = 16384


# ---------------- generation-aware tile choice --------------------------------
def _num_tensorcores():
    """Best-effort TensorCore count (2 on v7x, 1 on v5e/v6e)."""
    try:
        info = pltpu.get_tpu_info()
        for attr in ("num_cores", "core_count", "tensorcore_count", "num_tensorcores"):
            v = getattr(info, attr, None)
            if isinstance(v, int) and v > 0:
                return v
    except Exception:
        pass
    try:
        v = getattr(jax.devices()[0], "num_cores", None)
        if isinstance(v, int) and v > 0:
            return v
    except Exception:
        pass
    return 1


def choose_tile_n(n, num_cores):
    """~1 grid step per TensorCore, rounded to SUB_N, capped at MAX_TILE_N."""
    target_steps = max(1, int(num_cores))
    tile = pl.cdiv(pl.cdiv(n, target_steps), SUB_N) * SUB_N
    tile = min(tile, MAX_TILE_N)
    return max(tile, SUB_N)


# ---------------- Pallas kernel (feature-major: [C, tile_n] blocks) -----------
def deformation_mlp_kernel(n_hidden, tile_n, x_ref, a_ref, w_ref, o_ref):
    """x_ref: [INPUT_DIM, tile_n], a_ref: [ADD_DIM, tile_n].

    w_ref is one packed [LAYER_SIZE, n_cols] slab containing (in column order):
      w1x^T (input-affine folded) | w1a^T | b1 | {wh_i^T | bh_i}* | w_out^T | b_out
    w_out^T / b_out are zero-padded to LAYER_SIZE rows and carry the folded
    output rescale.  o_ref: [OUTPUT_DIM, tile_n].
    """
    # Carve the slab with static slices, hoisted out of the sub-tile loop so
    # the tiny weight tiles stay vreg-resident.
    c0 = 0
    w1x = w_ref[:, c0:c0 + INPUT_DIM]; c0 += INPUT_DIM                       # [L, 3]
    w1a = w_ref[:, c0:c0 + ADDITIONAL_INPUT_DIM]; c0 += ADDITIONAL_INPUT_DIM  # [L, 5]
    b1 = w_ref[:, c0:c0 + 1]; c0 += 1                                        # [L, 1]
    wh, bh = [], []
    for _ in range(n_hidden):
        wh.append(w_ref[:, c0:c0 + LAYER_SIZE]); c0 += LAYER_SIZE            # [L, L]
        bh.append(w_ref[:, c0:c0 + 1]); c0 += 1                              # [L, 1]
    wo = w_ref[:, c0:c0 + LAYER_SIZE]; c0 += LAYER_SIZE                      # [L, L] (rows >= OUTPUT_DIM are 0)
    bo = w_ref[:, c0:c0 + 1]                                                 # [L, 1]

    num_sub = tile_n // SUB_N

    def body(j, carry):
        start = pl.multiple_of(j * SUB_N, SUB_N)
        cols = pl.ds(start, SUB_N)
        x3 = x_ref[:, cols]                                                  # [3, SUB_N]
        x5 = a_ref[:, cols]                                                  # [5, SUB_N]

        # first Linear (+ folded input affine) + ReLU; split dot avoids any
        # wrapper-side concat of x / additional_input.
        h = (jnp.dot(w1x, x3, preferred_element_type=jnp.float32)
             + jnp.dot(w1a, x5, preferred_element_type=jnp.float32)
             + b1)
        h = jnp.maximum(h, 0.0)

        # hidden Linear + ReLU layers
        # TODO(synk): for configs with many hidden layers, switch this static
        # unrolled loop to lax.fori_loop with dynamic slab column indexing.
        for i in range(n_hidden):
            h = jnp.maximum(
                jnp.dot(wh[i], h, preferred_element_type=jnp.float32) + bh[i], 0.0)

        # final Linear (+ folded output rescale), no final non-linearity
        out = jnp.dot(wo, h, preferred_element_type=jnp.float32) + bo        # [L, SUB_N]
        o_ref[:, cols] = out[:OUTPUT_DIM, :].astype(o_ref.dtype)
        return carry

    lax.fori_loop(0, num_sub, body, 0, unroll=True)


# ---------------- parameter packing (fold affines, transpose, pack slab) ------
def prepare_param_slab(params, n_hidden):
    # x_norm = (x - X_CENTER)/X_SCALE * IN_SCALE + IN_CENTER = a*x + c
    a = IN_SCALE / X_SCALE
    c = IN_CENTER - X_CENTER * a

    w1 = params["w1"]           # [C_IN, L]
    b1 = params["b1"][0]        # [L]
    w1x_t = (w1[:INPUT_DIM] * a).T                                   # [L, 3]
    w1a_t = w1[INPUT_DIM:].T                                         # [L, 5]
    b1_col = (b1 + c * jnp.sum(w1[:INPUT_DIM], axis=0))[:, None]     # [L, 1]

    cols = [w1x_t, w1a_t, b1_col]
    for i in range(n_hidden):
        cols.append(params[f"wh{i}"].T)                              # [L, L]
        cols.append(params[f"bh{i}"][0][:, None])                    # [L, 1]

    # out_final = (h @ w_out + b_out) * OUT_SCALE + OUT_CENTER, zero-padded to L rows.
    wo_t = (params["w_out"] * OUT_SCALE).T                           # [OUT, L]
    bo_col = (params["b_out"][0] * OUT_SCALE + OUT_CENTER)[:, None]  # [OUT, 1]
    pad_rows = LAYER_SIZE - OUTPUT_DIM
    cols.append(jnp.concatenate(
        [wo_t, jnp.zeros((pad_rows, LAYER_SIZE), jnp.float32)], axis=0))
    cols.append(jnp.concatenate(
        [bo_col, jnp.zeros((pad_rows, 1), jnp.float32)], axis=0))

    return jnp.concatenate(cols, axis=1).astype(jnp.float32)         # [L, n_cols]


# ---------------- wrapper ------------------------------------------------------
def deformation_mlp(x, additional_input, params, tile_n=None, feature_major_output=False):
    """x: [N, INPUT_DIM], additional_input: [N, ADDITIONAL_INPUT_DIM].

    Returns [N, OUTPUT_DIM] (or feature-major [OUTPUT_DIM, N] if
    feature_major_output=True, which skips the trailing transpose pass).
    """
    N = x.shape[0]
    n_hidden = N_LAYER - 2
    assert n_hidden >= 1, "kernel expects at least one hidden layer (n_layer >= 3)"

    if tile_n is None:
        tile_n = choose_tile_n(N, _num_tensorcores())
    assert tile_n % SUB_N == 0

    n_pad = pl.cdiv(N, tile_n) * tile_n

    # Feature-major inputs; no concat pass (kernel splits the first-layer dot).
    xT = x.T.astype(jnp.float32)                   # [INPUT_DIM, N]
    aT = additional_input.T.astype(jnp.float32)    # [ADD_DIM, N]
    if n_pad != N:
        xT = jnp.pad(xT, ((0, 0), (0, n_pad - N)))
        aT = jnp.pad(aT, ((0, 0), (0, n_pad - N)))

    w_slab = prepare_param_slab(params, n_hidden)

    kernel = functools.partial(deformation_mlp_kernel, n_hidden, tile_n)

    out_t = pl.pallas_call(
        kernel,
        out_shape=jax.ShapeDtypeStruct((OUTPUT_DIM, n_pad), jnp.float32),
        grid_spec=pltpu.PrefetchScalarGridSpec(
            num_scalar_prefetch=0,
            grid=(n_pad // tile_n,),
            in_specs=[
                pl.BlockSpec((INPUT_DIM, tile_n), lambda i: (0, i)),
                pl.BlockSpec((ADDITIONAL_INPUT_DIM, tile_n), lambda i: (0, i)),
                pl.BlockSpec(w_slab.shape, lambda i: (0, 0)),   # single packed slab
            ],
            out_specs=pl.BlockSpec((OUTPUT_DIM, tile_n), lambda i: (0, i)),
        ),
        compiler_params=pltpu.CompilerParams(
            dimension_semantics=("parallel",),
        ),
    )(xT, aT, w_slab)

    if feature_major_output:
        return out_t[:, :N]
    return out_t[:, :N].T


# ---------------- deterministic parameter init (PyTorch Linear-style) ---------
def init_params(key):
    params = {}
    keys = jax.random.split(key, 2 * N_LAYER)

    def linear(kw, kb, fan_in, fan_out):
        bound = 1.0 / np.sqrt(fan_in)
        w = jax.random.uniform(kw, (fan_in, fan_out), jnp.float32, -bound, bound)
        b = jax.random.uniform(kb, (1, fan_out), jnp.float32, -bound, bound)
        return w, b

    params["w1"], params["b1"] = linear(keys[0], keys[1], C_IN, LAYER_SIZE)
    for i in range(N_LAYER - 2):
        w, b = linear(keys[2 + 2 * i], keys[3 + 2 * i], LAYER_SIZE, LAYER_SIZE)
        params[f"wh{i}"] = w
        params[f"bh{i}"] = b
    params["w_out"], params["b_out"] = linear(keys[-2], keys[-1], LAYER_SIZE, OUTPUT_DIM)
    return params


# ---------------- pure-JAX reference (un-folded, row-major) -------------------
def reference_forward(x, add, params):
    res = (x - X_CENTER) / X_SCALE * IN_SCALE + IN_CENTER
    res = jnp.concatenate([res, add], axis=-1)
    h = jnp.maximum(res @ params["w1"] + params["b1"], 0.0)
    for i in range(N_LAYER - 2):
        h = jnp.maximum(h @ params[f"wh{i}"] + params[f"bh{i}"], 0.0)
    out = h @ params["w_out"] + params["b_out"]
    return out * OUT_SCALE + OUT_CENTER


# ---------------- main ---------------------------------------------------------
if __name__ == "__main__":
    key = jax.random.PRNGKey(0)
    k_params, k_x, k_add = jax.random.split(key, 3)

    N = 4096  # 1 grid step on single-TC chips, 2 steps (1/core) when 2 TCs reported
    x = jax.random.uniform(k_x, (N, INPUT_DIM), jnp.float32, 0.0, 1.0)
    additional_input = jax.random.normal(k_add, (N, ADDITIONAL_INPUT_DIM), jnp.float32)

    params = init_params(k_params)

    out = deformation_mlp(x, additional_input, params)
    out = jax.block_until_ready(out)

    ref = reference_forward(x, additional_input, params)
    np.testing.assert_allclose(np.asarray(out), np.asarray(ref), rtol=1e-5, atol=1e-5)

    print("KERNEL_OK")
</pallas_src>

<mosaic_0001>
module attributes {stable_mosaic.version = 11 : i64} {
  func.func @deformation_mlp_kernel(%arg0: i32, %arg1: memref<3x4096xf32, #tpu.memory_space<vmem>>, %arg2: memref<5x4096xf32, #tpu.memory_space<vmem>>, %arg3: memref<32x75xf32, #tpu.memory_space<vmem>>, %arg4: memref<3x4096xf32, #tpu.memory_space<vmem>>) attributes {dimension_semantics = [#tpu.dimension_semantics<parallel>], iteration_bounds = array<i64: 1>, scalar_prefetch = 0 : i64, scratch_operands = 0 : i64, tpu.core_type = #tpu.core_type<tc>, window_params = [{transform_indices = @transform_0, window_bounds = array<i64: 3, 4096>}, {transform_indices = @transform_1, window_bounds = array<i64: 5, 4096>}, {pipeline_mode = #tpu.pipeline_mode<synchronous>, transform_indices = @transform_2, window_bounds = array<i64: 32, 75>}, {transform_indices = @transform_3, window_bounds = array<i64: 3, 4096>}]} {
    %c0 = arith.constant 0 : index
    %c0_0 = arith.constant 0 : index
    %0 = vector.load %arg3[%c0, %c0_0] : memref<32x75xf32, #tpu.memory_space<vmem>>, vector<32x3xf32>
    %c0_1 = arith.constant 0 : index
    %c3 = arith.constant 3 : index
    %1 = vector.load %arg3[%c0_1, %c3] : memref<32x75xf32, #tpu.memory_space<vmem>>, vector<32x5xf32>
    %c0_2 = arith.constant 0 : index
    %c8 = arith.constant 8 : index
    %2 = vector.load %arg3[%c0_2, %c8] : memref<32x75xf32, #tpu.memory_space<vmem>>, vector<32x1xf32>
    %c0_3 = arith.constant 0 : index
    %c9 = arith.constant 9 : index
    %3 = vector.load %arg3[%c0_3, %c9] : memref<32x75xf32, #tpu.memory_space<vmem>>, vector<32x32xf32>
    %c0_4 = arith.constant 0 : index
    %c41 = arith.constant 41 : index
    %4 = vector.load %arg3[%c0_4, %c41] : memref<32x75xf32, #tpu.memory_space<vmem>>, vector<32x1xf32>
    %c0_5 = arith.constant 0 : index
    %c42 = arith.constant 42 : index
    %5 = vector.load %arg3[%c0_5, %c42] : memref<32x75xf32, #tpu.memory_space<vmem>>, vector<32x32xf32>
    %c0_6 = arith.constant 0 : index
    %c74 = arith.constant 74 : index
    %6 = vector.load %arg3[%c0_6, %c74] : memref<32x75xf32, #tpu.memory_space<vmem>>, vector<32x1xf32>
    %c0_i32 = arith.constant 0 : i32
    %c512_i32 = arith.constant 512 : i32
    %7 = arith.muli %c0_i32, %c512_i32 : i32
    %8 = tpu.assume_multiple %7, 512 : i32
    %c0_7 = arith.constant 0 : index
    %9 = arith.index_cast %8 : i32 to index
    %10 = vector.load %arg1[%c0_7, %9] : memref<3x4096xf32, #tpu.memory_space<vmem>>, vector<3x512xf32>
    %c0_8 = arith.constant 0 : index
    %11 = arith.index_cast %8 : i32 to index
    %12 = vector.load %arg2[%c0_8, %11] : memref<5x4096xf32, #tpu.memory_space<vmem>>, vector<5x512xf32>
    %cst = arith.constant dense<0.000000e+00> : vector<32x512xf32>
    %13 = tpu.matmul %0, %10, %cst {dimension_numbers = #tpu.dot_dimension_numbers<[1], [0], [0], [1], [0, 0, 1, 1], [], []>} : vector<32x3xf32>, vector<3x512xf32>, vector<32x512xf32> -> vector<32x512xf32>
    %cst_9 = arith.constant dense<0.000000e+00> : vector<32x512xf32>
    %14 = tpu.matmul %1, %12, %cst_9 {dimension_numbers = #tpu.dot_dimension_numbers<[1], [0], [0], [1], [0, 0, 1, 1], [], []>} : vector<32x5xf32>, vector<5x512xf32>, vector<32x512xf32> -> vector<32x512xf32>
    %15 = arith.addf %13, %14 : vector<32x512xf32>
    %16 = vector.broadcast %2 : vector<32x1xf32> to vector<32x512xf32>
    %17 = arith.addf %15, %16 : vector<32x512xf32>
    %cst_10 = arith.constant 0.000000e+00 : f32
    %18 = vector.broadcast %cst_10 : f32 to vector<32x512xf32>
    %19 = arith.maximumf %17, %18 : vector<32x512xf32>
    %cst_11 = arith.constant dense<0.000000e+00> : vector<32x512xf32>
    %20 = tpu.matmul %3, %19, %cst_11 {dimension_numbers = #tpu.dot_dimension_numbers<[1], [0], [0], [1], [0, 0, 1, 1], [], []>} : vector<32x32xf32>, vector<32x512xf32>, vector<32x512xf32> -> vector<32x512xf32>
    %21 = vector.broadcast %4 : vector<32x1xf32> to vector<32x512xf32>
    %22 = arith.addf %20, %21 : vector<32x512xf32>
    %cst_12 = arith.constant 0.000000e+00 : f32
    %23 = vector.broadcast %cst_12 : f32 to vector<32x512xf32>
    %24 = arith.maximumf %22, %23 : vector<32x512xf32>
    %cst_13 = arith.constant dense<0.000000e+00> : vector<32x512xf32>
    %25 = tpu.matmul %5, %24, %cst_13 {dimension_numbers = #tpu.dot_dimension_numbers<[1], [0], [0], [1], [0, 0, 1, 1], [], []>} : vector<32x32xf32>, vector<32x512xf32>, vector<32x512xf32> -> vector<32x512xf32>
    %26 = vector.broadcast %6 : vector<32x1xf32> to vector<32x512xf32>
    %27 = arith.addf %25, %26 : vector<32x512xf32>
    %28 = vector.extract_strided_slice %27 {offsets = [0, 0], sizes = [3, 512], strides = [1, 1]} : vector<32x512xf32> to vector<3x512xf32>
    %c0_14 = arith.constant 0 : index
    %29 = arith.index_cast %8 : i32 to index
    %30 = vector.load %arg4[%c0_14, %29] : memref<3x4096xf32, #tpu.memory_space<vmem>>, vector<3x512xf32>
    tpu.vector_store %arg4[%c0_14, %29], %28 {strides = array<i32>} : memref<3x4096xf32, #tpu.memory_space<vmem>>, vector<3x512xf32>,
    %c1_i32 = arith.constant 1 : i32
    %c512_i32_15 = arith.constant 512 : i32
    %31 = arith.muli %c1_i32, %c512_i32_15 : i32
    %32 = tpu.assume_multiple %31, 512 : i32
    %c0_16 = arith.constant 0 : index
    %33 = arith.index_cast %32 : i32 to index
    %34 = vector.load %arg1[%c0_16, %33] : memref<3x4096xf32, #tpu.memory_space<vmem>>, vector<3x512xf32>
    %c0_17 = arith.constant 0 : index
    %35 = arith.index_cast %32 : i32 to index
    %36 = vector.load %arg2[%c0_17, %35] : memref<5x4096xf32, #tpu.memory_space<vmem>>, vector<5x512xf32>
    %cst_18 = arith.constant dense<0.000000e+00> : vector<32x512xf32>
    %37 = tpu.matmul %0, %34, %cst_18 {dimension_numbers = #tpu.dot_dimension_numbers<[1], [0], [0], [1], [0, 0, 1, 1], [], []>} : vector<32x3xf32>, vector<3x512xf32>, vector<32x512xf32> -> vector<32x512xf32>
    %cst_19 = arith.constant dense<0.000000e+00> : vector<32x512xf32>
    %38 = tpu.matmul %1, %36, %cst_19 {dimension_numbers = #tpu.dot_dimension_numbers<[1], [0], [0], [1], [0, 0, 1, 1], [], []>} : vector<32x5xf32>, vector<5x512xf32>, vector<32x512xf32> -> vector<32x512xf32>
    %39 = arith.addf %37, %38 : vector<32x512xf32>
    %40 = vector.broadcast %2 : vector<32x1xf32> to vector<32x512xf32>
    %41 = arith.addf %39, %40 : vector<32x512xf32>
    %cst_20 = arith.constant 0.000000e+00 : f32
    %42 = vector.broadcast %cst_20 : f32 to vector<32x512xf32>
    %43 = arith.maximumf %41, %42 : vector<32x512xf32>
    %cst_21 = arith.constant dense<0.000000e+00> : vector<32x512xf32>
    %44 = tpu.matmul %3, %43, %cst_21 {dimension_numbers = #tpu.dot_dimension_numbers<[1], [0], [0], [1], [0, 0, 1, 1], [], []>} : vector<32x32xf32>, vector<32x512xf32>, vector<32x512xf32> -> vector<32x512xf32>
    %45 = vector.broadcast %4 : vector<32x1xf32> to vector<32x512xf32>
    %46 = arith.addf %44, %45 : vector<32x512xf32>
    %cst_22 = arith.constant 0.000000e+00 : f32
    %47 = vector.broadcast %cst_22 : f32 to vector<32x512xf32>
    %48 = arith.maximumf %46, %47 : vector<32x512xf32>
    %cst_23 = arith.constant dense<0.000000e+00> : vector<32x512xf32>
    %49 = tpu.matmul %5, %48, %cst_23 {dimension_numbers = #tpu.dot_dimension_numbers<[1], [0], [0], [1], [0, 0, 1, 1], [], []>} : vector<32x32xf32>, vector<32x512xf32>, vector<32x512xf32> -> vector<32x512xf32>
    %50 = vector.broadcast %6 : vector<32x1xf32> to vector<32x512xf32>
    %51 = arith.addf %49, %50 : vector<32x512xf32>
    %52 = vector.extract_strided_slice %51 {offsets = [0, 0], sizes = [3, 512], strides = [1, 1]} : vector<32x512xf32> to vector<3x512xf32>
    %c0_24 = arith.constant 0 : index
    %53 = arith.index_cast %32 : i32 to index
    %54 = vector.load %arg4[%c0_24, %53] : memref<3x4096xf32, #tpu.memory_space<vmem>>, vector<3x512xf32>
    tpu.vector_store %arg4[%c0_24, %53], %52 {strides = array<i32>} : memref<3x4096xf32, #tpu.memory_space<vmem>>, vector<3x512xf32>,
    %c2_i32 = arith.constant 2 : i32
    %c512_i32_25 = arith.constant 512 : i32
    %55 = arith.muli %c2_i32, %c512_i32_25 : i32
    %56 = tpu.assume_multiple %55, 512 : i32
    %c0_26 = arith.constant 0 : index
    %57 = arith.index_cast %56 : i32 to index
    %58 = vector.load %arg1[%c0_26, %57] : memref<3x4096xf32, #tpu.memory_space<vmem>>, vector<3x512xf32>
    %c0_27 = arith.constant 0 : index
    %59 = arith.index_cast %56 : i32 to index
    %60 = vector.load %arg2[%c0_27, %59] : memref<5x4096xf32, #tpu.memory_space<vmem>>, vector<5x512xf32>
    %cst_28 = arith.constant dense<0.000000e+00> : vector<32x512xf32>
    %61 = tpu.matmul %0, %58, %cst_28 {dimension_numbers = #tpu.dot_dimension_numbers<[1], [0], [0], [1], [0, 0, 1, 1], [], []>} : vector<32x3xf32>, vector<3x512xf32>, vector<32x512xf32> -> vector<32x512xf32>
    %cst_29 = arith.constant dense<0.000000e+00> : vector<32x512xf32>
    %62 = tpu.matmul %1, %60, %cst_29 {dimension_numbers = #tpu.dot_dimension_numbers<[1], [0], [0], [1], [0, 0, 1, 1], [], []>} : vector<32x5xf32>, vector<5x512xf32>, vector<32x512xf32> -> vector<32x512xf32>
    %63 = arith.addf %61, %62 : vector<32x512xf32>
    %64 = vector.broadcast %2 : vector<32x1xf32> to vector<32x512xf32>
    %65 = arith.addf %63, %64 : vector<32x512xf32>
    %cst_30 = arith.constant 0.000000e+00 : f32
    %66 = vector.broadcast %cst_30 : f32 to vector<32x512xf32>
    %67 = arith.maximumf %65, %66 : vector<32x512xf32>
    %cst_31 = arith.constant dense<0.000000e+00> : vector<32x512xf32>
    %68 = tpu.matmul %3, %67, %cst_31 {dimension_numbers = #tpu.dot_dimension_numbers<[1], [0], [0], [1], [0, 0, 1, 1], [], []>} : vector<32x32xf32>, vector<32x512xf32>, vector<32x512xf32> -> vector<32x512xf32>
    %69 = vector.broadcast %4 : vector<32x1xf32> to vector<32x512xf32>
    %70 = arith.addf %68, %69 : vector<32x512xf32>
    %cst_32 = arith.constant 0.000000e+00 : f32
    %71 = vector.broadcast %cst_32 : f32 to vector<32x512xf32>
    %72 = arith.maximumf %70, %71 : vector<32x512xf32>
    %cst_33 = arith.constant dense<0.000000e+00> : vector<32x512xf32>
    %73 = tpu.matmul %5, %72, %cst_33 {dimension_numbers = #tpu.dot_dimension_numbers<[1], [0], [0], [1], [0, 0, 1, 1], [], []>} : vector<32x32xf32>, vector<32x512xf32>, vector<32x512xf32> -> vector<32x512xf32>
    %74 = vector.broadcast %6 : vector<32x1xf32> to vector<32x512xf32>
    %75 = arith.addf %73, %74 : vector<32x512xf32>
    %76 = vector.extract_strided_slice %75 {offsets = [0, 0], sizes = [3, 512], strides = [1, 1]} : vector<32x512xf32> to vector<3x512xf32>
    %c0_34 = arith.constant 0 : index
    %77 = arith.index_cast %56 : i32 to index
    %78 = vector.load %arg4[%c0_34, %77] : memref<3x4096xf32, #tpu.memory_space<vmem>>, vector<3x512xf32>
    tpu.vector_store %arg4[%c0_34, %77], %76 {strides = array<i32>} : memref<3x4096xf32, #tpu.memory_space<vmem>>, vector<3x512xf32>,
    %c3_i32 = arith.constant 3 : i32
    %c512_i32_35 = arith.constant 512 : i32
    %79 = arith.muli %c3_i32, %c512_i32_35 : i32
    %80 = tpu.assume_multiple %79, 512 : i32
    %c0_36 = arith.constant 0 : index
    %81 = arith.index_cast %80 : i32 to index
    %82 = vector.load %arg1[%c0_36, %81] : memref<3x4096xf32, #tpu.memory_space<vmem>>, vector<3x512xf32>
    %c0_37 = arith.constant 0 : index
    %83 = arith.index_cast %80 : i32 to index
    %84 = vector.load %arg2[%c0_37, %83] : memref<5x4096xf32, #tpu.memory_space<vmem>>, vector<5x512xf32>
    %cst_38 = arith.constant dense<0.000000e+00> : vector<32x512xf32>
    %85 = tpu.matmul %0, %82, %cst_38 {dimension_numbers = #tpu.dot_dimension_numbers<[1], [0], [0], [1], [0, 0, 1, 1], [], []>} : vector<32x3xf32>, vector<3x512xf32>, vector<32x512xf32> -> vector<32x512xf32>
    %cst_39 = arith.constant dense<0.000000e+00> : vector<32x512xf32>
    %86 = tpu.matmul %1, %84, %cst_39 {dimension_numbers = #tpu.dot_dimension_numbers<[1], [0], [0], [1], [0, 0, 1, 1], [], []>} : vector<32x5xf32>, vector<5x512xf32>, vector<32x512xf32> -> vector<32x512xf32>
    %87 = arith.addf %85, %86 : vector<32x512xf32>
    %88 = vector.broadcast %2 : vector<32x1xf32> to vector<32x512xf32>
    %89 = arith.addf %87, %88 : vector<32x512xf32>
    %cst_40 = arith.constant 0.000000e+00 : f32
    %90 = vector.broadcast %cst_40 : f32 to vector<32x512xf32>
    %91 = arith.maximumf %89, %90 : vector<32x512xf32>
    %cst_41 = arith.constant dense<0.000000e+00> : vector<32x512xf32>
    %92 = tpu.matmul %3, %91, %cst_41 {dimension_numbers = #tpu.dot_dimension_numbers<[1], [0], [0], [1], [0, 0, 1, 1], [], []>} : vector<32x32xf32>, vector<32x512xf32>, vector<32x512xf32> -> vector<32x512xf32>
    %93 = vector.broadcast %4 : vector<32x1xf32> to vector<32x512xf32>
    %94 = arith.addf %92, %93 : vector<32x512xf32>
    %cst_42 = arith.constant 0.000000e+00 : f32
    %95 = vector.broadcast %cst_42 : f32 to vector<32x512xf32>
    %96 = arith.maximumf %94, %95 : vector<32x512xf32>
    %cst_43 = arith.constant dense<0.000000e+00> : vector<32x512xf32>
    %97 = tpu.matmul %5, %96, %cst_43 {dimension_numbers = #tpu.dot_dimension_numbers<[1], [0], [0], [1], [0, 0, 1, 1], [], []>} : vector<32x32xf32>, vector<32x512xf32>, vector<32x512xf32> -> vector<32x512xf32>
    %98 = vector.broadcast %6 : vector<32x1xf32> to vector<32x512xf32>
    %99 = arith.addf %97, %98 : vector<32x512xf32>
    %100 = vector.extract_strided_slice %99 {offsets = [0, 0], sizes = [3, 512], strides = [1, 1]} : vector<32x512xf32> to vector<3x512xf32>
    %c0_44 = arith.constant 0 : index
    %101 = arith.index_cast %80 : i32 to index
    %102 = vector.load %arg4[%c0_44, %101] : memref<3x4096xf32, #tpu.memory_space<vmem>>, vector<3x512xf32>
    tpu.vector_store %arg4[%c0_44, %101], %100 {strides = array<i32>} : memref<3x4096xf32, #tpu.memory_space<vmem>>, vector<3x512xf32>,
    %c4_i32 = arith.constant 4 : i32
    %c512_i32_45 = arith.constant 512 : i32
    %103 = arith.muli %c4_i32, %c512_i32_45 : i32
    %104 = tpu.assume_multiple %103, 512 : i32
    %c0_46 = arith.constant 0 : index
    %105 = arith.index_cast %104 : i32 to index
    %106 = vector.load %arg1[%c0_46, %105] : memref<3x4096xf32, #tpu.memory_space<vmem>>, vector<3x512xf32>
    %c0_47 = arith.constant 0 : index
    %107 = arith.index_cast %104 : i32 to index
    %108 = vector.load %arg2[%c0_47, %107] : memref<5x4096xf32, #tpu.memory_space<vmem>>, vector<5x512xf32>
    %cst_48 = arith.constant dense<0.000000e+00> : vector<32x512xf32>
    %109 = tpu.matmul %0, %106, %cst_48 {dimension_numbers = #tpu.dot_dimension_numbers<[1], [0], [0], [1], [0, 0, 1, 1], [], []>} : vector<32x3xf32>, vector<3x512xf32>, vector<32x512xf32> -> vector<32x512xf32>
    %cst_49 = arith.constant dense<0.000000e+00> : vector<32x512xf32>
    %110 = tpu.matmul %1, %108, %cst_49 {dimension_numbers = #tpu.dot_dimension_numbers<[1], [0], [0], [1], [0, 0, 1, 1], [], []>} : vector<32x5xf32>, vector<5x512xf32>, vector<32x512xf32> -> vector<32x512xf32>
    %111 = arith.addf %109, %110 : vector<32x512xf32>
    %112 = vector.broadcast %2 : vector<32x1xf32> to vector<32x512xf32>
    %113 = arith.addf %111, %112 : vector<32x512xf32>
    %cst_50 = arith.constant 0.000000e+00 : f32
    %114 = vector.broadcast %cst_50 : f32 to vector<32x512xf32>
    %115 = arith.maximumf %113, %114 : vector<32x512xf32>
    %cst_51 = arith.constant dense<0.000000e+00> : vector<32x512xf32>
    %116 = tpu.matmul %3, %115, %cst_51 {dimension_numbers = #tpu.dot_dimension_numbers<[1], [0], [0], [1], [0, 0, 1, 1], [], []>} : vector<32x32xf32>, vector<32x512xf32>, vector<32x512xf32> -> vector<32x512xf32>
    %117 = vector.broadcast %4 : vector<32x1xf32> to vector<32x512xf32>
    %118 = arith.addf %116, %117 : vector<32x512xf32>
    %cst_52 = arith.constant 0.000000e+00 : f32
    %119 = vector.broadcast %cst_52 : f32 to vector<32x512xf32>
    %120 = arith.maximumf %118, %119 : vector<32x512xf32>
    %cst_53 = arith.constant dense<0.000000e+00> : vector<32x512xf32>
    %121 = tpu.matmul %5, %120, %cst_53 {dimension_numbers = #tpu.dot_dimension_numbers<[1], [0], [0], [1], [0, 0, 1, 1], [], []>} : vector<32x32xf32>, vector<32x512xf32>, vector<32x512xf32> -> vector<32x512xf32>
    %122 = vector.broadcast %6 : vector<32x1xf32> to vector<32x512xf32>
    %123 = arith.addf %121, %122 : vector<32x512xf32>
    %124 = vector.extract_strided_slice %123 {offsets = [0, 0], sizes = [3, 512], strides = [1, 1]} : vector<32x512xf32> to vector<3x512xf32>
    %c0_54 = arith.constant 0 : index
    %125 = arith.index_cast %104 : i32 to index
    %126 = vector.load %arg4[%c0_54, %125] : memref<3x4096xf32, #tpu.memory_space<vmem>>, vector<3x512xf32>
    tpu.vector_store %arg4[%c0_54, %125], %124 {strides = array<i32>} : memref<3x4096xf32, #tpu.memory_space<vmem>>, vector<3x512xf32>,
    %c5_i32 = arith.constant 5 : i32
    %c512_i32_55 = arith.constant 512 : i32
    %127 = arith.muli %c5_i32, %c512_i32_55 : i32
    %128 = tpu.assume_multiple %127, 512 : i32
    %c0_56 = arith.constant 0 : index
    %129 = arith.index_cast %128 : i32 to index
    %130 = vector.load %arg1[%c0_56, %129] : memref<3x4096xf32, #tpu.memory_space<vmem>>, vector<3x512xf32>
    %c0_57 = arith.constant 0 : index
    %131 = arith.index_cast %128 : i32 to index
    %132 = vector.load %arg2[%c0_57, %131] : memref<5x4096xf32, #tpu.memory_space<vmem>>, vector<5x512xf32>
    %cst_58 = arith.constant dense<0.000000e+00> : vector<32x512xf32>
    %133 = tpu.matmul %0, %130, %cst_58 {dimension_numbers = #tpu.dot_dimension_numbers<[1], [0], [0], [1], [0, 0, 1, 1], [], []>} : vector<32x3xf32>, vector<3x512xf32>, vector<32x512xf32> -> vector<32x512xf32>
    %cst_59 = arith.constant dense<0.000000e+00> : vector<32x512xf32>
    %134 = tpu.matmul %1, %132, %cst_59 {dimension_numbers = #tpu.dot_dimension_numbers<[1], [0], [0], [1], [0, 0, 1, 1], [], []>} : vector<32x5xf32>, vector<5x512xf32>, vector<32x512xf32> -> vector<32x512xf32>
    %135 = arith.addf %133, %134 : vector<32x512xf32>
    %136 = vector.broadcast %2 : vector<32x1xf32> to vector<32x512xf32>
    %137 = arith.addf %135, %136 : vector<32x512xf32>
    %cst_60 = arith.constant 0.000000e+00 : f32
    %138 = vector.broadcast %cst_60 : f32 to vector<32x512xf32>
    %139 = arith.maximumf %137, %138 : vector<32x512xf32>
    %cst_61 = arith.constant dense<0.000000e+00> : vector<32x512xf32>
    %140 = tpu.matmul %3, %139, %cst_61 {dimension_numbers = #tpu.dot_dimension_numbers<[1], [0], [0], [1], [0, 0, 1, 1], [], []>} : vector<32x32xf32>, vector<32x512xf32>, vector<32x512xf32> -> vector<32x512xf32>
    %141 = vector.broadcast %4 : vector<32x1xf32> to vector<32x512xf32>
    %142 = arith.addf %140, %141 : vector<32x512xf32>
    %cst_62 = arith.constant 0.000000e+00 : f32
    %143 = vector.broadcast %cst_62 : f32 to vector<32x512xf32>
    %144 = arith.maximumf %142, %143 : vector<32x512xf32>
    %cst_63 = arith.constant dense<0.000000e+00> : vector<32x512xf32>
    %145 = tpu.matmul %5, %144, %cst_63 {dimension_numbers = #tpu.dot_dimension_numbers<[1], [0], [0], [1], [0, 0, 1, 1], [], []>} : vector<32x32xf32>, vector<32x512xf32>, vector<32x512xf32> -> vector<32x512xf32>
    %146 = vector.broadcast %6 : vector<32x1xf32> to vector<32x512xf32>
    %147 = arith.addf %145, %146 : vector<32x512xf32>
    %148 = vector.extract_strided_slice %147 {offsets = [0, 0], sizes = [3, 512], strides = [1, 1]} : vector<32x512xf32> to vector<3x512xf32>
    %c0_64 = arith.constant 0 : index
    %149 = arith.index_cast %128 : i32 to index
    %150 = vector.load %arg4[%c0_64, %149] : memref<3x4096xf32, #tpu.memory_space<vmem>>, vector<3x512xf32>
    tpu.vector_store %arg4[%c0_64, %149], %148 {strides = array<i32>} : memref<3x4096xf32, #tpu.memory_space<vmem>>, vector<3x512xf32>,
    %c6_i32 = arith.constant 6 : i32
    %c512_i32_65 = arith.constant 512 : i32
    %151 = arith.muli %c6_i32, %c512_i32_65 : i32
    %152 = tpu.assume_multiple %151, 512 : i32
    %c0_66 = arith.constant 0 : index
    %153 = arith.index_cast %152 : i32 to index
    %154 = vector.load %arg1[%c0_66, %153] : memref<3x4096xf32, #tpu.memory_space<vmem>>, vector<3x512xf32>
    %c0_67 = arith.constant 0 : index
    %155 = arith.index_cast %152 : i32 to index
    %156 = vector.load %arg2[%c0_67, %155] : memref<5x4096xf32, #tpu.memory_space<vmem>>, vector<5x512xf32>
    %cst_68 = arith.constant dense<0.000000e+00> : vector<32x512xf32>
    %157 = tpu.matmul %0, %154, %cst_68 {dimension_numbers = #tpu.dot_dimension_numbers<[1], [0], [0], [1], [0, 0, 1, 1], [], []>} : vector<32x3xf32>, vector<3x512xf32>, vector<32x512xf32> -> vector<32x512xf32>
    %cst_69 = arith.constant dense<0.000000e+00> : vector<32x512xf32>
    %158 = tpu.matmul %1, %156, %cst_69 {dimension_numbers = #tpu.dot_dimension_numbers<[1], [0], [0], [1], [0, 0, 1, 1], [], []>} : vector<32x5xf32>, vector<5x512xf32>, vector<32x512xf32> -> vector<32x512xf32>
    %159 = arith.addf %157, %158 : vector<32x512xf32>
    %160 = vector.broadcast %2 : vector<32x1xf32> to vector<32x512xf32>
    %161 = arith.addf %159, %160 : vector<32x512xf32>
    %cst_70 = arith.constant 0.000000e+00 : f32
    %162 = vector.broadcast %cst_70 : f32 to vector<32x512xf32>
    %163 = arith.maximumf %161, %162 : vector<32x512xf32>
    %cst_71 = arith.constant dense<0.000000e+00> : vector<32x512xf32>
    %164 = tpu.matmul %3, %163, %cst_71 {dimension_numbers = #tpu.dot_dimension_numbers<[1], [0], [0], [1], [0, 0, 1, 1], [], []>} : vector<32x32xf32>, vector<32x512xf32>, vector<32x512xf32> -> vector<32x512xf32>
    %165 = vector.broadcast %4 : vector<32x1xf32> to vector<32x512xf32>
    %166 = arith.addf %164, %165 : vector<32x512xf32>
    %cst_72 = arith.constant 0.000000e+00 : f32
    %167 = vector.broadcast %cst_72 : f32 to vector<32x512xf32>
    %168 = arith.maximumf %166, %167 : vector<32x512xf32>
    %cst_73 = arith.constant dense<0.000000e+00> : vector<32x512xf32>
    %169 = tpu.matmul %5, %168, %cst_73 {dimension_numbers = #tpu.dot_dimension_numbers<[1], [0], [0], [1], [0, 0, 1, 1], [], []>} : vector<32x32xf32>, vector<32x512xf32>, vector<32x512xf32> -> vector<32x512xf32>
    %170 = vector.broadcast %6 : vector<32x1xf32> to vector<32x512xf32>
    %171 = arith.addf %169, %170 : vector<32x512xf32>
    %172 = vector.extract_strided_slice %171 {offsets = [0, 0], sizes = [3, 512], strides = [1, 1]} : vector<32x512xf32> to vector<3x512xf32>
    %c0_74 = arith.constant 0 : index
    %173 = arith.index_cast %152 : i32 to index
    %174 = vector.load %arg4[%c0_74, %173] : memref<3x4096xf32, #tpu.memory_space<vmem>>, vector<3x512xf32>
    tpu.vector_store %arg4[%c0_74, %173], %172 {strides = array<i32>} : memref<3x4096xf32, #tpu.memory_space<vmem>>, vector<3x512xf32>,
    %c7_i32 = arith.constant 7 : i32
    %c512_i32_75 = arith.constant 512 : i32
    %175 = arith.muli %c7_i32, %c512_i32_75 : i32
    %176 = tpu.assume_multiple %175, 512 : i32
    %c0_76 = arith.constant 0 : index
    %177 = arith.index_cast %176 : i32 to index
    %178 = vector.load %arg1[%c0_76, %177] : memref<3x4096xf32, #tpu.memory_space<vmem>>, vector<3x512xf32>
    %c0_77 = arith.constant 0 : index
    %179 = arith.index_cast %176 : i32 to index
    %180 = vector.load %arg2[%c0_77, %179] : memref<5x4096xf32, #tpu.memory_space<vmem>>, vector<5x512xf32>
    %cst_78 = arith.constant dense<0.000000e+00> : vector<32x512xf32>
    %181 = tpu.matmul %0, %178, %cst_78 {dimension_numbers = #tpu.dot_dimension_numbers<[1], [0], [0], [1], [0, 0, 1, 1], [], []>} : vector<32x3xf32>, vector<3x512xf32>, vector<32x512xf32> -> vector<32x512xf32>
    %cst_79 = arith.constant dense<0.000000e+00> : vector<32x512xf32>
    %182 = tpu.matmul %1, %180, %cst_79 {dimension_numbers = #tpu.dot_dimension_numbers<[1], [0], [0], [1], [0, 0, 1, 1], [], []>} : vector<32x5xf32>, vector<5x512xf32>, vector<32x512xf32> -> vector<32x512xf32>
    %183 = arith.addf %181, %182 : vector<32x512xf32>
    %184 = vector.broadcast %2 : vector<32x1xf32> to vector<32x512xf32>
    %185 = arith.addf %183, %184 : vector<32x512xf32>
    %cst_80 = arith.constant 0.000000e+00 : f32
    %186 = vector.broadcast %cst_80 : f32 to vector<32x512xf32>
    %187 = arith.maximumf %185, %186 : vector<32x512xf32>
    %cst_81 = arith.constant dense<0.000000e+00> : vector<32x512xf32>
    %188 = tpu.matmul %3, %187, %cst_81 {dimension_numbers = #tpu.dot_dimension_numbers<[1], [0], [0], [1], [0, 0, 1, 1], [], []>} : vector<32x32xf32>, vector<32x512xf32>, vector<32x512xf32> -> vector<32x512xf32>
    %189 = vector.broadcast %4 : vector<32x1xf32> to vector<32x512xf32>
    %190 = arith.addf %188, %189 : vector<32x512xf32>
    %cst_82 = arith.constant 0.000000e+00 : f32
    %191 = vector.broadcast %cst_82 : f32 to vector<32x512xf32>
    %192 = arith.maximumf %190, %191 : vector<32x512xf32>
    %cst_83 = arith.constant dense<0.000000e+00> : vector<32x512xf32>
    %193 = tpu.matmul %5, %192, %cst_83 {dimension_numbers = #tpu.dot_dimension_numbers<[1], [0], [0], [1], [0, 0, 1, 1], [], []>} : vector<32x32xf32>, vector<32x512xf32>, vector<32x512xf32> -> vector<32x512xf32>
    %194 = vector.broadcast %6 : vector<32x1xf32> to vector<32x512xf32>
    %195 = arith.addf %193, %194 : vector<32x512xf32>
    %196 = vector.extract_strided_slice %195 {offsets = [0, 0], sizes = [3, 512], strides = [1, 1]} : vector<32x512xf32> to vector<3x512xf32>
    %c0_84 = arith.constant 0 : index
    %197 = arith.index_cast %176 : i32 to index
    %198 = vector.load %arg4[%c0_84, %197] : memref<3x4096xf32, #tpu.memory_space<vmem>>, vector<3x512xf32>
    tpu.vector_store %arg4[%c0_84, %197], %196 {strides = array<i32>} : memref<3x4096xf32, #tpu.memory_space<vmem>>, vector<3x512xf32>,
    %c8_i32 = arith.constant 8 : i32
    return
  }
  func.func @transform_0(%arg0: i32) -> (i32, i32) {
    %c0_i32 = arith.constant 0 : i32
    %c0_i32_0 = arith.constant 0 : i32
    return %c0_i32, %arg0 : i32, i32
  }
  func.func @transform_1(%arg0: i32) -> (i32, i32) {
    %c0_i32 = arith.constant 0 : i32
    %c0_i32_0 = arith.constant 0 : i32
    return %c0_i32, %arg0 : i32, i32
  }
  func.func @transform_2(%arg0: i32) -> (i32, i32) {
    %c0_i32 = arith.constant 0 : i32
    %c0_i32_0 = arith.constant 0 : i32
    %c0_i32_1 = arith.constant 0 : i32
    return %c0_i32, %c0_i32_0 : i32, i32
  }
  func.func @transform_3(%arg0: i32) -> (i32, i32) {
    %c0_i32 = arith.constant 0 : i32
    %c0_i32_0 = arith.constant 0 : i32
    return %c0_i32, %arg0 : i32, i32
  }
}

</mosaic_0001>

<bundles_post_ra>
// kernel: tpu_custom_call.1
= control target key start
LH: loop header
LB: loop body
LE: loop exit
PB: predicated region body
PF: predicated region fallthrough
CT: control target
= control target key end

     0   :  { %8 = vsyncpa [#allocation3], 0  ;;  %s6869_s0 = inlined_call_operand.hbm [shape: f32[3,4096], index: 0, kind: input, shape index: {}]   ;;  %s6870_s1 = inlined_call_operand.hbm [shape: f32[5,4096], index: 1, kind: input, shape index: {}]   ;;  %s6871_s2 = inlined_call_operand.hbm [shape: f32[32,75], index: 2, kind: input, shape index: {}]   ;;  %s6872_s3 = inlined_call_operand.hbm [shape: f32[3,4096], index: 3, kind: output, shape index: {}]  }
   0x1   :  { %9 = vsyncpa [#allocation6], 0  ;;  %s27_s14 = sshll.u32 %s6870_s1, 4  ;;  %s28_s14 = int_to_ptr.hbm [resolvable:$true] %s27_s14 }
   0x2   :  { %10 = vsyncpa [#allocation4], 0  ;;  %s5298_s15 = smov [#allocation5]   ;;  %s16_s19 = sshll.u32 %s6869_s0, 4  ;;  %s17_s19 = int_to_ptr.hbm [resolvable:$true] %s16_s19 }
   0x3   :  { %s29_s16 = sshll.u32 %s5298_s15, 4  ;;  %s5299_s20 = smov [#allocation2]   ;;  %s30_s16 = int_to_ptr.vmem [resolvable:$true] %s29_s16 }
   0x4   :  { %32 = dma.hbm_to_vmem [thread:$0]  %s28_s14, 4096, %s30_s16, [#allocation6]  }
   0x5   :  { %s18_s21 = sshll.u32 %s5299_s20, 4  ;;  %s37_s24 = sshll.u32 %s6871_s2, 4  ;;  %s19_s21 = int_to_ptr.vmem [resolvable:$true] %s18_s21  ;;  %s38_s24 = int_to_ptr.hbm [resolvable:$true] %s37_s24 }
   0x6   :  { %21 = dma.hbm_to_vmem [thread:$0]  %s17_s19, 2048, %s19_s21, [#allocation3]  }
   0x7   :  { %s5300_s1 = smov [#allocation7]   ;;  %s5301_s26 = smov 128  }
   0x8   :  { %s39_s25 = sshll.u32 %s5300_s1, 4  ;;  %s5302_s27 = smov 8   ;;  %s40_s25 = int_to_ptr.vmem [resolvable:$true] %s39_s25 }
   0x9   :  { %45 = dma.hbm_to_vmem [thread:$0]  %s38_s24, 512, %s40_s25, [#allocation6], %s5301_s26, %s5301_s26, %s5302_s27  }
   0xa   :  { %5292 = dma.done.wait [#allocation3], 2048  }
   0xb   :  { %5293 = vsyncadd [#allocation3], 4294965248 }
   0xc   :  { %5294 = dma.done.wait [#allocation6], 4608  }
   0xd   :  { %5295 = vsyncadd [#allocation6], 4294962688  ;;  %vm89_vm0 = vcmask 1044480   ;;  %v5339_v0 = vld [vmem:[#allocation7] sm:$0xff]  ;;  %v5341_v1 = vld [vmem:[#allocation7 + $0x10] sm:$0xff]  ;;  %s5303_s0 = smov 125  }
   0xe   :  { %72 = vrot.lane.b32.xlu0 %v5339_v0, %s5303_s0  ;;  %76 = vrot.lane.b32.xlu1 %v5341_v1, %s5303_s0  ;;  %v64_v2 = vld [vmem:[#allocation5] sm:$0x1f]  ;;  %v65_v3 = vld [vmem:[#allocation5 + $0x8] sm:$0x1f]  ;;  %v66_v4 = vld [vmem:[#allocation5 + $0x10] sm:$0x1f] }
   0xf   :  { %4588 = vmatpush.msk.msra.mxu0 %vm89_vm0, %v64_v2  ;;  %4593 = vmatpush.msk.msra.mxu1 %vm89_vm0, %v65_v3  ;;  %v67_v5 = vld [vmem:[#allocation5 + $0x18] sm:$0x1f]  ;;  %v5349_v6 = vld [vmem:[#allocation7 + $0x8] sm:$0xff]  ;;  %v62_v9 = vld [vmem:[#allocation2] sm:$0x77]  ;;  %vm80_vm1 = vcmask 39936  }
  0x10   :  { %4598 = vmatpush.msk.msra.mxu2 %vm89_vm0, %v66_v4  ;;  %4603 = vmatpush.msk.msra.mxu3 %vm89_vm0, %v67_v5  ;;  %v5351_v7 = vld [vmem:[#allocation7 + $0x18] sm:$0xff]  ;;  %v63_v8 = vld [vmem:[#allocation2 + $0x8] sm:$0x77]  ;;  %220 = vst [vmem:[#allocation1] ss:$2 sm:$0xff] %v62_v9  ;;  %vm236_vm2 = vcmask 1042432  }
  0x11   :  { %222 = vst [vmem:[#allocation1 + $0x10] ss:$2 sm:$0xff] %v63_v8  ;;  %v722_v10 = vld [vmem:[#allocation2 + $0x18] sm:$0x77]  ;;  %v721_v11 = vld [vmem:[#allocation2 + $0x10] sm:$0x77] }
  0x12   :  { %v5304_v18 = vmov 8   ;;  %s5305_s2 = smov 119   ;;  %vm227_vm3 = vcmask 23552   ;;  %v5306_v44 = vmov 41   ;;  %s5307_s28 = smov 86   ;;  %vm433_vm4 = vcmask 261120  }
  0x13   :  { %5178 = vset.pattern.permute.xlu1 %v5304_v18  ;;  %5177 = vset.pattern.permute.xlu0 %v5304_v18  ;;  %vm713_vm5 = vcmask 1043456   ;;  %s5309_s29 = smov [#allocation8]   ;;  %s4577_s6 = sshll.u32 %s6872_s3, 4  ;;  %s4578_s6 = int_to_ptr.hbm [resolvable:$true] %s4577_s6 }
  0x14   :  { %5176 = vset.pattern.permute.xlu2 %v5304_v18  ;;  %s4575_s30 = sshll.u32 %s5309_s29, 4  ;;  %s4576_s30 = int_to_ptr.vmem [resolvable:$true] %s4575_s30 }
  0x15   :  { %374 = vperm.xlu2 %5176, %v5351_v7  }
  0x16   :  { %74 = vrot.lane.b32.xlu0 %v5349_v6, %s5303_s0  ;;  %78 = vrot.lane.b32.xlu1 %v5351_v7, %s5303_s0 }
  0x17   :  { %v223_v15 = vld.sshfl [vmem:[#allocation1] sm:$0xff pattern:$0x75316420]  ;;  %v224_v16 = vld.sshfl [vmem:[#allocation1 + $0x8] sm:$0xff pattern:$0x75316420] }
  0x18   :  { %v225_v13 = vld.sshfl [vmem:[#allocation1 + $0x10] sm:$0xff pattern:$0x75316420]  ;;  %v226_v14 = vld.sshfl [vmem:[#allocation1 + $0x18] sm:$0xff pattern:$0x75316420]  ;;  %4608 = vmatpush.msk.msrb.mxu0 %vm236_vm2, %v223_v15  ;;  %4613 = vmatpush.msk.msrb.mxu1 %vm236_vm2, %v224_v16 }
  0x19   :  { %860 = vst [vmem:[#allocation1 + $0x10] ss:$2 sm:$0xff] %v722_v10  ;;  %4618 = vmatpush.msk.msrb.mxu2 %vm236_vm2, %v225_v13  ;;  %4623 = vmatpush.msk.msrb.mxu3 %vm236_vm2, %v226_v14 }
  0x1a   :  { %858 = vst [vmem:[#allocation1] ss:$2 sm:$0xff] %v721_v11 }
  0x1d   :  { %370 = vperm.xlu2 %5176, %v5341_v1  }
  0x1e   :  { %362 = vperm.xlu1 %5178, %v5339_v0   ;;  %366 = vperm.xlu0 %5177, %v5349_v6  }
  0x25   :  { %425 = vrot.lane.b32.xlu2 %v5339_v0, %s5305_s2 }
  0x26   :  { %427 = vrot.lane.b32.xlu1 %v5349_v6, %s5305_s2  ;;  %431 = vrot.lane.b32.xlu0 %v5351_v7, %s5305_s2 }
  0x27   :  { %5179 = vset.pattern.permute.xlu1 %v5306_v44  ;;  %5181 = vset.pattern.permute.xlu0 %v5306_v44 }
  0x28   :  { %5180 = vset.pattern.permute.xlu2 %v5306_v44 }
  0x2d   :  { %429 = vrot.lane.b32.xlu2 %v5341_v1, %s5305_s2 }
  0x2e   :  { %422 = vperm.xlu1 %5179, %v5351_v7   ;;  %414 = vperm.xlu0 %5181, %v5349_v6  }
  0x35   :  { %418 = vperm.xlu2 %5180, %v5341_v1  }
  0x36   :  { %410 = vperm.xlu1 %5179, %v5339_v0   ;;  %593 = vrot.lane.b32.xlu0 %v5351_v7, %s5307_s28 }
  0x3d   :  { %587 = vrot.lane.b32.xlu2 %v5339_v0, %s5307_s28 }
  0x3e   :  { %589 = vrot.lane.b32.xlu1 %v5349_v6, %s5307_s28 }
  0x45   :  { %591 = vrot.lane.b32.xlu2 %v5341_v1, %s5307_s28 }
  0x6f   :  { %v5447_v43 = vpop.permute.xlu2 %374 }
  0x77   :  { %v5452_v49 = vpop.permute.xlu2 %370 }
  0x80   :  { %v5355_v12 = vpop.permute.xlu0 %72  ;;  %v5379_v19 = vpop.permute.xlu1 %76 }
  0x81   :  { %4589 = vmatmul.msk.f32.vlgmr.msra.gmra.mxu0 %vm80_vm1, %v5355_v12  ;;  %4594 = vmatmul.msk.f32.vlgmr.msra.gmra.mxu1 %vm80_vm1, %v5355_v12 }
  0x82   :  { %4599 = vmatmul.msk.f32.vlgmr.msra.gmra.mxu2 %vm80_vm1, %v5355_v12  ;;  %4604 = vmatmul.msk.f32.vlgmr.msra.gmra.mxu3 %vm80_vm1, %v5355_v12 }
  0x88   :  { %v5369_v17 = vpop.permute.xlu0 %74  ;;  %v5394_v20 = vpop.permute.xlu1 %78 }
  0x89   :  { %4590 = vmatmul.msk.f32.gmra.mxu0 %vm80_vm1, %v5369_v17  ;;  %4595 = vmatmul.msk.f32.gmra.mxu1 %vm80_vm1, %v5369_v17 }
  0x8a   :  { %4600 = vmatmul.msk.f32.gmra.mxu2 %vm80_vm1, %v5369_v17  ;;  %4605 = vmatmul.msk.f32.gmra.mxu3 %vm80_vm1, %v5369_v17 }
  0x90   :  { %v5459_v62 = vpop.permute.xlu0 %366  ;;  %v5465_v5 = vpop.permute.xlu1 %362 }
  0x91   :  { %4591 = vmatmul.msk.f32.gmra.mxu0 %vm80_vm1, %v5379_v19  ;;  %4596 = vmatmul.msk.f32.gmra.mxu1 %vm80_vm1, %v5379_v19 }
  0x92   :  { %4601 = vmatmul.msk.f32.gmra.mxu2 %vm80_vm1, %v5379_v19  ;;  %4606 = vmatmul.msk.f32.gmra.mxu3 %vm80_vm1, %v5379_v19 }
  0x99   :  { %4592 = vmatmul.msk.f32.gmra.mxu0 %vm80_vm1, %v5394_v20  ;;  %4597 = vmatmul.msk.f32.gmra.mxu1 %vm80_vm1, %v5394_v20 }
  0x9a   :  { %4602 = vmatmul.msk.f32.gmra.mxu2 %vm80_vm1, %v5394_v20  ;;  %4607 = vmatmul.msk.f32.gmra.mxu3 %vm80_vm1, %v5394_v20 }
  0xa1   :  { %4609 = vmatmul.msk.f32.vlgmr.msrb.gmra.mxu0 %vm227_vm3, %v5339_v0  ;;  %4614 = vmatmul.msk.f32.vlgmr.msrb.gmra.mxu1 %vm227_vm3, %v5339_v0 }
  0xa2   :  { %4619 = vmatmul.msk.f32.vlgmr.msrb.gmra.mxu2 %vm227_vm3, %v5339_v0  ;;  %4624 = vmatmul.msk.f32.vlgmr.msrb.gmra.mxu3 %vm227_vm3, %v5339_v0 }
  0xa9   :  { %4610 = vmatmul.msk.f32.gmra.mxu0 %vm227_vm3, %v5349_v6  ;;  %4615 = vmatmul.msk.f32.gmra.mxu1 %vm227_vm3, %v5349_v6 }
  0xaa   :  { %4620 = vmatmul.msk.f32.gmra.mxu2 %vm227_vm3, %v5349_v6  ;;  %4625 = vmatmul.msk.f32.gmra.mxu3 %vm227_vm3, %v5349_v6 }
  0xb1   :  { %4611 = vmatmul.msk.f32.gmra.mxu0 %vm227_vm3, %v5341_v1  ;;  %4616 = vmatmul.msk.f32.gmra.mxu1 %vm227_vm3, %v5341_v1 }
  0xb2   :  { %4621 = vmatmul.msk.f32.gmra.mxu2 %vm227_vm3, %v5341_v1  ;;  %4626 = vmatmul.msk.f32.gmra.mxu3 %vm227_vm3, %v5341_v1 }
  0xb9   :  { %4612 = vmatmul.msk.f32.gmra.mxu0 %vm227_vm3, %v5351_v7  ;;  %4617 = vmatmul.msk.f32.gmra.mxu1 %vm227_vm3, %v5351_v7 }
  0xba   :  { %4622 = vmatmul.msk.f32.gmra.mxu2 %vm227_vm3, %v5351_v7  ;;  %4627 = vmatmul.msk.f32.gmra.mxu3 %vm227_vm3, %v5351_v7 }
  0xfe   :  { %v119_v21 = vpop.f32.mrf.mxu0  ;;  %v148_v22 = vpop.f32.mrf.mxu1 }
 0x105   :  { %v5439_v23 = vpop.f32.mrf.mxu2  ;;  %v5441_v24 = vpop.f32.mrf.mxu3 }
 0x106   :  { %v122_v25 = vpop.f32.mrf.mxu0  ;;  %v151_v26 = vpop.f32.mrf.mxu1 }
 0x10d   :  { %v5443_v27 = vpop.f32.mrf.mxu2  ;;  %v5445_v28 = vpop.f32.mrf.mxu3 }
 0x10e   :  { %v125_v29 = vpop.f32.mrf.mxu0  ;;  %v154_v30 = vpop.f32.mrf.mxu1 }
 0x115   :  { %v183_v31 = vpop.f32.mrf.mxu2  ;;  %v212_v32 = vpop.f32.mrf.mxu3 }
 0x116   :  { %v128_v33 = vpop.f32.mrf.mxu0  ;;  %v157_v34 = vpop.f32.mrf.mxu1 }
 0x11d   :  { %v186_v35 = vpop.f32.mrf.mxu2  ;;  %v215_v36 = vpop.f32.mrf.mxu3 }
 0x11e   :  { %v262_v37 = vpop.f32.mrf.mxu0  ;;  %v291_v38 = vpop.f32.mrf.mxu1 }
 0x11f   :  { %v263_v60 = vadd.f32 %v262_v37, %v119_v21  ;;  %v292_v61 = vadd.f32 %v291_v38, %v148_v22 }
 0x121   :  { %v377_v22 = vadd.f32 %v5465_v5, %v263_v60 }
 0x125   :  { %v320_v39 = vpop.f32.mrf.mxu2  ;;  %v349_v40 = vpop.f32.mrf.mxu3 }
 0x126   :  { %v265_v41 = vpop.f32.mrf.mxu0  ;;  %v294_v42 = vpop.f32.mrf.mxu1 }
 0x127   :  { %v266_v56 = vadd.f32 %v265_v41, %v122_v25  ;;  %v295_v57 = vadd.f32 %v294_v42, %v151_v26  ;;  %v378_v25 = vadd.f32 %v5465_v5, %v292_v61  ;;  %v5485_v42 = vpop.permute.xlu2 %425 }
 0x129   :  { %v381_v10 = vadd.f32 %v5459_v62, %v266_v56  ;;  %v382_v11 = vadd.f32 %v5459_v62, %v295_v57 }
 0x12b   :  { %v398_v37 = vmax.f32 %v382_v11, 0.0 }
 0x12d   :  { %v323_v45 = vpop.f32.mrf.mxu2  ;;  %v352_v46 = vpop.f32.mrf.mxu3 }
 0x12e   :  { %v268_v47 = vpop.f32.mrf.mxu0  ;;  %v297_v48 = vpop.f32.mrf.mxu1  ;;  %v324_v26 = vadd.f32 %v323_v45, %v5443_v27 }
 0x12f   :  { %v269_v50 = vadd.f32 %v268_v47, %v125_v29  ;;  %v298_v51 = vadd.f32 %v297_v48, %v154_v30  ;;  %v353_v29 = vadd.f32 %v352_v46, %v5445_v28 }
 0x131   :  { %v385_v3 = vadd.f32 %v5452_v49, %v269_v50  ;;  %v386_v4 = vadd.f32 %v5452_v49, %v298_v51 }
 0x133   :  { %v401_v18 = vmax.f32 %v385_v3, 0.0  ;;  %v402_v21 = vmax.f32 %v386_v4, 0.0 }
 0x135   :  { %v326_v52 = vpop.f32.mrf.mxu2  ;;  %v355_v53 = vpop.f32.mrf.mxu3 }
 0x136   :  { %v271_v54 = vpop.f32.mrf.mxu0  ;;  %v300_v55 = vpop.f32.mrf.mxu1  ;;  %v327_v13 = vadd.f32 %v326_v52, %v183_v31  ;;  %v356_v14 = vadd.f32 %v355_v53, %v212_v32  ;;  %v321_v31 = vadd.f32 %v320_v39, %v5439_v23  ;;  %v350_v32 = vadd.f32 %v349_v40, %v5441_v24 }
 0x137   :  { %v272_v58 = vadd.f32 %v271_v54, %v128_v33  ;;  %v301_v59 = vadd.f32 %v300_v55, %v157_v34  ;;  %v397_v34 = vmax.f32 %v381_v10, 0.0  ;;  %v393_v23 = vmax.f32 %v377_v22, 0.0  ;;  %v5493_v53 = vpop.permute.xlu1 %427  ;;  %v5503_v54 = vpop.permute.xlu2 %429 }
 0x138   :  { %v387_v38 = vadd.f32 %v5452_v49, %v327_v13  ;;  %v388_v41 = vadd.f32 %v5452_v49, %v356_v14  ;;  %v383_v24 = vadd.f32 %v5459_v62, %v324_v26  ;;  %v379_v44 = vadd.f32 %v5465_v5, %v321_v31  ;;  %v5513_v55 = vpop.permute.xlu0 %431 }
 0x139   :  { %v389_v63 = vadd.f32 %v5447_v43, %v272_v58  ;;  %v390_v2 = vadd.f32 %v5447_v43, %v301_v59  ;;  %v380_v45 = vadd.f32 %v5465_v5, %v350_v32 }
 0x13a   :  { %v403_v46 = vmax.f32 %v387_v38, 0.0  ;;  %v404_v47 = vmax.f32 %v388_v41, 0.0  ;;  %v399_v48 = vmax.f32 %v383_v24, 0.0  ;;  %v395_v51 = vmax.f32 %v379_v44, 0.0  ;;  %v724_v24 = vld [vmem:[#allocation5 + $0x20] sm:$0x1f] }
 0x13b   :  { %v405_v8 = vmax.f32 %v389_v63, 0.0  ;;  %v406_v9 = vmax.f32 %v390_v2, 0.0  ;;  %v396_v52 = vmax.f32 %v380_v45, 0.0 }
 0x13d   :  { %v329_v15 = vpop.f32.mrf.mxu2  ;;  %v358_v16 = vpop.f32.mrf.mxu3  ;;  %454 = vmatpush.msra.mxu0 %v405_v8  ;;  %483 = vmatpush.msra.mxu1 %v406_v9  ;;  %v5308_v9 = vmov 74  }
 0x13e   :  { %v330_v30 = vadd.f32 %v329_v15, %v186_v35  ;;  %v359_v33 = vadd.f32 %v358_v16, %v215_v36  ;;  %v394_v35 = vmax.f32 %v378_v25, 0.0  ;;  %v384_v36 = vadd.f32 %v5459_v62, %v353_v29  ;;  %5182 = vset.pattern.permute.xlu1 %v5308_v9  ;;  %5183 = vset.pattern.permute.xlu0 %v5308_v9 }
 0x13f   :  { %455 = vmatpush.msra.mxu0 %v401_v18  ;;  %484 = vmatpush.msra.mxu1 %v402_v21  ;;  %v5527_v63 = vpop.permute.xlu1 %422  ;;  %v5529_v10 = vpop.permute.xlu2 %418 }
 0x140   :  { %v391_v27 = vadd.f32 %v5447_v43, %v330_v30  ;;  %v392_v28 = vadd.f32 %v5447_v43, %v359_v33  ;;  %v400_v50 = vmax.f32 %v384_v36, 0.0  ;;  %575 = vperm.xlu1 %5182, %v5339_v0   ;;  %v5532_v11 = vpop.permute.xlu0 %414  ;;  %v725_v36 = vld [vmem:[#allocation5 + $0x28] sm:$0x1f] }
 0x141   :  { %456 = vmatpush.msra.mxu0 %v397_v34  ;;  %485 = vmatpush.msra.mxu1 %v398_v37 }
 0x142   :  { %v407_v39 = vmax.f32 %v391_v27, 0.0  ;;  %v408_v40 = vmax.f32 %v392_v28, 0.0 }
 0x143   :  { %457 = vmatpush.msra.mxu0 %v393_v23  ;;  %486 = vmatpush.msra.mxu1 %v394_v35 }
 0x144   :  { %512 = vmatpush.msra.mxu2 %v407_v39  ;;  %541 = vmatpush.msra.mxu3 %v408_v40 }
 0x145   :  { %4628 = vmatmul.msk.f32.vlgmr.msra.gmra.mxu0 %vm433_vm4, %v5485_v42  ;;  %4632 = vmatmul.msk.f32.vlgmr.msra.gmra.mxu1 %vm433_vm4, %v5485_v42 }
 0x146   :  { %513 = vmatpush.msra.mxu2 %v403_v46  ;;  %542 = vmatpush.msra.mxu3 %v404_v47 }
 0x147   :  { %v5538_v22 = vpop.permute.xlu1 %410  ;;  %v5544_v28 = vpop.permute.xlu2 %587 }
 0x148   :  { %514 = vmatpush.msra.mxu2 %v399_v48  ;;  %543 = vmatpush.msra.mxu3 %v400_v50 }
 0x14a   :  { %515 = vmatpush.msra.mxu2 %v395_v51  ;;  %544 = vmatpush.msra.mxu3 %v396_v52 }
 0x14b   :  { %4636 = vmatmul.msk.f32.vlgmr.msra.gmra.mxu2 %vm433_vm4, %v5485_v42  ;;  %4640 = vmatmul.msk.f32.vlgmr.msra.gmra.mxu3 %vm433_vm4, %v5485_v42 }
 0x14d   :  { %4629 = vmatmul.msk.f32.gmra.mxu0 %vm433_vm4, %v5493_v53  ;;  %4633 = vmatmul.msk.f32.gmra.mxu1 %vm433_vm4, %v5493_v53 }
 0x153   :  { %4637 = vmatmul.msk.f32.gmra.mxu2 %vm433_vm4, %v5493_v53  ;;  %4641 = vmatmul.msk.f32.gmra.mxu3 %vm433_vm4, %v5493_v53 }
 0x155   :  { %4630 = vmatmul.msk.f32.gmra.mxu0 %vm433_vm4, %v5503_v54  ;;  %4634 = vmatmul.msk.f32.gmra.mxu1 %vm433_vm4, %v5503_v54 }
 0x15b   :  { %4638 = vmatmul.msk.f32.gmra.mxu2 %vm433_vm4, %v5503_v54  ;;  %4642 = vmatmul.msk.f32.gmra.mxu3 %vm433_vm4, %v5503_v54 }
 0x15d   :  { %4631 = vmatmul.msk.f32.gmra.mxu0 %vm433_vm4, %v5513_v55  ;;  %4635 = vmatmul.msk.f32.gmra.mxu1 %vm433_vm4, %v5513_v55 }
 0x163   :  { %4639 = vmatmul.msk.f32.gmra.mxu2 %vm433_vm4, %v5513_v55  ;;  %4643 = vmatmul.msk.f32.gmra.mxu3 %vm433_vm4, %v5513_v55 }
 0x1c2   :  { %v459_v56 = vpop.f32.mrf.mxu0  ;;  %v488_v57 = vpop.f32.mrf.mxu1 }
 0x1c3   :  { %v460_v37 = vadd.f32 %v459_v56, %v5538_v22  ;;  %v489_v38 = vadd.f32 %v488_v57, %v5538_v22 }
 0x1c5   :  { %v558_v23 = vmax.f32 %v460_v37, 0.0  ;;  %v559_v35 = vmax.f32 %v489_v38, 0.0 }
 0x1ca   :  { %v462_v58 = vpop.f32.mrf.mxu0  ;;  %v491_v59 = vpop.f32.mrf.mxu1 }
 0x1cb   :  { %v463_v29 = vadd.f32 %v462_v58, %v5532_v11  ;;  %v492_v30 = vadd.f32 %v491_v59, %v5532_v11 }
 0x1cd   :  { %v562_v41 = vmax.f32 %v463_v29, 0.0  ;;  %v563_v27 = vmax.f32 %v492_v30, 0.0 }
 0x1ce   :  { %v517_v60 = vpop.f32.mrf.mxu2  ;;  %v546_v61 = vpop.f32.mrf.mxu3 }
 0x1cf   :  { %v518_v56 = vadd.f32 %v517_v60, %v5538_v22  ;;  %v547_v57 = vadd.f32 %v546_v61, %v5538_v22  ;;  %v726_v61 = vld [vmem:[#allocation5 + $0x30] sm:$0x1f] }
 0x1d1   :  { %v561_v60 = vmax.f32 %v547_v57, 0.0 }
 0x1d2   :  { %v465_v2 = vpop.f32.mrf.mxu0  ;;  %v494_v3 = vpop.f32.mrf.mxu1 }
 0x1d3   :  { %v466_v18 = vadd.f32 %v465_v2, %v5529_v10  ;;  %v495_v21 = vadd.f32 %v494_v3, %v5529_v10  ;;  %v5560_v2 = vpop.permute.xlu1 %589 }
 0x1d5   :  { %v566_v32 = vmax.f32 %v466_v18, 0.0  ;;  %v567_v34 = vmax.f32 %v495_v21, 0.0  ;;  %v1271_v18 = vld [vmem:[#allocation2 + $0x20] sm:$0x77] }
 0x1d6   :  { %v520_v4 = vpop.f32.mrf.mxu2  ;;  %v549_v8 = vpop.f32.mrf.mxu3  ;;  %v863_v21 = vld.sshfl [vmem:[#allocation1 + $0x10] sm:$0xff pattern:$0x75316420] }
 0x1d7   :  { %v521_v48 = vadd.f32 %v520_v4, %v5532_v11  ;;  %v550_v50 = vadd.f32 %v549_v8, %v5532_v11  ;;  %v560_v4 = vmax.f32 %v518_v56, 0.0  ;;  %v727_v8 = vld [vmem:[#allocation5 + $0x38] sm:$0x1f] }
 0x1d9   :  { %v564_v3 = vmax.f32 %v521_v48, 0.0  ;;  %v565_v9 = vmax.f32 %v550_v50, 0.0 }
 0x1da   :  { %v468_v13 = vpop.f32.mrf.mxu0  ;;  %v497_v14 = vpop.f32.mrf.mxu1 }
 0x1db   :  { %v469_v15 = vadd.f32 %v468_v13, %v5527_v63  ;;  %v498_v16 = vadd.f32 %v497_v14, %v5527_v63  ;;  %v5570_v13 = vpop.permute.xlu2 %591  ;;  %v5582_v14 = vpop.permute.xlu0 %593 }
 0x1dd   :  { %v570_v25 = vmax.f32 %v469_v15, 0.0  ;;  %v571_v26 = vmax.f32 %v498_v16, 0.0  ;;  %v861_v15 = vld.sshfl [vmem:[#allocation1] sm:$0xff pattern:$0x75316420] }
 0x1de   :  { %v523_v33 = vpop.f32.mrf.mxu2  ;;  %v552_v31 = vpop.f32.mrf.mxu3  ;;  %v862_v16 = vld.sshfl [vmem:[#allocation1 + $0x8] sm:$0xff pattern:$0x75316420] }
 0x1df   :  { %615 = vmatpush.msrb.mxu0 %v570_v25  ;;  %641 = vmatpush.msrb.mxu1 %v571_v26  ;;  %v524_v39 = vadd.f32 %v523_v33, %v5529_v10  ;;  %v553_v45 = vadd.f32 %v552_v31, %v5529_v10  ;;  %1408 = vst [vmem:[#allocation1] ss:$2 sm:$0xff] %v1271_v18  ;;  %v864_v25 = vld.sshfl [vmem:[#allocation1 + $0x18] sm:$0xff pattern:$0x75316420] }
 0x1e0   :  { %v1272_v26 = vld [vmem:[#allocation2 + $0x28] sm:$0x77] }
 0x1e1   :  { %616 = vmatpush.msrb.mxu0 %v566_v32  ;;  %642 = vmatpush.msrb.mxu1 %v567_v34  ;;  %v568_v58 = vmax.f32 %v524_v39, 0.0  ;;  %v569_v59 = vmax.f32 %v553_v45, 0.0  ;;  %1410 = vst [vmem:[#allocation1 + $0x10] ss:$2 sm:$0xff] %v1272_v26 }
 0x1e3   :  { %617 = vmatpush.msrb.mxu0 %v562_v41  ;;  %643 = vmatpush.msrb.mxu1 %v563_v27 }
 0x1e5   :  { %618 = vmatpush.msrb.mxu0 %v558_v23  ;;  %644 = vmatpush.msrb.mxu1 %v559_v35 }
 0x1e6   :  { %v526_v40 = vpop.f32.mrf.mxu2  ;;  %v555_v44 = vpop.f32.mrf.mxu3  ;;  %4644 = vmatmul.msk.f32.vlgmr.msrb.gmra.mxu0 %vm433_vm4, %v5544_v28  ;;  %4648 = vmatmul.msk.f32.vlgmr.msrb.gmra.mxu1 %vm433_vm4, %v5544_v28 }
 0x1e7   :  { %v527_v46 = vadd.f32 %v526_v40, %v5527_v63  ;;  %v556_v47 = vadd.f32 %v555_v44, %v5527_v63  ;;  %4660 = vmatpush.msk.msra.mxu0 %vm89_vm0, %v724_v24  ;;  %4665 = vmatpush.msk.msra.mxu1 %vm89_vm0, %v725_v36 }
 0x1e9   :  { %v572_v51 = vmax.f32 %v527_v46, 0.0  ;;  %v573_v52 = vmax.f32 %v556_v47, 0.0  ;;  %4680 = vmatpush.msk.msrb.mxu0 %vm236_vm2, %v861_v15  ;;  %4685 = vmatpush.msk.msrb.mxu1 %vm236_vm2, %v862_v16 }
 0x1eb   :  { %667 = vmatpush.msrb.mxu2 %v572_v51  ;;  %693 = vmatpush.msrb.mxu3 %v573_v52 }
 0x1ed   :  { %668 = vmatpush.msrb.mxu2 %v568_v58  ;;  %694 = vmatpush.msrb.mxu3 %v569_v59 }
 0x1ee   :  { %4645 = vmatmul.msk.f32.gmra.mxu0 %vm433_vm4, %v5560_v2  ;;  %4649 = vmatmul.msk.f32.gmra.mxu1 %vm433_vm4, %v5560_v2 }
 0x1ef   :  { %669 = vmatpush.msrb.mxu2 %v564_v3  ;;  %695 = vmatpush.msrb.mxu3 %v565_v9 }
 0x1f1   :  { %670 = vmatpush.msrb.mxu2 %v560_v4  ;;  %696 = vmatpush.msrb.mxu3 %v561_v60 }
 0x1f2   :  { %4652 = vmatmul.msk.f32.vlgmr.msrb.gmra.mxu2 %vm433_vm4, %v5544_v28  ;;  %4656 = vmatmul.msk.f32.vlgmr.msrb.gmra.mxu3 %vm433_vm4, %v5544_v28 }
 0x1f3   :  { %4670 = vmatpush.msk.msra.mxu2 %vm89_vm0, %v726_v61  ;;  %4675 = vmatpush.msk.msra.mxu3 %vm89_vm0, %v727_v8 }
 0x1f5   :  { %4690 = vmatpush.msk.msrb.mxu2 %vm236_vm2, %v863_v21  ;;  %4695 = vmatpush.msk.msrb.mxu3 %vm236_vm2, %v864_v25 }
 0x1f6   :  { %4646 = vmatmul.msk.f32.gmra.mxu0 %vm433_vm4, %v5570_v13  ;;  %4650 = vmatmul.msk.f32.gmra.mxu1 %vm433_vm4, %v5570_v13 }
 0x1fa   :  { %4653 = vmatmul.msk.f32.gmra.mxu2 %vm433_vm4, %v5560_v2  ;;  %4657 = vmatmul.msk.f32.gmra.mxu3 %vm433_vm4, %v5560_v2 }
 0x1fe   :  { %4647 = vmatmul.msk.f32.gmra.mxu0 %vm433_vm4, %v5582_v14  ;;  %4651 = vmatmul.msk.f32.gmra.mxu1 %vm433_vm4, %v5582_v14 }
 0x202   :  { %4654 = vmatmul.msk.f32.gmra.mxu2 %vm433_vm4, %v5570_v13  ;;  %4658 = vmatmul.msk.f32.gmra.mxu3 %vm433_vm4, %v5570_v13 }
 0x206   :  { %4661 = vmatmul.msk.f32.vlgmr.msra.gmra.mxu0 %vm80_vm1, %v5355_v12  ;;  %4666 = vmatmul.msk.f32.vlgmr.msra.gmra.mxu1 %vm80_vm1, %v5355_v12 }
 0x20a   :  { %4655 = vmatmul.msk.f32.gmra.mxu2 %vm433_vm4, %v5582_v14  ;;  %4659 = vmatmul.msk.f32.gmra.mxu3 %vm433_vm4, %v5582_v14 }
 0x20e   :  { %4662 = vmatmul.msk.f32.gmra.mxu0 %vm80_vm1, %v5369_v17  ;;  %4667 = vmatmul.msk.f32.gmra.mxu1 %vm80_vm1, %v5369_v17 }
 0x212   :  { %4671 = vmatmul.msk.f32.vlgmr.msra.gmra.mxu2 %vm80_vm1, %v5355_v12  ;;  %4676 = vmatmul.msk.f32.vlgmr.msra.gmra.mxu3 %vm80_vm1, %v5355_v12 }
 0x216   :  { %4663 = vmatmul.msk.f32.gmra.mxu0 %vm80_vm1, %v5379_v19  ;;  %4668 = vmatmul.msk.f32.gmra.mxu1 %vm80_vm1, %v5379_v19 }
 0x21a   :  { %4672 = vmatmul.msk.f32.gmra.mxu2 %vm80_vm1, %v5369_v17  ;;  %4677 = vmatmul.msk.f32.gmra.mxu3 %vm80_vm1, %v5369_v17 }
 0x21e   :  { %4664 = vmatmul.msk.f32.gmra.mxu0 %vm80_vm1, %v5394_v20  ;;  %4669 = vmatmul.msk.f32.gmra.mxu1 %vm80_vm1, %v5394_v20 }
 0x222   :  { %4673 = vmatmul.msk.f32.gmra.mxu2 %vm80_vm1, %v5379_v19  ;;  %4678 = vmatmul.msk.f32.gmra.mxu3 %vm80_vm1, %v5379_v19 }
 0x226   :  { %4681 = vmatmul.msk.f32.vlgmr.msrb.gmra.mxu0 %vm227_vm3, %v5339_v0  ;;  %4686 = vmatmul.msk.f32.vlgmr.msrb.gmra.mxu1 %vm227_vm3, %v5339_v0 }
 0x22a   :  { %4674 = vmatmul.msk.f32.gmra.mxu2 %vm80_vm1, %v5394_v20  ;;  %4679 = vmatmul.msk.f32.gmra.mxu3 %vm80_vm1, %v5394_v20 }
 0x22e   :  { %4682 = vmatmul.msk.f32.gmra.mxu0 %vm227_vm3, %v5349_v6  ;;  %4687 = vmatmul.msk.f32.gmra.mxu1 %vm227_vm3, %v5349_v6 }
 0x232   :  { %4691 = vmatmul.msk.f32.vlgmr.msrb.gmra.mxu2 %vm227_vm3, %v5339_v0  ;;  %4696 = vmatmul.msk.f32.vlgmr.msrb.gmra.mxu3 %vm227_vm3, %v5339_v0  ;;  %v5664_v0 = vpop.permute.xlu1 %575 }
 0x236   :  { %4683 = vmatmul.msk.f32.gmra.mxu0 %vm227_vm3, %v5341_v1  ;;  %4688 = vmatmul.msk.f32.gmra.mxu1 %vm227_vm3, %v5341_v1 }
 0x23a   :  { %4692 = vmatmul.msk.f32.gmra.mxu2 %vm227_vm3, %v5349_v6  ;;  %4697 = vmatmul.msk.f32.gmra.mxu3 %vm227_vm3, %v5349_v6 }
 0x23e   :  { %4684 = vmatmul.msk.f32.gmra.mxu0 %vm227_vm3, %v5351_v7  ;;  %4689 = vmatmul.msk.f32.gmra.mxu1 %vm227_vm3, %v5351_v7 }
 0x242   :  { %4693 = vmatmul.msk.f32.gmra.mxu2 %vm227_vm3, %v5341_v1  ;;  %4698 = vmatmul.msk.f32.gmra.mxu3 %vm227_vm3, %v5341_v1 }
 0x24a   :  { %4694 = vmatmul.msk.f32.gmra.mxu2 %vm227_vm3, %v5351_v7  ;;  %4699 = vmatmul.msk.f32.gmra.mxu3 %vm227_vm3, %v5351_v7 }
 0x263   :  { %v620_v6 = vpop.f32.mrf.mxu0  ;;  %v646_v29 = vpop.f32.mrf.mxu1 }
 0x264   :  { %v621_v30 = vadd.f32 %v620_v6, %v5664_v0  ;;  %v647_v33 = vadd.f32 %v646_v29, %v5664_v0 }
 0x266   :  { %v711_v31 = vrot.slane %v647_v33, 4 }
 0x268   :  { %v714_v32 = vsel %vm713_vm5, %v621_v30, %v711_v31 }
 0x269   :  { %718 = vst [vmem:[#allocation8] sm:$0x77] %v714_v32 }
 0x26b   :  { %v623_v1 = vpop.f32.mrf.mxu0  ;;  %v649_v34 = vpop.f32.mrf.mxu1 }
 0x273   :  { %v625_v37 = vpop.f32.mrf.mxu0  ;;  %v651_v38 = vpop.f32.mrf.mxu1 }
 0x275   :  { %v672_v41 = vpop.f32.mrf.mxu2  ;;  %v698_v27 = vpop.f32.mrf.mxu3 }
 0x276   :  { %v699_v7 = vadd.f32 %v698_v27, %v5664_v0  ;;  %v673_v23 = vadd.f32 %v672_v41, %v5664_v0 }
 0x278   :  { %v712_v35 = vrot.slane %v699_v7, 4 }
 0x27a   :  { %v715_v24 = vsel %vm713_vm5, %v673_v23, %v712_v35 }
 0x27b   :  { %719 = vst [vmem:[#allocation8 + $0x8] sm:$0x77] %v715_v24  ;;  %v627_v36 = vpop.f32.mrf.mxu0  ;;  %v653_v39 = vpop.f32.mrf.mxu1 }
 0x27d   :  { %v675_v40 = vpop.f32.mrf.mxu2  ;;  %v701_v44 = vpop.f32.mrf.mxu3 }
 0x283   :  { %v757_v45 = vpop.f32.mrf.mxu0  ;;  %v786_v46 = vpop.f32.mrf.mxu1 }
 0x285   :  { %v677_v47 = vpop.f32.mrf.mxu2  ;;  %v703_v48 = vpop.f32.mrf.mxu3 }
 0x28b   :  { %v760_v50 = vpop.f32.mrf.mxu0  ;;  %v789_v51 = vpop.f32.mrf.mxu1 }
 0x28d   :  { %v679_v52 = vpop.f32.mrf.mxu2  ;;  %v705_v56 = vpop.f32.mrf.mxu3 }
 0x293   :  { %v763_v57 = vpop.f32.mrf.mxu0  ;;  %v792_v58 = vpop.f32.mrf.mxu1 }
 0x295   :  { %v5672_v59 = vpop.f32.mrf.mxu2  ;;  %v5674_v3 = vpop.f32.mrf.mxu3 }
 0x29b   :  { %v766_v9 = vpop.f32.mrf.mxu0  ;;  %v795_v4 = vpop.f32.mrf.mxu1 }
 0x29d   :  { %v818_v60 = vpop.f32.mrf.mxu2  ;;  %v847_v61 = vpop.f32.mrf.mxu3 }
 0x2a3   :  { %v890_v8 = vpop.f32.mrf.mxu0  ;;  %v919_v15 = vpop.f32.mrf.mxu1 }
 0x2a4   :  { %v891_v23 = vadd.f32 %v890_v8, %v757_v45  ;;  %v920_v35 = vadd.f32 %v919_v15, %v786_v46 }
 0x2a5   :  { %v821_v16 = vpop.f32.mrf.mxu2  ;;  %v850_v18 = vpop.f32.mrf.mxu3 }
 0x2a6   :  { %v989_v56 = vadd.f32 %v891_v23, %v5465_v5  ;;  %v990_v45 = vadd.f32 %v920_v35, %v5465_v5 }
 0x2a8   :  { %v1005_v15 = vmax.f32 %v989_v56, 0.0 }
 0x2ab   :  { %v893_v21 = vpop.f32.mrf.mxu0  ;;  %v922_v25 = vpop.f32.mrf.mxu1 }
 0x2ac   :  { %v894_v38 = vadd.f32 %v893_v21, %v760_v50  ;;  %v923_v41 = vadd.f32 %v922_v25, %v789_v51  ;;  %v1006_v21 = vmax.f32 %v990_v45, 0.0 }
 0x2ad   :  { %v824_v26 = vpop.f32.mrf.mxu2  ;;  %v853_v6 = vpop.f32.mrf.mxu3 }
 0x2ae   :  { %v993_v48 = vadd.f32 %v894_v38, %v5459_v62  ;;  %v994_v52 = vadd.f32 %v923_v41, %v5459_v62 }
 0x2b3   :  { %v896_v29 = vpop.f32.mrf.mxu0  ;;  %v925_v30 = vpop.f32.mrf.mxu1 }
 0x2b4   :  { %v897_v32 = vadd.f32 %v896_v29, %v763_v57  ;;  %v926_v1 = vadd.f32 %v925_v30, %v792_v58  ;;  %v1009_v58 = vmax.f32 %v993_v48, 0.0 }
 0x2b5   :  { %v948_v33 = vpop.f32.mrf.mxu2  ;;  %v977_v31 = vpop.f32.mrf.mxu3 }
 0x2b6   :  { %v997_v39 = vadd.f32 %v897_v32, %v5452_v49  ;;  %v998_v40 = vadd.f32 %v926_v1, %v5452_v49  ;;  %v949_v41 = vadd.f32 %v948_v33, %v5672_v59 }
 0x2b8   :  { %v1013_v46 = vmax.f32 %v997_v39, 0.0  ;;  %v1014_v57 = vmax.f32 %v998_v40, 0.0 }
 0x2bb   :  { %v899_v34 = vpop.f32.mrf.mxu0  ;;  %v928_v37 = vpop.f32.mrf.mxu1 }
 0x2bc   :  { %v900_v27 = vadd.f32 %v899_v34, %v766_v9  ;;  %v929_v7 = vadd.f32 %v928_v37, %v795_v4  ;;  %v1010_v9 = vmax.f32 %v994_v52, 0.0 }
 0x2bd   :  { %v951_v24 = vpop.f32.mrf.mxu2  ;;  %v980_v36 = vpop.f32.mrf.mxu3 }
 0x2be   :  { %v1001_v44 = vadd.f32 %v900_v27, %v5447_v43  ;;  %v1002_v47 = vadd.f32 %v929_v7, %v5447_v43  ;;  %v952_v1 = vadd.f32 %v951_v24, %v818_v60  ;;  %v981_v34 = vadd.f32 %v980_v36, %v847_v61 }
 0x2bf   :  { %v978_v27 = vadd.f32 %v977_v31, %v5674_v3 }
 0x2c0   :  { %v1017_v50 = vmax.f32 %v1001_v44, 0.0  ;;  %v1018_v51 = vmax.f32 %v1002_v47, 0.0  ;;  %v995_v60 = vadd.f32 %v952_v1, %v5459_v62  ;;  %v996_v59 = vadd.f32 %v981_v34, %v5459_v62 }
 0x2c2   :  { %1033 = vmatpush.msra.mxu0 %v1017_v50  ;;  %1062 = vmatpush.msra.mxu1 %v1018_v51  ;;  %v1011_v33 = vmax.f32 %v995_v60, 0.0  ;;  %v1012_v31 = vmax.f32 %v996_v59, 0.0 }
 0x2c4   :  { %1034 = vmatpush.msra.mxu0 %v1013_v46  ;;  %1063 = vmatpush.msra.mxu1 %v1014_v57 }
 0x2c5   :  { %v954_v4 = vpop.f32.mrf.mxu2  ;;  %v983_v8 = vpop.f32.mrf.mxu3 }
 0x2c6   :  { %1035 = vmatpush.msra.mxu0 %v1009_v58  ;;  %1064 = vmatpush.msra.mxu1 %v1010_v9  ;;  %v955_v25 = vadd.f32 %v954_v4, %v821_v16  ;;  %v984_v29 = vadd.f32 %v983_v8, %v850_v18  ;;  %v991_v16 = vadd.f32 %v949_v41, %v5465_v5 }
 0x2c7   :  { %v992_v18 = vadd.f32 %v978_v27, %v5465_v5 }
 0x2c8   :  { %1036 = vmatpush.msra.mxu0 %v1005_v15  ;;  %1065 = vmatpush.msra.mxu1 %v1006_v21  ;;  %v999_v7 = vadd.f32 %v955_v25, %v5452_v49  ;;  %v1000_v23 = vadd.f32 %v984_v29, %v5452_v49  ;;  %v1007_v24 = vmax.f32 %v991_v16, 0.0 }
 0x2c9   :  { %4700 = vmatmul.msk.f32.vlgmr.msra.gmra.mxu0 %vm433_vm4, %v5485_v42  ;;  %4704 = vmatmul.msk.f32.vlgmr.msra.gmra.mxu1 %vm433_vm4, %v5485_v42  ;;  %v1008_v36 = vmax.f32 %v992_v18, 0.0 }
 0x2cd   :  { %v957_v30 = vpop.f32.mrf.mxu2  ;;  %v986_v32 = vpop.f32.mrf.mxu3 }
 0x2ce   :  { %v958_v37 = vadd.f32 %v957_v30, %v824_v26  ;;  %v987_v38 = vadd.f32 %v986_v32, %v853_v6  ;;  %v1015_v26 = vmax.f32 %v999_v7, 0.0  ;;  %v1016_v6 = vmax.f32 %v1000_v23, 0.0  ;;  %v1274_v23 = vld [vmem:[#allocation5 + $0x40] sm:$0x1f] }
 0x2d0   :  { %v1003_v35 = vadd.f32 %v958_v37, %v5447_v43  ;;  %v1004_v39 = vadd.f32 %v987_v38, %v5447_v43 }
 0x2d1   :  { %4701 = vmatmul.msk.f32.gmra.mxu0 %vm433_vm4, %v5493_v53  ;;  %4705 = vmatmul.msk.f32.gmra.mxu1 %vm433_vm4, %v5493_v53 }
 0x2d2   :  { %v1019_v61 = vmax.f32 %v1003_v35, 0.0  ;;  %v1020_v3 = vmax.f32 %v1004_v39, 0.0  ;;  %v1275_v35 = vld [vmem:[#allocation5 + $0x48] sm:$0x1f] }
 0x2d4   :  { %1091 = vmatpush.msra.mxu2 %v1019_v61  ;;  %1120 = vmatpush.msra.mxu3 %v1020_v3 }
 0x2d6   :  { %1092 = vmatpush.msra.mxu2 %v1015_v26  ;;  %1121 = vmatpush.msra.mxu3 %v1016_v6 }
 0x2d8   :  { %1093 = vmatpush.msra.mxu2 %v1011_v33  ;;  %1122 = vmatpush.msra.mxu3 %v1012_v31 }
 0x2d9   :  { %4702 = vmatmul.msk.f32.gmra.mxu0 %vm433_vm4, %v5503_v54  ;;  %4706 = vmatmul.msk.f32.gmra.mxu1 %vm433_vm4, %v5503_v54 }
 0x2da   :  { %1094 = vmatpush.msra.mxu2 %v1007_v24  ;;  %1123 = vmatpush.msra.mxu3 %v1008_v36 }
 0x2db   :  { %4708 = vmatmul.msk.f32.vlgmr.msra.gmra.mxu2 %vm433_vm4, %v5485_v42  ;;  %4712 = vmatmul.msk.f32.vlgmr.msra.gmra.mxu3 %vm433_vm4, %v5485_v42 }
 0x2e1   :  { %4703 = vmatmul.msk.f32.gmra.mxu0 %vm433_vm4, %v5513_v55  ;;  %4707 = vmatmul.msk.f32.gmra.mxu1 %vm433_vm4, %v5513_v55 }
 0x2e3   :  { %4709 = vmatmul.msk.f32.gmra.mxu2 %vm433_vm4, %v5493_v53  ;;  %4713 = vmatmul.msk.f32.gmra.mxu3 %vm433_vm4, %v5493_v53 }
 0x2eb   :  { %4710 = vmatmul.msk.f32.gmra.mxu2 %vm433_vm4, %v5503_v54  ;;  %4714 = vmatmul.msk.f32.gmra.mxu3 %vm433_vm4, %v5503_v54 }
 0x2f3   :  { %4711 = vmatmul.msk.f32.gmra.mxu2 %vm433_vm4, %v5513_v55  ;;  %4715 = vmatmul.msk.f32.gmra.mxu3 %vm433_vm4, %v5513_v55 }
 0x346   :  { %v1038_v40 = vpop.f32.mrf.mxu0  ;;  %v1067_v44 = vpop.f32.mrf.mxu1 }
 0x347   :  { %v1039_v29 = vadd.f32 %v1038_v40, %v5538_v22  ;;  %v1068_v30 = vadd.f32 %v1067_v44, %v5538_v22 }
 0x349   :  { %v1137_v38 = vmax.f32 %v1039_v29, 0.0  ;;  %v1138_v41 = vmax.f32 %v1068_v30, 0.0  ;;  %v5832_v29 = vld [vmem:[#allocation7 + $0x18] sm:$0xff] }
 0x34e   :  { %v1041_v47 = vpop.f32.mrf.mxu0  ;;  %v1070_v48 = vpop.f32.mrf.mxu1 }
 0x34f   :  { %v1042_v8 = vadd.f32 %v1041_v47, %v5532_v11  ;;  %v1071_v15 = vadd.f32 %v1070_v48, %v5532_v11 }
 0x351   :  { %v1141_v34 = vmax.f32 %v1042_v8, 0.0  ;;  %v1142_v37 = vmax.f32 %v1071_v15, 0.0  ;;  %v1822_v8 = vld [vmem:[#allocation2 + $0x38] sm:$0x77]  ;;  %v5802_v15 = vld [vmem:[#allocation7] sm:$0xff] }
 0x356   :  { %v1044_v52 = vpop.f32.mrf.mxu0  ;;  %v1073_v50 = vpop.f32.mrf.mxu1 }
 0x357   :  { %v1045_v45 = vadd.f32 %v1044_v52, %v5529_v10  ;;  %v1074_v46 = vadd.f32 %v1073_v50, %v5529_v10 }
 0x359   :  { %v1145_v32 = vmax.f32 %v1045_v45, 0.0  ;;  %v1146_v1 = vmax.f32 %v1074_v46, 0.0  ;;  %v1277_v45 = vld [vmem:[#allocation5 + $0x58] sm:$0x1f] }
 0x35a   :  { %v1411_v46 = vld.sshfl [vmem:[#allocation1] sm:$0xff pattern:$0x75316420] }
 0x35e   :  { %v1047_v51 = vpop.f32.mrf.mxu0  ;;  %v1076_v56 = vpop.f32.mrf.mxu1 }
 0x35f   :  { %v1048_v57 = vadd.f32 %v1047_v51, %v5527_v63  ;;  %v1077_v58 = vadd.f32 %v1076_v56, %v5527_v63  ;;  %v1096_v9 = vpop.f32.mrf.mxu2  ;;  %v1125_v4 = vpop.f32.mrf.mxu3  ;;  %v1276_v56 = vld [vmem:[#allocation5 + $0x50] sm:$0x1f] }
 0x360   :  { %v1097_v36 = vadd.f32 %v1096_v9, %v5538_v22  ;;  %v1126_v40 = vadd.f32 %v1125_v4, %v5538_v22  ;;  %v1413_v9 = vld.sshfl [vmem:[#allocation1 + $0x10] sm:$0xff pattern:$0x75316420]  ;;  %v1414_v4 = vld.sshfl [vmem:[#allocation1 + $0x18] sm:$0xff pattern:$0x75316420] }
 0x361   :  { %v1149_v21 = vmax.f32 %v1048_v57, 0.0  ;;  %v1150_v25 = vmax.f32 %v1077_v58, 0.0  ;;  %v1412_v57 = vld.sshfl [vmem:[#allocation1 + $0x8] sm:$0xff pattern:$0x75316420] }
 0x362   :  { %v1139_v50 = vmax.f32 %v1097_v36, 0.0  ;;  %v1140_v51 = vmax.f32 %v1126_v40, 0.0  ;;  %v1821_v58 = vld [vmem:[#allocation2 + $0x30] sm:$0x77]  ;;  %1960 = vst [vmem:[#allocation1 + $0x10] ss:$2 sm:$0xff] %v1822_v8 }
 0x363   :  { %1165 = vmatpush.msrb.mxu0 %v1149_v21  ;;  %1191 = vmatpush.msrb.mxu1 %v1150_v25  ;;  %1958 = vst [vmem:[#allocation1] ss:$2 sm:$0xff] %v1821_v58  ;;  %v5812_v21 = vld [vmem:[#allocation7 + $0x8] sm:$0xff]  ;;  %v5822_v25 = vld [vmem:[#allocation7 + $0x10] sm:$0xff] }
 0x365   :  { %1166 = vmatpush.msrb.mxu0 %v1145_v32  ;;  %1192 = vmatpush.msrb.mxu1 %v1146_v1 }
 0x367   :  { %v1099_v27 = vpop.f32.mrf.mxu2  ;;  %v1128_v7 = vpop.f32.mrf.mxu3  ;;  %1167 = vmatpush.msrb.mxu0 %v1141_v34  ;;  %1193 = vmatpush.msrb.mxu1 %v1142_v37 }
 0x368   :  { %v1100_v6 = vadd.f32 %v1099_v27, %v5532_v11  ;;  %v1129_v33 = vadd.f32 %v1128_v7, %v5532_v11 }
 0x369   :  { %1168 = vmatpush.msrb.mxu0 %v1137_v38  ;;  %1194 = vmatpush.msrb.mxu1 %v1138_v41 }
 0x36a   :  { %4716 = vmatmul.msk.f32.vlgmr.msrb.gmra.mxu0 %vm433_vm4, %v5544_v28  ;;  %4720 = vmatmul.msk.f32.vlgmr.msrb.gmra.mxu1 %vm433_vm4, %v5544_v28  ;;  %v1143_v48 = vmax.f32 %v1100_v6, 0.0  ;;  %v1144_v52 = vmax.f32 %v1129_v33, 0.0 }
 0x36b   :  { %4732 = vmatpush.msk.msra.mxu0 %vm89_vm0, %v1274_v23  ;;  %4737 = vmatpush.msk.msra.mxu1 %vm89_vm0, %v1275_v35 }
 0x36d   :  { %4752 = vmatpush.msk.msrb.mxu0 %vm236_vm2, %v1411_v46  ;;  %4757 = vmatpush.msk.msrb.mxu1 %vm236_vm2, %v1412_v57 }
 0x36f   :  { %v1102_v39 = vpop.f32.mrf.mxu2  ;;  %v1131_v60 = vpop.f32.mrf.mxu3 }
 0x370   :  { %v1103_v3 = vadd.f32 %v1102_v39, %v5529_v10  ;;  %v1132_v16 = vadd.f32 %v1131_v60, %v5529_v10 }
 0x372   :  { %4717 = vmatmul.msk.f32.gmra.mxu0 %vm433_vm4, %v5560_v2  ;;  %4721 = vmatmul.msk.f32.gmra.mxu1 %vm433_vm4, %v5560_v2  ;;  %v1147_v44 = vmax.f32 %v1103_v3, 0.0  ;;  %v1148_v47 = vmax.f32 %v1132_v16, 0.0 }
 0x377   :  { %v1105_v59 = vpop.f32.mrf.mxu2  ;;  %v1134_v61 = vpop.f32.mrf.mxu3 }
 0x378   :  { %v1106_v18 = vadd.f32 %v1105_v59, %v5527_v63  ;;  %v1135_v26 = vadd.f32 %v1134_v61, %v5527_v63 }
 0x37a   :  { %v1151_v31 = vmax.f32 %v1106_v18, 0.0  ;;  %v1152_v24 = vmax.f32 %v1135_v26, 0.0  ;;  %4718 = vmatmul.msk.f32.gmra.mxu0 %vm433_vm4, %v5570_v13  ;;  %4722 = vmatmul.msk.f32.gmra.mxu1 %vm433_vm4, %v5570_v13 }
 0x37c   :  { %1217 = vmatpush.msrb.mxu2 %v1151_v31  ;;  %1243 = vmatpush.msrb.mxu3 %v1152_v24 }
 0x37e   :  { %1218 = vmatpush.msrb.mxu2 %v1147_v44  ;;  %1244 = vmatpush.msrb.mxu3 %v1148_v47 }
 0x380   :  { %1219 = vmatpush.msrb.mxu2 %v1143_v48  ;;  %1245 = vmatpush.msrb.mxu3 %v1144_v52 }
 0x382   :  { %1220 = vmatpush.msrb.mxu2 %v1139_v50  ;;  %1246 = vmatpush.msrb.mxu3 %v1140_v51 }
 0x383   :  { %4719 = vmatmul.msk.f32.gmra.mxu0 %vm433_vm4, %v5582_v14  ;;  %4723 = vmatmul.msk.f32.gmra.mxu1 %vm433_vm4, %v5582_v14 }
 0x384   :  { %4724 = vmatmul.msk.f32.vlgmr.msrb.gmra.mxu2 %vm433_vm4, %v5544_v28  ;;  %4728 = vmatmul.msk.f32.vlgmr.msrb.gmra.mxu3 %vm433_vm4, %v5544_v28 }
 0x385   :  { %4742 = vmatpush.msk.msra.mxu2 %vm89_vm0, %v1276_v56  ;;  %4747 = vmatpush.msk.msra.mxu3 %vm89_vm0, %v1277_v45 }
 0x387   :  { %4762 = vmatpush.msk.msrb.mxu2 %vm236_vm2, %v1413_v9  ;;  %4767 = vmatpush.msk.msrb.mxu3 %vm236_vm2, %v1414_v4 }
 0x38b   :  { %4733 = vmatmul.msk.f32.vlgmr.msra.gmra.mxu0 %vm80_vm1, %v5355_v12  ;;  %4738 = vmatmul.msk.f32.vlgmr.msra.gmra.mxu1 %vm80_vm1, %v5355_v12 }
 0x38c   :  { %4725 = vmatmul.msk.f32.gmra.mxu2 %vm433_vm4, %v5560_v2  ;;  %4729 = vmatmul.msk.f32.gmra.mxu3 %vm433_vm4, %v5560_v2 }
 0x393   :  { %4734 = vmatmul.msk.f32.gmra.mxu0 %vm80_vm1, %v5369_v17  ;;  %4739 = vmatmul.msk.f32.gmra.mxu1 %vm80_vm1, %v5369_v17 }
 0x394   :  { %4726 = vmatmul.msk.f32.gmra.mxu2 %vm433_vm4, %v5570_v13  ;;  %4730 = vmatmul.msk.f32.gmra.mxu3 %vm433_vm4, %v5570_v13 }
 0x39b   :  { %4735 = vmatmul.msk.f32.gmra.mxu0 %vm80_vm1, %v5379_v19  ;;  %4740 = vmatmul.msk.f32.gmra.mxu1 %vm80_vm1, %v5379_v19 }
 0x39c   :  { %4727 = vmatmul.msk.f32.gmra.mxu2 %vm433_vm4, %v5582_v14  ;;  %4731 = vmatmul.msk.f32.gmra.mxu3 %vm433_vm4, %v5582_v14 }
 0x3a3   :  { %4736 = vmatmul.msk.f32.gmra.mxu0 %vm80_vm1, %v5394_v20  ;;  %4741 = vmatmul.msk.f32.gmra.mxu1 %vm80_vm1, %v5394_v20 }
 0x3a4   :  { %4743 = vmatmul.msk.f32.vlgmr.msra.gmra.mxu2 %vm80_vm1, %v5355_v12  ;;  %4748 = vmatmul.msk.f32.vlgmr.msra.gmra.mxu3 %vm80_vm1, %v5355_v12 }
 0x3ab   :  { %4753 = vmatmul.msk.f32.vlgmr.msrb.gmra.mxu0 %vm227_vm3, %v5802_v15  ;;  %4758 = vmatmul.msk.f32.vlgmr.msrb.gmra.mxu1 %vm227_vm3, %v5802_v15 }
 0x3ac   :  { %4744 = vmatmul.msk.f32.gmra.mxu2 %vm80_vm1, %v5369_v17  ;;  %4749 = vmatmul.msk.f32.gmra.mxu3 %vm80_vm1, %v5369_v17 }
 0x3b3   :  { %4754 = vmatmul.msk.f32.gmra.mxu0 %vm227_vm3, %v5812_v21  ;;  %4759 = vmatmul.msk.f32.gmra.mxu1 %vm227_vm3, %v5812_v21 }
 0x3b4   :  { %4745 = vmatmul.msk.f32.gmra.mxu2 %vm80_vm1, %v5379_v19  ;;  %4750 = vmatmul.msk.f32.gmra.mxu3 %vm80_vm1, %v5379_v19 }
 0x3bb   :  { %4755 = vmatmul.msk.f32.gmra.mxu0 %vm227_vm3, %v5822_v25  ;;  %4760 = vmatmul.msk.f32.gmra.mxu1 %vm227_vm3, %v5822_v25 }
 0x3bc   :  { %4746 = vmatmul.msk.f32.gmra.mxu2 %vm80_vm1, %v5394_v20  ;;  %4751 = vmatmul.msk.f32.gmra.mxu3 %vm80_vm1, %v5394_v20 }
 0x3c3   :  { %4756 = vmatmul.msk.f32.gmra.mxu0 %vm227_vm3, %v5832_v29  ;;  %4761 = vmatmul.msk.f32.gmra.mxu1 %vm227_vm3, %v5832_v29 }
 0x3c4   :  { %4763 = vmatmul.msk.f32.vlgmr.msrb.gmra.mxu2 %vm227_vm3, %v5802_v15  ;;  %4768 = vmatmul.msk.f32.vlgmr.msrb.gmra.mxu3 %vm227_vm3, %v5802_v15 }
 0x3cc   :  { %4764 = vmatmul.msk.f32.gmra.mxu2 %vm227_vm3, %v5812_v21  ;;  %4769 = vmatmul.msk.f32.gmra.mxu3 %vm227_vm3, %v5812_v21 }
 0x3d4   :  { %4765 = vmatmul.msk.f32.gmra.mxu2 %vm227_vm3, %v5822_v25  ;;  %4770 = vmatmul.msk.f32.gmra.mxu3 %vm227_vm3, %v5822_v25 }
 0x3dc   :  { %4766 = vmatmul.msk.f32.gmra.mxu2 %vm227_vm3, %v5832_v29  ;;  %4771 = vmatmul.msk.f32.gmra.mxu3 %vm227_vm3, %v5832_v29 }
 0x3e7   :  { %v1170_v30 = vpop.f32.mrf.mxu0  ;;  %v1196_v32 = vpop.f32.mrf.mxu1 }
 0x3e8   :  { %v1197_v1 = vadd.f32 %v1196_v32, %v5664_v0  ;;  %v1171_v34 = vadd.f32 %v1170_v30, %v5664_v0 }
 0x3ea   :  { %v1261_v37 = vrot.slane %v1197_v1, 4 }
 0x3ec   :  { %v1263_v38 = vsel %vm713_vm5, %v1171_v34, %v1261_v37 }
 0x3ed   :  { %1268 = vst [vmem:[#allocation8 + $0x10] sm:$0x77] %v1263_v38 }
 0x3ef   :  { %v1173_v41 = vpop.f32.mrf.mxu0  ;;  %v1199_v27 = vpop.f32.mrf.mxu1 }
 0x3f7   :  { %v1175_v7 = vpop.f32.mrf.mxu0  ;;  %v1201_v23 = vpop.f32.mrf.mxu1 }
 0x400   :  { %v1177_v35 = vpop.f32.mrf.mxu0  ;;  %v1203_v39 = vpop.f32.mrf.mxu1 }
 0x407   :  { %v1222_v60 = vpop.f32.mrf.mxu2  ;;  %v1248_v59 = vpop.f32.mrf.mxu3 }
 0x408   :  { %v1249_v61 = vadd.f32 %v1248_v59, %v5664_v0  ;;  %v1307_v3 = vpop.f32.mrf.mxu0  ;;  %v1336_v16 = vpop.f32.mrf.mxu1  ;;  %v1223_v18 = vadd.f32 %v1222_v60, %v5664_v0 }
 0x40a   :  { %v1262_v26 = vrot.slane %v1249_v61, 4 }
 0x40c   :  { %v1264_v6 = vsel %vm713_vm5, %v1223_v18, %v1262_v26 }
 0x40d   :  { %1269 = vst [vmem:[#allocation8 + $0x18] sm:$0x77] %v1264_v6 }
 0x40f   :  { %v1225_v33 = vpop.f32.mrf.mxu2  ;;  %v1251_v31 = vpop.f32.mrf.mxu3 }
 0x410   :  { %v1310_v24 = vpop.f32.mrf.mxu0  ;;  %v1339_v36 = vpop.f32.mrf.mxu1 }
 0x417   :  { %v1227_v40 = vpop.f32.mrf.mxu2  ;;  %v1253_v44 = vpop.f32.mrf.mxu3 }
 0x418   :  { %v1313_v47 = vpop.f32.mrf.mxu0  ;;  %v1342_v48 = vpop.f32.mrf.mxu1 }
 0x41f   :  { %v1229_v52 = vpop.f32.mrf.mxu2  ;;  %v1255_v50 = vpop.f32.mrf.mxu3 }
 0x420   :  { %v1316_v51 = vpop.f32.mrf.mxu0  ;;  %v1345_v56 = vpop.f32.mrf.mxu1 }
 0x427   :  { %v5860_v45 = vpop.f32.mrf.mxu2  ;;  %v5862_v46 = vpop.f32.mrf.mxu3 }
 0x428   :  { %v1440_v57 = vpop.f32.mrf.mxu0  ;;  %v1469_v58 = vpop.f32.mrf.mxu1 }
 0x429   :  { %v1441_v18 = vadd.f32 %v1440_v57, %v1307_v3  ;;  %v1470_v26 = vadd.f32 %v1469_v58, %v1336_v16 }
 0x42f   :  { %v1368_v9 = vpop.f32.mrf.mxu2  ;;  %v1397_v4 = vpop.f32.mrf.mxu3 }
 0x430   :  { %v1443_v8 = vpop.f32.mrf.mxu0  ;;  %v1472_v30 = vpop.f32.mrf.mxu1 }
 0x431   :  { %v1444_v39 = vadd.f32 %v1443_v8, %v1310_v24  ;;  %v1473_v60 = vadd.f32 %v1472_v30, %v1339_v36  ;;  %v1539_v24 = vadd.f32 %v1441_v18, %v5465_v5  ;;  %v1540_v36 = vadd.f32 %v1470_v26, %v5465_v5 }
 0x433   :  { %v1543_v44 = vadd.f32 %v1444_v39, %v5459_v62  ;;  %v1555_v58 = vmax.f32 %v1539_v24, 0.0  ;;  %v1556_v8 = vmax.f32 %v1540_v36, 0.0 }
 0x437   :  { %v1371_v32 = vpop.f32.mrf.mxu2  ;;  %v1400_v1 = vpop.f32.mrf.mxu3 }
 0x438   :  { %v1446_v34 = vpop.f32.mrf.mxu0  ;;  %v1475_v37 = vpop.f32.mrf.mxu1 }
 0x439   :  { %v1447_v38 = vadd.f32 %v1446_v34, %v1313_v47  ;;  %v1476_v41 = vadd.f32 %v1475_v37, %v1342_v48  ;;  %v1544_v47 = vadd.f32 %v1473_v60, %v5459_v62 }
 0x43b   :  { %v1547_v6 = vadd.f32 %v1447_v38, %v5452_v49  ;;  %v1548_v33 = vadd.f32 %v1476_v41, %v5452_v49  ;;  %v1560_v57 = vmax.f32 %v1544_v47, 0.0 }
 0x43d   :  { %v1563_v50 = vmax.f32 %v1547_v6, 0.0 }
 0x43f   :  { %v1374_v27 = vpop.f32.mrf.mxu2  ;;  %v1403_v7 = vpop.f32.mrf.mxu3 }
 0x440   :  { %v1449_v23 = vpop.f32.mrf.mxu0  ;;  %v1478_v35 = vpop.f32.mrf.mxu1 }
 0x441   :  { %v1450_v59 = vadd.f32 %v1449_v23, %v1316_v51  ;;  %v1479_v61 = vadd.f32 %v1478_v35, %v1345_v56  ;;  %v1564_v51 = vmax.f32 %v1548_v33, 0.0  ;;  %v1559_v56 = vmax.f32 %v1543_v44, 0.0 }
 0x443   :  { %v1551_v31 = vadd.f32 %v1450_v59, %v5447_v43  ;;  %v1552_v40 = vadd.f32 %v1479_v61, %v5447_v43 }
 0x445   :  { %v1567_v48 = vmax.f32 %v1551_v31, 0.0  ;;  %v1568_v52 = vmax.f32 %v1552_v40, 0.0 }
 0x447   :  { %v1498_v3 = vpop.f32.mrf.mxu2  ;;  %v1527_v16 = vpop.f32.mrf.mxu3  ;;  %1583 = vmatpush.msra.mxu0 %v1567_v48  ;;  %1612 = vmatpush.msra.mxu1 %v1568_v52 }
 0x448   :  { %v1499_v26 = vadd.f32 %v1498_v3, %v5860_v45  ;;  %v1528_v6 = vadd.f32 %v1527_v16, %v5862_v46 }
 0x449   :  { %1584 = vmatpush.msra.mxu0 %v1563_v50  ;;  %1613 = vmatpush.msra.mxu1 %v1564_v51 }
 0x44a   :  { %v1542_v45 = vadd.f32 %v1528_v6, %v5465_v5 }
 0x44b   :  { %1585 = vmatpush.msra.mxu0 %v1559_v56  ;;  %1614 = vmatpush.msra.mxu1 %v1560_v57 }
 0x44c   :  { %v1558_v24 = vmax.f32 %v1542_v45, 0.0 }
 0x44d   :  { %1586 = vmatpush.msra.mxu0 %v1555_v58  ;;  %1615 = vmatpush.msra.mxu1 %v1556_v8 }
 0x44e   :  { %4772 = vmatmul.msk.f32.vlgmr.msra.gmra.mxu0 %vm433_vm4, %v5485_v42  ;;  %4776 = vmatmul.msk.f32.vlgmr.msra.gmra.mxu1 %vm433_vm4, %v5485_v42 }
 0x44f   :  { %v1501_v30 = vpop.f32.mrf.mxu2  ;;  %v1530_v34 = vpop.f32.mrf.mxu3 }
 0x450   :  { %v1502_v60 = vadd.f32 %v1501_v30, %v1368_v9  ;;  %v1531_v59 = vadd.f32 %v1530_v34, %v1397_v4 }
 0x452   :  { %v1545_v40 = vadd.f32 %v1502_v60, %v5459_v62  ;;  %v1546_v44 = vadd.f32 %v1531_v59, %v5459_v62 }
 0x454   :  { %v1561_v47 = vmax.f32 %v1545_v40, 0.0  ;;  %v1562_v48 = vmax.f32 %v1546_v44, 0.0 }
 0x456   :  { %4773 = vmatmul.msk.f32.gmra.mxu0 %vm433_vm4, %v5493_v53  ;;  %4777 = vmatmul.msk.f32.gmra.mxu1 %vm433_vm4, %v5493_v53 }
 0x457   :  { %v1504_v37 = vpop.f32.mrf.mxu2  ;;  %v1533_v38 = vpop.f32.mrf.mxu3 }
 0x458   :  { %v1505_v41 = vadd.f32 %v1504_v37, %v1371_v32  ;;  %v1534_v23 = vadd.f32 %v1533_v38, %v1400_v1 }
 0x45a   :  { %v1549_v33 = vadd.f32 %v1505_v41, %v5452_v49  ;;  %v1550_v32 = vadd.f32 %v1534_v23, %v5452_v49 }
 0x45c   :  { %v1565_v46 = vmax.f32 %v1549_v33, 0.0 }
 0x45e   :  { %4774 = vmatmul.msk.f32.gmra.mxu0 %vm433_vm4, %v5503_v54  ;;  %4778 = vmatmul.msk.f32.gmra.mxu1 %vm433_vm4, %v5503_v54 }
 0x45f   :  { %v1507_v35 = vpop.f32.mrf.mxu2  ;;  %v1536_v39 = vpop.f32.mrf.mxu3 }
 0x460   :  { %v1508_v61 = vadd.f32 %v1507_v35, %v1374_v27  ;;  %v1537_v18 = vadd.f32 %v1536_v39, %v1403_v7  ;;  %v1541_v27 = vadd.f32 %v1499_v26, %v5465_v5  ;;  %v1566_v7 = vmax.f32 %v1550_v32, 0.0  ;;  %v1824_v32 = vld [vmem:[#allocation5 + $0x60] sm:$0x1f] }
 0x462   :  { %v1553_v1 = vadd.f32 %v1508_v61, %v5447_v43  ;;  %v1554_v31 = vadd.f32 %v1537_v18, %v5447_v43  ;;  %v1557_v52 = vmax.f32 %v1541_v27, 0.0 }
 0x464   :  { %v1569_v9 = vmax.f32 %v1553_v1, 0.0  ;;  %v1570_v4 = vmax.f32 %v1554_v31, 0.0  ;;  %v1825_v1 = vld [vmem:[#allocation5 + $0x68] sm:$0x1f] }
 0x466   :  { %1641 = vmatpush.msra.mxu2 %v1569_v9  ;;  %1670 = vmatpush.msra.mxu3 %v1570_v4 }
 0x467   :  { %4775 = vmatmul.msk.f32.gmra.mxu0 %vm433_vm4, %v5513_v55  ;;  %4779 = vmatmul.msk.f32.gmra.mxu1 %vm433_vm4, %v5513_v55 }
 0x468   :  { %1642 = vmatpush.msra.mxu2 %v1565_v46  ;;  %1671 = vmatpush.msra.mxu3 %v1566_v7 }
 0x46a   :  { %1643 = vmatpush.msra.mxu2 %v1561_v47  ;;  %1672 = vmatpush.msra.mxu3 %v1562_v48 }
 0x46c   :  { %1644 = vmatpush.msra.mxu2 %v1557_v52  ;;  %1673 = vmatpush.msra.mxu3 %v1558_v24 }
 0x46d   :  { %4780 = vmatmul.msk.f32.vlgmr.msra.gmra.mxu2 %vm433_vm4, %v5485_v42  ;;  %4784 = vmatmul.msk.f32.vlgmr.msra.gmra.mxu3 %vm433_vm4, %v5485_v42 }
 0x475   :  { %4781 = vmatmul.msk.f32.gmra.mxu2 %vm433_vm4, %v5493_v53  ;;  %4785 = vmatmul.msk.f32.gmra.mxu3 %vm433_vm4, %v5493_v53 }
 0x47d   :  { %4782 = vmatmul.msk.f32.gmra.mxu2 %vm433_vm4, %v5503_v54  ;;  %4786 = vmatmul.msk.f32.gmra.mxu3 %vm433_vm4, %v5503_v54 }
 0x485   :  { %4783 = vmatmul.msk.f32.gmra.mxu2 %vm433_vm4, %v5513_v55  ;;  %4787 = vmatmul.msk.f32.gmra.mxu3 %vm433_vm4, %v5513_v55 }
 0x4cb   :  { %v1588_v36 = vpop.f32.mrf.mxu0  ;;  %v1617_v3 = vpop.f32.mrf.mxu1 }
 0x4cc   :  { %v1589_v39 = vadd.f32 %v1588_v36, %v5538_v22  ;;  %v1618_v60 = vadd.f32 %v1617_v3, %v5538_v22 }
 0x4ce   :  { %v1687_v6 = vmax.f32 %v1589_v39, 0.0  ;;  %v1688_v33 = vmax.f32 %v1618_v60, 0.0  ;;  %v1963_v39 = vld.sshfl [vmem:[#allocation1 + $0x10] sm:$0xff pattern:$0x75316420] }
 0x4cf   :  { %v1964_v60 = vld.sshfl [vmem:[#allocation1 + $0x18] sm:$0xff pattern:$0x75316420] }
 0x4d3   :  { %v1591_v16 = vpop.f32.mrf.mxu0  ;;  %v1620_v50 = vpop.f32.mrf.mxu1 }
 0x4d4   :  { %v1592_v38 = vadd.f32 %v1591_v16, %v5532_v11  ;;  %v1621_v41 = vadd.f32 %v1620_v50, %v5532_v11 }
 0x4d6   :  { %v1691_v18 = vmax.f32 %v1592_v38, 0.0  ;;  %v1692_v26 = vmax.f32 %v1621_v41, 0.0 }
 0x4db   :  { %v1594_v51 = vpop.f32.mrf.mxu0  ;;  %v1623_v56 = vpop.f32.mrf.mxu1 }
 0x4dc   :  { %v1595_v8 = vadd.f32 %v1594_v51, %v5529_v10  ;;  %v1624_v30 = vadd.f32 %v1623_v56, %v5529_v10  ;;  %v2371_v56 = vld [vmem:[#allocation2 + $0x40] sm:$0x77] }
 0x4de   :  { %v1695_v59 = vmax.f32 %v1595_v8, 0.0  ;;  %v1696_v61 = vmax.f32 %v1624_v30, 0.0  ;;  %v1961_v8 = vld.sshfl [vmem:[#allocation1] sm:$0xff pattern:$0x75316420] }
 0x4df   :  { %v1962_v30 = vld.sshfl [vmem:[#allocation1 + $0x8] sm:$0xff pattern:$0x75316420] }
 0x4e0   :  { %2508 = vst [vmem:[#allocation1] ss:$2 sm:$0xff] %v2371_v56 }
 0x4e4   :  { %v1597_v57 = vpop.f32.mrf.mxu0  ;;  %v1626_v58 = vpop.f32.mrf.mxu1 }
 0x4e5   :  { %v1598_v34 = vadd.f32 %v1597_v57, %v5527_v63  ;;  %v1627_v37 = vadd.f32 %v1626_v58, %v5527_v63 }
 0x4e7   :  { %v1699_v23 = vmax.f32 %v1598_v34, 0.0  ;;  %v1700_v35 = vmax.f32 %v1627_v37, 0.0 }
 0x4e9   :  { %1715 = vmatpush.msrb.mxu0 %v1699_v23  ;;  %1741 = vmatpush.msrb.mxu1 %v1700_v35  ;;  %v1826_v23 = vld [vmem:[#allocation5 + $0x70] sm:$0x1f]  ;;  %v1827_v35 = vld [vmem:[#allocation5 + $0x78] sm:$0x1f] }
 0x4eb   :  { %1716 = vmatpush.msrb.mxu0 %v1695_v59  ;;  %1742 = vmatpush.msrb.mxu1 %v1696_v61  ;;  %v2372_v59 = vld [vmem:[#allocation2 + $0x48] sm:$0x77] }
 0x4ec   :  { %2510 = vst [vmem:[#allocation1 + $0x10] ss:$2 sm:$0xff] %v2372_v59 }
 0x4ed   :  { %1717 = vmatpush.msrb.mxu0 %v1691_v18  ;;  %1743 = vmatpush.msrb.mxu1 %v1692_v26 }
 0x4ef   :  { %1718 = vmatpush.msrb.mxu0 %v1687_v6  ;;  %1744 = vmatpush.msrb.mxu1 %v1688_v33 }
 0x4f0   :  { %v1646_v31 = vpop.f32.mrf.mxu2  ;;  %v1675_v40 = vpop.f32.mrf.mxu3  ;;  %4788 = vmatmul.msk.f32.vlgmr.msrb.gmra.mxu0 %vm433_vm4, %v5544_v28  ;;  %4792 = vmatmul.msk.f32.vlgmr.msrb.gmra.mxu1 %vm433_vm4, %v5544_v28 }
 0x4f1   :  { %4804 = vmatpush.msk.msra.mxu0 %vm89_vm0, %v1824_v32  ;;  %4809 = vmatpush.msk.msra.mxu1 %vm89_vm0, %v1825_v1  ;;  %v1647_v57 = vadd.f32 %v1646_v31, %v5538_v22  ;;  %v1676_v58 = vadd.f32 %v1675_v40, %v5538_v22 }
 0x4f3   :  { %4824 = vmatpush.msk.msrb.mxu0 %vm236_vm2, %v1961_v8  ;;  %4829 = vmatpush.msk.msrb.mxu1 %vm236_vm2, %v1962_v30  ;;  %v1689_v38 = vmax.f32 %v1647_v57, 0.0  ;;  %v1690_v41 = vmax.f32 %v1676_v58, 0.0 }
 0x4f8   :  { %v1649_v44 = vpop.f32.mrf.mxu2  ;;  %v1678_v9 = vpop.f32.mrf.mxu3  ;;  %4789 = vmatmul.msk.f32.gmra.mxu0 %vm433_vm4, %v5560_v2  ;;  %4793 = vmatmul.msk.f32.gmra.mxu1 %vm433_vm4, %v5560_v2 }
 0x4f9   :  { %v1650_v24 = vadd.f32 %v1649_v44, %v5532_v11  ;;  %v1679_v36 = vadd.f32 %v1678_v9, %v5532_v11 }
 0x4fb   :  { %v1693_v34 = vmax.f32 %v1650_v24, 0.0  ;;  %v1694_v37 = vmax.f32 %v1679_v36, 0.0 }
 0x500   :  { %v1652_v4 = vpop.f32.mrf.mxu2  ;;  %v1681_v27 = vpop.f32.mrf.mxu3  ;;  %4790 = vmatmul.msk.f32.gmra.mxu0 %vm433_vm4, %v5570_v13  ;;  %4794 = vmatmul.msk.f32.gmra.mxu1 %vm433_vm4, %v5570_v13 }
 0x501   :  { %v1653_v45 = vadd.f32 %v1652_v4, %v5529_v10  ;;  %v1682_v46 = vadd.f32 %v1681_v27, %v5529_v10 }
 0x503   :  { %v1697_v50 = vmax.f32 %v1653_v45, 0.0  ;;  %v1698_v51 = vmax.f32 %v1682_v46, 0.0 }
 0x508   :  { %v1655_v7 = vpop.f32.mrf.mxu2  ;;  %v1684_v47 = vpop.f32.mrf.mxu3  ;;  %4791 = vmatmul.msk.f32.gmra.mxu0 %vm433_vm4, %v5582_v14  ;;  %4795 = vmatmul.msk.f32.gmra.mxu1 %vm433_vm4, %v5582_v14 }
 0x509   :  { %v1656_v48 = vadd.f32 %v1655_v7, %v5527_v63  ;;  %v1685_v52 = vadd.f32 %v1684_v47, %v5527_v63 }
 0x50b   :  { %v1701_v3 = vmax.f32 %v1656_v48, 0.0  ;;  %v1702_v16 = vmax.f32 %v1685_v52, 0.0 }
 0x50d   :  { %1767 = vmatpush.msrb.mxu2 %v1701_v3  ;;  %1793 = vmatpush.msrb.mxu3 %v1702_v16 }
 0x50f   :  { %1768 = vmatpush.msrb.mxu2 %v1697_v50  ;;  %1794 = vmatpush.msrb.mxu3 %v1698_v51 }
 0x510   :  { %4805 = vmatmul.msk.f32.vlgmr.msra.gmra.mxu0 %vm80_vm1, %v5355_v12  ;;  %4810 = vmatmul.msk.f32.vlgmr.msra.gmra.mxu1 %vm80_vm1, %v5355_v12 }
 0x511   :  { %1769 = vmatpush.msrb.mxu2 %v1693_v34  ;;  %1795 = vmatpush.msrb.mxu3 %v1694_v37 }
 0x513   :  { %1770 = vmatpush.msrb.mxu2 %v1689_v38  ;;  %1796 = vmatpush.msrb.mxu3 %v1690_v41 }
 0x514   :  { %4796 = vmatmul.msk.f32.vlgmr.msrb.gmra.mxu2 %vm433_vm4, %v5544_v28  ;;  %4800 = vmatmul.msk.f32.vlgmr.msrb.gmra.mxu3 %vm433_vm4, %v5544_v28 }
 0x515   :  { %4814 = vmatpush.msk.msra.mxu2 %vm89_vm0, %v1826_v23  ;;  %4819 = vmatpush.msk.msra.mxu3 %vm89_vm0, %v1827_v35 }
 0x517   :  { %4834 = vmatpush.msk.msrb.mxu2 %vm236_vm2, %v1963_v39  ;;  %4839 = vmatpush.msk.msrb.mxu3 %vm236_vm2, %v1964_v60 }
 0x518   :  { %4806 = vmatmul.msk.f32.gmra.mxu0 %vm80_vm1, %v5369_v17  ;;  %4811 = vmatmul.msk.f32.gmra.mxu1 %vm80_vm1, %v5369_v17 }
 0x51c   :  { %4797 = vmatmul.msk.f32.gmra.mxu2 %vm433_vm4, %v5560_v2  ;;  %4801 = vmatmul.msk.f32.gmra.mxu3 %vm433_vm4, %v5560_v2 }
 0x520   :  { %4807 = vmatmul.msk.f32.gmra.mxu0 %vm80_vm1, %v5379_v19  ;;  %4812 = vmatmul.msk.f32.gmra.mxu1 %vm80_vm1, %v5379_v19 }
 0x524   :  { %4798 = vmatmul.msk.f32.gmra.mxu2 %vm433_vm4, %v5570_v13  ;;  %4802 = vmatmul.msk.f32.gmra.mxu3 %vm433_vm4, %v5570_v13 }
 0x528   :  { %4808 = vmatmul.msk.f32.gmra.mxu0 %vm80_vm1, %v5394_v20  ;;  %4813 = vmatmul.msk.f32.gmra.mxu1 %vm80_vm1, %v5394_v20 }
 0x52c   :  { %4799 = vmatmul.msk.f32.gmra.mxu2 %vm433_vm4, %v5582_v14  ;;  %4803 = vmatmul.msk.f32.gmra.mxu3 %vm433_vm4, %v5582_v14 }
 0x530   :  { %4825 = vmatmul.msk.f32.vlgmr.msrb.gmra.mxu0 %vm227_vm3, %v5802_v15  ;;  %4830 = vmatmul.msk.f32.vlgmr.msrb.gmra.mxu1 %vm227_vm3, %v5802_v15 }
 0x534   :  { %4815 = vmatmul.msk.f32.vlgmr.msra.gmra.mxu2 %vm80_vm1, %v5355_v12  ;;  %4820 = vmatmul.msk.f32.vlgmr.msra.gmra.mxu3 %vm80_vm1, %v5355_v12 }
 0x538   :  { %4826 = vmatmul.msk.f32.gmra.mxu0 %vm227_vm3, %v5812_v21  ;;  %4831 = vmatmul.msk.f32.gmra.mxu1 %vm227_vm3, %v5812_v21 }
 0x53c   :  { %4816 = vmatmul.msk.f32.gmra.mxu2 %vm80_vm1, %v5369_v17  ;;  %4821 = vmatmul.msk.f32.gmra.mxu3 %vm80_vm1, %v5369_v17 }
 0x540   :  { %4827 = vmatmul.msk.f32.gmra.mxu0 %vm227_vm3, %v5822_v25  ;;  %4832 = vmatmul.msk.f32.gmra.mxu1 %vm227_vm3, %v5822_v25 }
 0x544   :  { %4817 = vmatmul.msk.f32.gmra.mxu2 %vm80_vm1, %v5379_v19  ;;  %4822 = vmatmul.msk.f32.gmra.mxu3 %vm80_vm1, %v5379_v19 }
 0x548   :  { %4828 = vmatmul.msk.f32.gmra.mxu0 %vm227_vm3, %v5832_v29  ;;  %4833 = vmatmul.msk.f32.gmra.mxu1 %vm227_vm3, %v5832_v29 }
 0x54c   :  { %4818 = vmatmul.msk.f32.gmra.mxu2 %vm80_vm1, %v5394_v20  ;;  %4823 = vmatmul.msk.f32.gmra.mxu3 %vm80_vm1, %v5394_v20 }
 0x554   :  { %4835 = vmatmul.msk.f32.vlgmr.msrb.gmra.mxu2 %vm227_vm3, %v5802_v15  ;;  %4840 = vmatmul.msk.f32.vlgmr.msrb.gmra.mxu3 %vm227_vm3, %v5802_v15 }
 0x55c   :  { %4836 = vmatmul.msk.f32.gmra.mxu2 %vm227_vm3, %v5812_v21  ;;  %4841 = vmatmul.msk.f32.gmra.mxu3 %vm227_vm3, %v5812_v21 }
 0x564   :  { %4837 = vmatmul.msk.f32.gmra.mxu2 %vm227_vm3, %v5822_v25  ;;  %4842 = vmatmul.msk.f32.gmra.mxu3 %vm227_vm3, %v5822_v25 }
 0x56c   :  { %4838 = vmatmul.msk.f32.gmra.mxu2 %vm227_vm3, %v5832_v29  ;;  %4843 = vmatmul.msk.f32.gmra.mxu3 %vm227_vm3, %v5832_v29 }
 0x56d   :  { %v1720_v61 = vpop.f32.mrf.mxu0  ;;  %v1746_v15 = vpop.f32.mrf.mxu1 }
 0x56e   :  { %v1747_v18 = vadd.f32 %v1746_v15, %v5664_v0  ;;  %v1721_v26 = vadd.f32 %v1720_v61, %v5664_v0 }
 0x570   :  { %v1811_v6 = vrot.slane %v1747_v18, 4 }
 0x572   :  { %v1813_v21 = vsel %vm713_vm5, %v1721_v26, %v1811_v6 }
 0x573   :  { %1818 = vst [vmem:[#allocation8 + $0x20] sm:$0x77] %v1813_v21 }
 0x575   :  { %v1723_v33 = vpop.f32.mrf.mxu0  ;;  %v1749_v32 = vpop.f32.mrf.mxu1 }
 0x57d   :  { %v1725_v1 = vpop.f32.mrf.mxu0  ;;  %v1751_v25 = vpop.f32.mrf.mxu1 }
 0x585   :  { %v1727_v31 = vpop.f32.mrf.mxu0  ;;  %v1753_v40 = vpop.f32.mrf.mxu1 }
 0x58d   :  { %v1857_v44 = vpop.f32.mrf.mxu0  ;;  %v1886_v9 = vpop.f32.mrf.mxu1 }
 0x595   :  { %v1860_v4 = vpop.f32.mrf.mxu0  ;;  %v1889_v29 = vpop.f32.mrf.mxu1 }
 0x597   :  { %v1772_v27 = vpop.f32.mrf.mxu2  ;;  %v1798_v45 = vpop.f32.mrf.mxu3 }
 0x598   :  { %v1799_v46 = vadd.f32 %v1798_v45, %v5664_v0  ;;  %v1773_v7 = vadd.f32 %v1772_v27, %v5664_v0 }
 0x59a   :  { %v1812_v47 = vrot.slane %v1799_v46, 4 }
 0x59c   :  { %v1814_v48 = vsel %vm713_vm5, %v1773_v7, %v1812_v47 }
 0x59d   :  { %1819 = vst [vmem:[#allocation8 + $0x28] sm:$0x77] %v1814_v48  ;;  %v1863_v52 = vpop.f32.mrf.mxu0  ;;  %v1892_v24 = vpop.f32.mrf.mxu1 }
 0x59f   :  { %v1775_v36 = vpop.f32.mrf.mxu2  ;;  %v1801_v3 = vpop.f32.mrf.mxu3 }
 0x5a5   :  { %v1866_v16 = vpop.f32.mrf.mxu0  ;;  %v1895_v50 = vpop.f32.mrf.mxu1 }
 0x5a7   :  { %v1777_v51 = vpop.f32.mrf.mxu2  ;;  %v1803_v56 = vpop.f32.mrf.mxu3 }
 0x5ad   :  { %v1990_v57 = vpop.f32.mrf.mxu0  ;;  %v2019_v58 = vpop.f32.mrf.mxu1 }
 0x5ae   :  { %v1991_v32 = vadd.f32 %v1990_v57, %v1857_v44  ;;  %v2020_v1 = vadd.f32 %v2019_v58, %v1886_v9 }
 0x5af   :  { %v1779_v8 = vpop.f32.mrf.mxu2  ;;  %v1805_v30 = vpop.f32.mrf.mxu3 }
 0x5b0   :  { %v2089_v48 = vadd.f32 %v1991_v32, %v5465_v5  ;;  %v2090_v44 = vadd.f32 %v2020_v1, %v5465_v5 }
 0x5b2   :  { %v2106_v51 = vmax.f32 %v2090_v44, 0.0 }
 0x5b5   :  { %v1993_v34 = vpop.f32.mrf.mxu0  ;;  %v2022_v37 = vpop.f32.mrf.mxu1 }
 0x5b6   :  { %v1994_v26 = vadd.f32 %v1993_v34, %v1860_v4  ;;  %v2023_v6 = vadd.f32 %v2022_v37, %v1889_v29 }
 0x5b7   :  { %v6040_v38 = vpop.f32.mrf.mxu2  ;;  %v6042_v41 = vpop.f32.mrf.mxu3 }
 0x5b8   :  { %v2093_v7 = vadd.f32 %v1994_v26, %v5459_v62  ;;  %v2094_v47 = vadd.f32 %v2023_v6, %v5459_v62 }
 0x5ba   :  { %v2110_v36 = vmax.f32 %v2094_v47, 0.0 }
 0x5bd   :  { %v1996_v23 = vpop.f32.mrf.mxu0  ;;  %v2025_v35 = vpop.f32.mrf.mxu1 }
 0x5be   :  { %v1997_v59 = vadd.f32 %v1996_v23, %v1863_v52  ;;  %v2026_v61 = vadd.f32 %v2025_v35, %v1892_v24  ;;  %v2109_v24 = vmax.f32 %v2093_v7, 0.0 }
 0x5bf   :  { %v1918_v39 = vpop.f32.mrf.mxu2  ;;  %v1947_v60 = vpop.f32.mrf.mxu3 }
 0x5c0   :  { %v2097_v40 = vadd.f32 %v1997_v59, %v5452_v49  ;;  %v2098_v27 = vadd.f32 %v2026_v61, %v5452_v49 }
 0x5c2   :  { %v2113_v9 = vmax.f32 %v2097_v40, 0.0  ;;  %v2114_v52 = vmax.f32 %v2098_v27, 0.0 }
 0x5c5   :  { %v1999_v15 = vpop.f32.mrf.mxu0  ;;  %v2028_v18 = vpop.f32.mrf.mxu1 }
 0x5c6   :  { %v2000_v21 = vadd.f32 %v1999_v15, %v1866_v16  ;;  %v2029_v33 = vadd.f32 %v2028_v18, %v1895_v50  ;;  %v2105_v50 = vmax.f32 %v2089_v48, 0.0 }
 0x5c7   :  { %v1921_v25 = vpop.f32.mrf.mxu2  ;;  %v1950_v31 = vpop.f32.mrf.mxu3 }
 0x5c8   :  { %v2101_v45 = vadd.f32 %v2000_v21, %v5447_v43  ;;  %v2102_v46 = vadd.f32 %v2029_v33, %v5447_v43 }
 0x5ca   :  { %v2117_v4 = vmax.f32 %v2101_v45, 0.0  ;;  %v2118_v29 = vmax.f32 %v2102_v46, 0.0 }
 0x5cc   :  { %2133 = vmatpush.msra.mxu0 %v2117_v4  ;;  %2162 = vmatpush.msra.mxu1 %v2118_v29 }
 0x5ce   :  { %2134 = vmatpush.msra.mxu0 %v2113_v9  ;;  %2163 = vmatpush.msra.mxu1 %v2114_v52 }
 0x5cf   :  { %v1924_v3 = vpop.f32.mrf.mxu2  ;;  %v1953_v16 = vpop.f32.mrf.mxu3 }
 0x5d0   :  { %2135 = vmatpush.msra.mxu0 %v2109_v24  ;;  %2164 = vmatpush.msra.mxu1 %v2110_v36 }
 0x5d2   :  { %2136 = vmatpush.msra.mxu0 %v2105_v50  ;;  %2165 = vmatpush.msra.mxu1 %v2106_v51 }
 0x5d3   :  { %4844 = vmatmul.msk.f32.vlgmr.msra.gmra.mxu0 %vm433_vm4, %v5485_v42  ;;  %4848 = vmatmul.msk.f32.vlgmr.msra.gmra.mxu1 %vm433_vm4, %v5485_v42 }
 0x5d7   :  { %v2048_v56 = vpop.f32.mrf.mxu2  ;;  %v2077_v57 = vpop.f32.mrf.mxu3 }
 0x5d8   :  { %v2049_v6 = vadd.f32 %v2048_v56, %v6040_v38  ;;  %v2078_v21 = vadd.f32 %v2077_v57, %v6042_v41 }
 0x5da   :  { %v2091_v27 = vadd.f32 %v2049_v6, %v5465_v5  ;;  %v2092_v38 = vadd.f32 %v2078_v21, %v5465_v5  ;;  %v2375_v6 = vld [vmem:[#allocation5 + $0x88] sm:$0x1f] }
 0x5db   :  { %4845 = vmatmul.msk.f32.gmra.mxu0 %vm433_vm4, %v5493_v53  ;;  %4849 = vmatmul.msk.f32.gmra.mxu1 %vm433_vm4, %v5493_v53 }
 0x5dc   :  { %v2107_v47 = vmax.f32 %v2091_v27, 0.0  ;;  %v2108_v4 = vmax.f32 %v2092_v38, 0.0 }
 0x5df   :  { %v2051_v58 = vpop.f32.mrf.mxu2  ;;  %v2080_v8 = vpop.f32.mrf.mxu3 }
 0x5e0   :  { %v2052_v61 = vadd.f32 %v2051_v58, %v1918_v39  ;;  %v2081_v15 = vadd.f32 %v2080_v8, %v1947_v60 }
 0x5e3   :  { %4846 = vmatmul.msk.f32.gmra.mxu0 %vm433_vm4, %v5503_v54  ;;  %4850 = vmatmul.msk.f32.gmra.mxu1 %vm433_vm4, %v5503_v54 }
 0x5e7   :  { %v2054_v30 = vpop.f32.mrf.mxu2  ;;  %v2083_v34 = vpop.f32.mrf.mxu3 }
 0x5e8   :  { %v2055_v37 = vadd.f32 %v2054_v30, %v1921_v25  ;;  %v2084_v23 = vadd.f32 %v2083_v34, %v1950_v31  ;;  %v2095_v25 = vadd.f32 %v2052_v61, %v5459_v62  ;;  %v2096_v31 = vadd.f32 %v2081_v15, %v5459_v62 }
 0x5ea   :  { %v2099_v33 = vadd.f32 %v2055_v37, %v5452_v49  ;;  %v2100_v32 = vadd.f32 %v2084_v23, %v5452_v49  ;;  %v2111_v46 = vmax.f32 %v2095_v25, 0.0  ;;  %v2112_v7 = vmax.f32 %v2096_v31, 0.0  ;;  %v2512_v25 = vld.sshfl [vmem:[#allocation1 + $0x8] sm:$0xff pattern:$0x75316420] }
 0x5eb   :  { %4847 = vmatmul.msk.f32.gmra.mxu0 %vm433_vm4, %v5513_v55  ;;  %4851 = vmatmul.msk.f32.gmra.mxu1 %vm433_vm4, %v5513_v55 }
 0x5ec   :  { %v2115_v41 = vmax.f32 %v2099_v33, 0.0  ;;  %v2116_v45 = vmax.f32 %v2100_v32, 0.0 }
 0x5ef   :  { %v2057_v35 = vpop.f32.mrf.mxu2  ;;  %v2086_v59 = vpop.f32.mrf.mxu3 }
 0x5f0   :  { %v2058_v18 = vadd.f32 %v2057_v35, %v1924_v3  ;;  %v2087_v26 = vadd.f32 %v2086_v59, %v1953_v16 }
 0x5f2   :  { %v2103_v1 = vadd.f32 %v2058_v18, %v5447_v43  ;;  %v2104_v40 = vadd.f32 %v2087_v26, %v5447_v43  ;;  %v2374_v26 = vld [vmem:[#allocation5 + $0x80] sm:$0x1f] }
 0x5f4   :  { %v2119_v39 = vmax.f32 %v2103_v1, 0.0  ;;  %v2120_v60 = vmax.f32 %v2104_v40, 0.0  ;;  %v2511_v40 = vld.sshfl [vmem:[#allocation1] sm:$0xff pattern:$0x75316420] }
 0x5f6   :  { %2191 = vmatpush.msra.mxu2 %v2119_v39  ;;  %2220 = vmatpush.msra.mxu3 %v2120_v60 }
 0x5f8   :  { %2192 = vmatpush.msra.mxu2 %v2115_v41  ;;  %2221 = vmatpush.msra.mxu3 %v2116_v45 }
 0x5fa   :  { %2193 = vmatpush.msra.mxu2 %v2111_v46  ;;  %2222 = vmatpush.msra.mxu3 %v2112_v7 }
 0x5fc   :  { %2194 = vmatpush.msra.mxu2 %v2107_v47  ;;  %2223 = vmatpush.msra.mxu3 %v2108_v4 }
 0x5fd   :  { %4852 = vmatmul.msk.f32.vlgmr.msra.gmra.mxu2 %vm433_vm4, %v5485_v42  ;;  %4856 = vmatmul.msk.f32.vlgmr.msra.gmra.mxu3 %vm433_vm4, %v5485_v42 }
 0x605   :  { %4853 = vmatmul.msk.f32.gmra.mxu2 %vm433_vm4, %v5493_v53  ;;  %4857 = vmatmul.msk.f32.gmra.mxu3 %vm433_vm4, %v5493_v53 }
 0x60d   :  { %4854 = vmatmul.msk.f32.gmra.mxu2 %vm433_vm4, %v5503_v54  ;;  %4858 = vmatmul.msk.f32.gmra.mxu3 %vm433_vm4, %v5503_v54 }
 0x615   :  { %4855 = vmatmul.msk.f32.gmra.mxu2 %vm433_vm4, %v5513_v55  ;;  %4859 = vmatmul.msk.f32.gmra.mxu3 %vm433_vm4, %v5513_v55 }
 0x650   :  { %v2138_v29 = vpop.f32.mrf.mxu0  ;;  %v2167_v48 = vpop.f32.mrf.mxu1 }
 0x651   :  { %v2139_v34 = vadd.f32 %v2138_v29, %v5538_v22  ;;  %v2168_v37 = vadd.f32 %v2167_v48, %v5538_v22 }
 0x653   :  { %v2237_v15 = vmax.f32 %v2139_v34, 0.0  ;;  %v2238_v18 = vmax.f32 %v2168_v37, 0.0  ;;  %v6192_v34 = vld [vmem:[#allocation7 + $0x18] sm:$0xff] }
 0x658   :  { %v2141_v44 = vpop.f32.mrf.mxu0  ;;  %v2170_v9 = vpop.f32.mrf.mxu1 }
 0x659   :  { %v2142_v57 = vadd.f32 %v2141_v44, %v5532_v11  ;;  %v2171_v58 = vadd.f32 %v2170_v9, %v5532_v11 }
 0x65b   :  { %v2241_v59 = vmax.f32 %v2142_v57, 0.0  ;;  %v2242_v61 = vmax.f32 %v2171_v58, 0.0  ;;  %v2513_v57 = vld.sshfl [vmem:[#allocation1 + $0x10] sm:$0xff pattern:$0x75316420] }
 0x65c   :  { %v2514_v58 = vld.sshfl [vmem:[#allocation1 + $0x18] sm:$0xff pattern:$0x75316420] }
 0x660   :  { %v2144_v52 = vpop.f32.mrf.mxu0  ;;  %v2173_v24 = vpop.f32.mrf.mxu1 }
 0x661   :  { %v2145_v16 = vadd.f32 %v2144_v52, %v5529_v10  ;;  %v2174_v50 = vadd.f32 %v2173_v24, %v5529_v10 }
 0x663   :  { %v2245_v23 = vmax.f32 %v2145_v16, 0.0  ;;  %v2246_v35 = vmax.f32 %v2174_v50, 0.0  ;;  %v2376_v50 = vld [vmem:[#allocation5 + $0x90] sm:$0x1f] }
 0x668   :  { %v2147_v36 = vpop.f32.mrf.mxu0  ;;  %v2176_v3 = vpop.f32.mrf.mxu1 }
 0x669   :  { %v2148_v51 = vadd.f32 %v2147_v36, %v5527_v63  ;;  %v2177_v56 = vadd.f32 %v2176_v3, %v5527_v63 }
 0x66b   :  { %v2249_v8 = vmax.f32 %v2148_v51, 0.0  ;;  %v2250_v30 = vmax.f32 %v2177_v56, 0.0  ;;  %v2377_v51 = vld [vmem:[#allocation5 + $0x98] sm:$0x1f]  ;;  %v6160_v56 = vld [vmem:[#allocation7] sm:$0xff] }
 0x66d   :  { %2265 = vmatpush.msrb.mxu0 %v2249_v8  ;;  %2291 = vmatpush.msrb.mxu1 %v2250_v30  ;;  %v6170_v8 = vld [vmem:[#allocation7 + $0x8] sm:$0xff]  ;;  %v6182_v30 = vld [vmem:[#allocation7 + $0x10] sm:$0xff] }
 0x66f   :  { %2266 = vmatpush.msrb.mxu0 %v2245_v23  ;;  %2292 = vmatpush.msrb.mxu1 %v2246_v35 }
 0x671   :  { %2267 = vmatpush.msrb.mxu0 %v2241_v59  ;;  %2293 = vmatpush.msrb.mxu1 %v2242_v61 }
 0x673   :  { %2268 = vmatpush.msrb.mxu0 %v2237_v15  ;;  %2294 = vmatpush.msrb.mxu1 %v2238_v18 }
 0x674   :  { %4860 = vmatmul.msk.f32.vlgmr.msrb.gmra.mxu0 %vm433_vm4, %v5544_v28  ;;  %4864 = vmatmul.msk.f32.vlgmr.msrb.gmra.mxu1 %vm433_vm4, %v5544_v28 }
 0x675   :  { %4876 = vmatpush.msk.msra.mxu0 %vm89_vm0, %v2374_v26  ;;  %4881 = vmatpush.msk.msra.mxu1 %vm89_vm0, %v2375_v6 }
 0x677   :  { %4896 = vmatpush.msk.msrb.mxu0 %vm236_vm2, %v2511_v40  ;;  %4901 = vmatpush.msk.msrb.mxu1 %vm236_vm2, %v2512_v25 }
 0x67c   :  { %4861 = vmatmul.msk.f32.gmra.mxu0 %vm433_vm4, %v5560_v2  ;;  %4865 = vmatmul.msk.f32.gmra.mxu1 %vm433_vm4, %v5560_v2 }
 0x680   :  { %v2196_v21 = vpop.f32.mrf.mxu2  ;;  %v2225_v33 = vpop.f32.mrf.mxu3 }
 0x681   :  { %v2197_v48 = vadd.f32 %v2196_v21, %v5538_v22  ;;  %v2226_v44 = vadd.f32 %v2225_v33, %v5538_v22 }
 0x683   :  { %v2239_v3 = vmax.f32 %v2197_v48, 0.0  ;;  %v2240_v16 = vmax.f32 %v2226_v44, 0.0 }
 0x684   :  { %4862 = vmatmul.msk.f32.gmra.mxu0 %vm433_vm4, %v5570_v13  ;;  %4866 = vmatmul.msk.f32.gmra.mxu1 %vm433_vm4, %v5570_v13 }
 0x688   :  { %v2199_v32 = vpop.f32.mrf.mxu2  ;;  %v2228_v1 = vpop.f32.mrf.mxu3 }
 0x689   :  { %v2200_v7 = vadd.f32 %v2199_v32, %v5532_v11  ;;  %v2229_v47 = vadd.f32 %v2228_v1, %v5532_v11 }
 0x68b   :  { %v2243_v24 = vmax.f32 %v2200_v7, 0.0  ;;  %v2244_v36 = vmax.f32 %v2229_v47, 0.0 }
 0x68c   :  { %4863 = vmatmul.msk.f32.gmra.mxu0 %vm433_vm4, %v5582_v14  ;;  %4867 = vmatmul.msk.f32.gmra.mxu1 %vm433_vm4, %v5582_v14 }
 0x690   :  { %v2202_v31 = vpop.f32.mrf.mxu2  ;;  %v2231_v39 = vpop.f32.mrf.mxu3 }
 0x691   :  { %v2203_v38 = vadd.f32 %v2202_v31, %v5529_v10  ;;  %v2232_v41 = vadd.f32 %v2231_v39, %v5529_v10 }
 0x693   :  { %v2247_v9 = vmax.f32 %v2203_v38, 0.0  ;;  %v2248_v52 = vmax.f32 %v2232_v41, 0.0 }
 0x694   :  { %4877 = vmatmul.msk.f32.vlgmr.msra.gmra.mxu0 %vm80_vm1, %v5355_v12  ;;  %4882 = vmatmul.msk.f32.vlgmr.msra.gmra.mxu1 %vm80_vm1, %v5355_v12 }
 0x698   :  { %v2205_v60 = vpop.f32.mrf.mxu2  ;;  %v2234_v27 = vpop.f32.mrf.mxu3 }
 0x699   :  { %v2206_v45 = vadd.f32 %v2205_v60, %v5527_v63  ;;  %v2235_v46 = vadd.f32 %v2234_v27, %v5527_v63 }
 0x69b   :  { %v2251_v4 = vmax.f32 %v2206_v45, 0.0  ;;  %v2252_v29 = vmax.f32 %v2235_v46, 0.0 }
 0x69c   :  { %4878 = vmatmul.msk.f32.gmra.mxu0 %vm80_vm1, %v5369_v17  ;;  %4883 = vmatmul.msk.f32.gmra.mxu1 %vm80_vm1, %v5369_v17 }
 0x69d   :  { %2317 = vmatpush.msrb.mxu2 %v2251_v4  ;;  %2343 = vmatpush.msrb.mxu3 %v2252_v29 }
 0x69f   :  { %2318 = vmatpush.msrb.mxu2 %v2247_v9  ;;  %2344 = vmatpush.msrb.mxu3 %v2248_v52 }
 0x6a1   :  { %2319 = vmatpush.msrb.mxu2 %v2243_v24  ;;  %2345 = vmatpush.msrb.mxu3 %v2244_v36 }
 0x6a3   :  { %2320 = vmatpush.msrb.mxu2 %v2239_v3  ;;  %2346 = vmatpush.msrb.mxu3 %v2240_v16 }
 0x6a4   :  { %4868 = vmatmul.msk.f32.vlgmr.msrb.gmra.mxu2 %vm433_vm4, %v5544_v28  ;;  %4872 = vmatmul.msk.f32.vlgmr.msrb.gmra.mxu3 %vm433_vm4, %v5544_v28 }
 0x6a5   :  { %4879 = vmatmul.msk.f32.gmra.mxu0 %vm80_vm1, %v5379_v19  ;;  %4884 = vmatmul.msk.f32.gmra.mxu1 %vm80_vm1, %v5379_v19 }
 0x6a6   :  { %4886 = vmatpush.msk.msra.mxu2 %vm89_vm0, %v2376_v50  ;;  %4891 = vmatpush.msk.msra.mxu3 %vm89_vm0, %v2377_v51 }
 0x6a8   :  { %4906 = vmatpush.msk.msrb.mxu2 %vm236_vm2, %v2513_v57  ;;  %4911 = vmatpush.msk.msrb.mxu3 %vm236_vm2, %v2514_v58 }
 0x6ac   :  { %4869 = vmatmul.msk.f32.gmra.mxu2 %vm433_vm4, %v5560_v2  ;;  %4873 = vmatmul.msk.f32.gmra.mxu3 %vm433_vm4, %v5560_v2 }
 0x6ad   :  { %4880 = vmatmul.msk.f32.gmra.mxu0 %vm80_vm1, %v5394_v20  ;;  %4885 = vmatmul.msk.f32.gmra.mxu1 %vm80_vm1, %v5394_v20 }
 0x6b4   :  { %4870 = vmatmul.msk.f32.gmra.mxu2 %vm433_vm4, %v5570_v13  ;;  %4874 = vmatmul.msk.f32.gmra.mxu3 %vm433_vm4, %v5570_v13 }
 0x6b5   :  { %4897 = vmatmul.msk.f32.vlgmr.msrb.gmra.mxu0 %vm227_vm3, %v6160_v56  ;;  %4902 = vmatmul.msk.f32.vlgmr.msrb.gmra.mxu1 %vm227_vm3, %v6160_v56 }
 0x6bc   :  { %4871 = vmatmul.msk.f32.gmra.mxu2 %vm433_vm4, %v5582_v14  ;;  %4875 = vmatmul.msk.f32.gmra.mxu3 %vm433_vm4, %v5582_v14 }
 0x6bd   :  { %4898 = vmatmul.msk.f32.gmra.mxu0 %vm227_vm3, %v6170_v8  ;;  %4903 = vmatmul.msk.f32.gmra.mxu1 %vm227_vm3, %v6170_v8 }
 0x6c4   :  { %4887 = vmatmul.msk.f32.vlgmr.msra.gmra.mxu2 %vm80_vm1, %v5355_v12  ;;  %4892 = vmatmul.msk.f32.vlgmr.msra.gmra.mxu3 %vm80_vm1, %v5355_v12 }
 0x6c5   :  { %4899 = vmatmul.msk.f32.gmra.mxu0 %vm227_vm3, %v6182_v30  ;;  %4904 = vmatmul.msk.f32.gmra.mxu1 %vm227_vm3, %v6182_v30 }
 0x6cc   :  { %4888 = vmatmul.msk.f32.gmra.mxu2 %vm80_vm1, %v5369_v17  ;;  %4893 = vmatmul.msk.f32.gmra.mxu3 %vm80_vm1, %v5369_v17 }
 0x6cd   :  { %4900 = vmatmul.msk.f32.gmra.mxu0 %vm227_vm3, %v6192_v34  ;;  %4905 = vmatmul.msk.f32.gmra.mxu1 %vm227_vm3, %v6192_v34 }
 0x6d4   :  { %4889 = vmatmul.msk.f32.gmra.mxu2 %vm80_vm1, %v5379_v19  ;;  %4894 = vmatmul.msk.f32.gmra.mxu3 %vm80_vm1, %v5379_v19 }
 0x6dc   :  { %4890 = vmatmul.msk.f32.gmra.mxu2 %vm80_vm1, %v5394_v20  ;;  %4895 = vmatmul.msk.f32.gmra.mxu3 %vm80_vm1, %v5394_v20 }
 0x6e4   :  { %4907 = vmatmul.msk.f32.vlgmr.msrb.gmra.mxu2 %vm227_vm3, %v6160_v56  ;;  %4912 = vmatmul.msk.f32.vlgmr.msrb.gmra.mxu3 %vm227_vm3, %v6160_v56 }
 0x6ec   :  { %4908 = vmatmul.msk.f32.gmra.mxu2 %vm227_vm3, %v6170_v8  ;;  %4913 = vmatmul.msk.f32.gmra.mxu3 %vm227_vm3, %v6170_v8 }
 0x6f1   :  { %v2270_v37 = vpop.f32.mrf.mxu0  ;;  %v2296_v23 = vpop.f32.mrf.mxu1 }
 0x6f2   :  { %v2297_v35 = vadd.f32 %v2296_v23, %v5664_v0  ;;  %v2271_v59 = vadd.f32 %v2270_v37, %v5664_v0 }
 0x6f4   :  { %v2361_v61 = vrot.slane %v2297_v35, 4  ;;  %4909 = vmatmul.msk.f32.gmra.mxu2 %vm227_vm3, %v6182_v30  ;;  %4914 = vmatmul.msk.f32.gmra.mxu3 %vm227_vm3, %v6182_v30 }
 0x6f6   :  { %v2363_v15 = vsel %vm713_vm5, %v2271_v59, %v2361_v61 }
 0x6f7   :  { %2368 = vst [vmem:[#allocation8 + $0x30] sm:$0x77] %v2363_v15 }
 0x6f9   :  { %v2273_v18 = vpop.f32.mrf.mxu0  ;;  %v2299_v26 = vpop.f32.mrf.mxu1 }
 0x6fc   :  { %4910 = vmatmul.msk.f32.gmra.mxu2 %vm227_vm3, %v6192_v34  ;;  %4915 = vmatmul.msk.f32.gmra.mxu3 %vm227_vm3, %v6192_v34 }
 0x701   :  { %v2275_v6 = vpop.f32.mrf.mxu0  ;;  %v2301_v21 = vpop.f32.mrf.mxu1 }
 0x709   :  { %v2277_v33 = vpop.f32.mrf.mxu0  ;;  %v2303_v32 = vpop.f32.mrf.mxu1 }
 0x711   :  { %v2407_v1 = vpop.f32.mrf.mxu0  ;;  %v2436_v40 = vpop.f32.mrf.mxu1 }
 0x719   :  { %v2410_v25 = vpop.f32.mrf.mxu0  ;;  %v2439_v31 = vpop.f32.mrf.mxu1 }
 0x722   :  { %v2413_v39 = vpop.f32.mrf.mxu0  ;;  %v2442_v60 = vpop.f32.mrf.mxu1 }
 0x727   :  { %v2322_v27 = vpop.f32.mrf.mxu2  ;;  %v2348_v38 = vpop.f32.mrf.mxu3 }
 0x728   :  { %v2349_v41 = vadd.f32 %v2348_v38, %v5664_v0  ;;  %v2323_v45 = vadd.f32 %v2322_v27, %v5664_v0 }
 0x72a   :  { %v2362_v46 = vrot.slane %v2349_v41, 4  ;;  %v2416_v7 = vpop.f32.mrf.mxu0  ;;  %v2445_v47 = vpop.f32.mrf.mxu1 }
 0x72c   :  { %v2364_v4 = vsel %vm713_vm5, %v2323_v45, %v2362_v46 }
 0x72d   :  { %2369 = vst [vmem:[#allocation8 + $0x38] sm:$0x77] %v2364_v4 }
 0x72f   :  { %v2325_v29 = vpop.f32.mrf.mxu2  ;;  %v2351_v48 = vpop.f32.mrf.mxu3 }
 0x732   :  { %v2540_v44 = vpop.f32.mrf.mxu0  ;;  %v2569_v9 = vpop.f32.mrf.mxu1 }
 0x733   :  { %v2541_v21 = vadd.f32 %v2540_v44, %v2407_v1  ;;  %v2570_v33 = vadd.f32 %v2569_v9, %v2436_v40 }
 0x735   :  { %v2640_v1 = vadd.f32 %v2570_v33, %v5465_v5 }
 0x737   :  { %v2327_v52 = vpop.f32.mrf.mxu2  ;;  %v2353_v24 = vpop.f32.mrf.mxu3  ;;  %v2656_v44 = vmax.f32 %v2640_v1, 0.0 }
 0x73a   :  { %v2543_v36 = vpop.f32.mrf.mxu0  ;;  %v2572_v3 = vpop.f32.mrf.mxu1 }
 0x73b   :  { %v2544_v15 = vadd.f32 %v2543_v36, %v2410_v25  ;;  %v2573_v18 = vadd.f32 %v2572_v3, %v2439_v31 }
 0x73d   :  { %v2643_v45 = vadd.f32 %v2544_v15, %v5459_v62 }
 0x73f   :  { %v2329_v16 = vpop.f32.mrf.mxu2  ;;  %v2355_v50 = vpop.f32.mrf.mxu3  ;;  %v2659_v4 = vmax.f32 %v2643_v45, 0.0 }
 0x742   :  { %v2546_v51 = vpop.f32.mrf.mxu0  ;;  %v2575_v57 = vpop.f32.mrf.mxu1 }
 0x743   :  { %v2547_v23 = vadd.f32 %v2546_v51, %v2413_v39  ;;  %v2576_v35 = vadd.f32 %v2575_v57, %v2442_v60  ;;  %v2644_v39 = vadd.f32 %v2573_v18, %v5459_v62 }
 0x745   :  { %v2647_v32 = vadd.f32 %v2547_v23, %v5452_v49  ;;  %v2648_v27 = vadd.f32 %v2576_v35, %v5452_v49  ;;  %v2660_v29 = vmax.f32 %v2644_v39, 0.0 }
 0x747   :  { %v6228_v58 = vpop.f32.mrf.mxu2  ;;  %v6230_v37 = vpop.f32.mrf.mxu3  ;;  %v2663_v40 = vmax.f32 %v2647_v32, 0.0 }
 0x74a   :  { %v2549_v59 = vpop.f32.mrf.mxu0  ;;  %v2578_v61 = vpop.f32.mrf.mxu1 }
 0x74b   :  { %v2550_v26 = vadd.f32 %v2549_v59, %v2416_v7  ;;  %v2579_v6 = vadd.f32 %v2578_v61, %v2445_v47  ;;  %v2639_v7 = vadd.f32 %v2541_v21, %v5465_v5  ;;  %v2664_v47 = vmax.f32 %v2648_v27, 0.0 }
 0x74d   :  { %v2651_v38 = vadd.f32 %v2550_v26, %v5447_v43  ;;  %v2652_v41 = vadd.f32 %v2579_v6, %v5447_v43  ;;  %v2655_v48 = vmax.f32 %v2639_v7, 0.0 }
 0x74f   :  { %v2667_v60 = vmax.f32 %v2651_v38, 0.0  ;;  %v2668_v46 = vmax.f32 %v2652_v41, 0.0  ;;  %v2468_v25 = vpop.f32.mrf.mxu2  ;;  %v2497_v31 = vpop.f32.mrf.mxu3 }
 0x751   :  { %2683 = vmatpush.msra.mxu0 %v2667_v60  ;;  %2712 = vmatpush.msra.mxu1 %v2668_v46 }
 0x753   :  { %2684 = vmatpush.msra.mxu0 %v2663_v40  ;;  %2713 = vmatpush.msra.mxu1 %v2664_v47 }
 0x755   :  { %2685 = vmatpush.msra.mxu0 %v2659_v4  ;;  %2714 = vmatpush.msra.mxu1 %v2660_v29 }
 0x757   :  { %2686 = vmatpush.msra.mxu0 %v2655_v48  ;;  %2715 = vmatpush.msra.mxu1 %v2656_v44  ;;  %v2471_v9 = vpop.f32.mrf.mxu2  ;;  %v2500_v52 = vpop.f32.mrf.mxu3 }
 0x758   :  { %4916 = vmatmul.msk.f32.vlgmr.msra.gmra.mxu0 %vm433_vm4, %v5485_v42  ;;  %4920 = vmatmul.msk.f32.vlgmr.msra.gmra.mxu1 %vm433_vm4, %v5485_v42 }
 0x75f   :  { %v2474_v24 = vpop.f32.mrf.mxu2  ;;  %v2503_v36 = vpop.f32.mrf.mxu3 }
 0x760   :  { %4917 = vmatmul.msk.f32.gmra.mxu0 %vm433_vm4, %v5493_v53  ;;  %4921 = vmatmul.msk.f32.gmra.mxu1 %vm433_vm4, %v5493_v53 }
 0x767   :  { %v2598_v3 = vpop.f32.mrf.mxu2  ;;  %v2627_v16 = vpop.f32.mrf.mxu3 }
 0x768   :  { %4918 = vmatmul.msk.f32.gmra.mxu0 %vm433_vm4, %v5503_v54  ;;  %4922 = vmatmul.msk.f32.gmra.mxu1 %vm433_vm4, %v5503_v54  ;;  %v2599_v33 = vadd.f32 %v2598_v3, %v6228_v58  ;;  %v2628_v32 = vadd.f32 %v2627_v16, %v6230_v37 }
 0x76a   :  { %v2642_v58 = vadd.f32 %v2628_v32, %v5465_v5 }
 0x76c   :  { %v2658_v4 = vmax.f32 %v2642_v58, 0.0 }
 0x76f   :  { %v2601_v50 = vpop.f32.mrf.mxu2  ;;  %v2630_v51 = vpop.f32.mrf.mxu3 }
 0x770   :  { %4919 = vmatmul.msk.f32.gmra.mxu0 %vm433_vm4, %v5513_v55  ;;  %4923 = vmatmul.msk.f32.gmra.mxu1 %vm433_vm4, %v5513_v55  ;;  %v2602_v18 = vadd.f32 %v2601_v50, %v2468_v25  ;;  %v2631_v26 = vadd.f32 %v2630_v51, %v2497_v31  ;;  %v2641_v31 = vadd.f32 %v2599_v33, %v5465_v5 }
 0x772   :  { %v2645_v39 = vadd.f32 %v2602_v18, %v5459_v62  ;;  %v2646_v60 = vadd.f32 %v2631_v26, %v5459_v62  ;;  %v2657_v47 = vmax.f32 %v2641_v31, 0.0 }
 0x774   :  { %v2661_v1 = vmax.f32 %v2645_v39, 0.0  ;;  %v2662_v40 = vmax.f32 %v2646_v60, 0.0 }
 0x777   :  { %v2604_v57 = vpop.f32.mrf.mxu2  ;;  %v2633_v23 = vpop.f32.mrf.mxu3 }
 0x778   :  { %v2605_v35 = vadd.f32 %v2604_v57, %v2471_v9  ;;  %v2634_v59 = vadd.f32 %v2633_v23, %v2500_v52 }
 0x77a   :  { %v2649_v27 = vadd.f32 %v2605_v35, %v5452_v49  ;;  %v2650_v38 = vadd.f32 %v2634_v59, %v5452_v49 }
 0x77c   :  { %v2665_v37 = vmax.f32 %v2649_v27, 0.0  ;;  %v2666_v7 = vmax.f32 %v2650_v38, 0.0  ;;  %v2924_v38 = vld [vmem:[#allocation5 + $0xa0] sm:$0x1f] }
 0x77f   :  { %v2607_v61 = vpop.f32.mrf.mxu2  ;;  %v2636_v15 = vpop.f32.mrf.mxu3 }
 0x780   :  { %v2608_v6 = vadd.f32 %v2607_v61, %v2474_v24  ;;  %v2637_v21 = vadd.f32 %v2636_v15, %v2503_v36 }
 0x782   :  { %v2653_v41 = vadd.f32 %v2608_v6, %v5447_v43  ;;  %v2654_v45 = vadd.f32 %v2637_v21, %v5447_v43 }
 0x784   :  { %v2669_v46 = vmax.f32 %v2653_v41, 0.0  ;;  %v2670_v25 = vmax.f32 %v2654_v45, 0.0  ;;  %v2925_v41 = vld [vmem:[#allocation5 + $0xa8] sm:$0x1f]  ;;  %v2921_v45 = vld [vmem:[#allocation2 + $0x50] sm:$0x77] }
 0x785   :  { %3058 = vst [vmem:[#allocation1] ss:$2 sm:$0xff] %v2921_v45 }
 0x786   :  { %2741 = vmatpush.msra.mxu2 %v2669_v46  ;;  %2770 = vmatpush.msra.mxu3 %v2670_v25 }
 0x788   :  { %2742 = vmatpush.msra.mxu2 %v2665_v37  ;;  %2771 = vmatpush.msra.mxu3 %v2666_v7 }
 0x78a   :  { %2743 = vmatpush.msra.mxu2 %v2661_v1  ;;  %2772 = vmatpush.msra.mxu3 %v2662_v40 }
 0x78c   :  { %2744 = vmatpush.msra.mxu2 %v2657_v47  ;;  %2773 = vmatpush.msra.mxu3 %v2658_v4  ;;  %v3061_v46 = vld.sshfl [vmem:[#allocation1] sm:$0xff pattern:$0x75316420]  ;;  %v3062_v25 = vld.sshfl [vmem:[#allocation1 + $0x8] sm:$0xff pattern:$0x75316420] }
 0x78d   :  { %4924 = vmatmul.msk.f32.vlgmr.msra.gmra.mxu2 %vm433_vm4, %v5485_v42  ;;  %4928 = vmatmul.msk.f32.vlgmr.msra.gmra.mxu3 %vm433_vm4, %v5485_v42 }
 0x795   :  { %4925 = vmatmul.msk.f32.gmra.mxu2 %vm433_vm4, %v5493_v53  ;;  %4929 = vmatmul.msk.f32.gmra.mxu3 %vm433_vm4, %v5493_v53 }
 0x79d   :  { %4926 = vmatmul.msk.f32.gmra.mxu2 %vm433_vm4, %v5503_v54  ;;  %4930 = vmatmul.msk.f32.gmra.mxu3 %vm433_vm4, %v5503_v54 }
 0x7a5   :  { %4927 = vmatmul.msk.f32.gmra.mxu2 %vm433_vm4, %v5513_v55  ;;  %4931 = vmatmul.msk.f32.gmra.mxu3 %vm433_vm4, %v5513_v55 }
 0x7d5   :  { %v2688_v29 = vpop.f32.mrf.mxu0  ;;  %v2717_v48 = vpop.f32.mrf.mxu1 }
 0x7d6   :  { %v2689_v15 = vadd.f32 %v2688_v29, %v5538_v22  ;;  %v2718_v18 = vadd.f32 %v2717_v48, %v5538_v22 }
 0x7d8   :  { %v2787_v32 = vmax.f32 %v2689_v15, 0.0  ;;  %v2788_v27 = vmax.f32 %v2718_v18, 0.0  ;;  %v2922_v15 = vld [vmem:[#allocation2 + $0x58] sm:$0x77] }
 0x7d9   :  { %3060 = vst [vmem:[#allocation1 + $0x10] ss:$2 sm:$0xff] %v2922_v15 }
 0x7dd   :  { %v2691_v44 = vpop.f32.mrf.mxu0  ;;  %v2720_v9 = vpop.f32.mrf.mxu1 }
 0x7de   :  { %v2692_v23 = vadd.f32 %v2691_v44, %v5532_v11  ;;  %v2721_v35 = vadd.f32 %v2720_v9, %v5532_v11 }
 0x7e0   :  { %v2791_v21 = vmax.f32 %v2692_v23, 0.0  ;;  %v2792_v33 = vmax.f32 %v2721_v35, 0.0  ;;  %v3063_v18 = vld.sshfl [vmem:[#allocation1 + $0x10] sm:$0xff pattern:$0x75316420] }
 0x7e5   :  { %v2694_v52 = vpop.f32.mrf.mxu0  ;;  %v2723_v24 = vpop.f32.mrf.mxu1 }
 0x7e6   :  { %v2695_v16 = vadd.f32 %v2694_v52, %v5529_v10  ;;  %v2724_v50 = vadd.f32 %v2723_v24, %v5529_v10 }
 0x7e8   :  { %v2795_v26 = vmax.f32 %v2695_v16, 0.0  ;;  %v2796_v6 = vmax.f32 %v2724_v50, 0.0 }
 0x7ed   :  { %v2697_v36 = vpop.f32.mrf.mxu0  ;;  %v2726_v3 = vpop.f32.mrf.mxu1 }
 0x7ee   :  { %v2698_v51 = vadd.f32 %v2697_v36, %v5527_v63  ;;  %v2727_v57 = vadd.f32 %v2726_v3, %v5527_v63 }
 0x7f0   :  { %v2799_v59 = vmax.f32 %v2698_v51, 0.0  ;;  %v2800_v61 = vmax.f32 %v2727_v57, 0.0 }
 0x7f2   :  { %2815 = vmatpush.msrb.mxu0 %v2799_v59  ;;  %2841 = vmatpush.msrb.mxu1 %v2800_v61  ;;  %v2926_v59 = vld [vmem:[#allocation5 + $0xb0] sm:$0x1f]  ;;  %v2927_v61 = vld [vmem:[#allocation5 + $0xb8] sm:$0x1f] }
 0x7f4   :  { %2816 = vmatpush.msrb.mxu0 %v2795_v26  ;;  %2842 = vmatpush.msrb.mxu1 %v2796_v6  ;;  %v3064_v26 = vld.sshfl [vmem:[#allocation1 + $0x18] sm:$0xff pattern:$0x75316420] }
 0x7f6   :  { %2817 = vmatpush.msrb.mxu0 %v2791_v21  ;;  %2843 = vmatpush.msrb.mxu1 %v2792_v33 }
 0x7f8   :  { %2818 = vmatpush.msrb.mxu0 %v2787_v32  ;;  %2844 = vmatpush.msrb.mxu1 %v2788_v27 }
 0x7f9   :  { %4932 = vmatmul.msk.f32.vlgmr.msrb.gmra.mxu0 %vm433_vm4, %v5544_v28  ;;  %4936 = vmatmul.msk.f32.vlgmr.msrb.gmra.mxu1 %vm433_vm4, %v5544_v28 }
 0x7fa   :  { %4948 = vmatpush.msk.msra.mxu0 %vm89_vm0, %v2924_v38  ;;  %4953 = vmatpush.msk.msra.mxu1 %vm89_vm0, %v2925_v41 }
 0x7fc   :  { %4968 = vmatpush.msk.msrb.mxu0 %vm236_vm2, %v3061_v46  ;;  %4973 = vmatpush.msk.msrb.mxu1 %vm236_vm2, %v3062_v25 }
 0x801   :  { %4933 = vmatmul.msk.f32.gmra.mxu0 %vm433_vm4, %v5560_v2  ;;  %4937 = vmatmul.msk.f32.gmra.mxu1 %vm433_vm4, %v5560_v2 }
 0x809   :  { %4934 = vmatmul.msk.f32.gmra.mxu0 %vm433_vm4, %v5570_v13  ;;  %4938 = vmatmul.msk.f32.gmra.mxu1 %vm433_vm4, %v5570_v13 }
 0x810   :  { %v2746_v39 = vpop.f32.mrf.mxu2  ;;  %v2775_v60 = vpop.f32.mrf.mxu3 }
 0x811   :  { %4935 = vmatmul.msk.f32.gmra.mxu0 %vm433_vm4, %v5582_v14  ;;  %4939 = vmatmul.msk.f32.gmra.mxu1 %vm433_vm4, %v5582_v14  ;;  %v2747_v16 = vadd.f32 %v2746_v39, %v5538_v22  ;;  %v2776_v50 = vadd.f32 %v2775_v60, %v5538_v22 }
 0x813   :  { %v2789_v23 = vmax.f32 %v2747_v16, 0.0  ;;  %v2790_v35 = vmax.f32 %v2776_v50, 0.0 }
 0x818   :  { %v2749_v31 = vpop.f32.mrf.mxu2  ;;  %v2778_v58 = vpop.f32.mrf.mxu3 }
 0x819   :  { %4949 = vmatmul.msk.f32.vlgmr.msra.gmra.mxu0 %vm80_vm1, %v5355_v12  ;;  %4954 = vmatmul.msk.f32.vlgmr.msra.gmra.mxu1 %vm80_vm1, %v5355_v12  ;;  %v2750_v52 = vadd.f32 %v2749_v31, %v5532_v11  ;;  %v2779_v24 = vadd.f32 %v2778_v58, %v5532_v11 }
 0x81b   :  { %v2793_v51 = vmax.f32 %v2750_v52, 0.0  ;;  %v2794_v57 = vmax.f32 %v2779_v24, 0.0 }
 0x820   :  { %v2752_v37 = vpop.f32.mrf.mxu2  ;;  %v2781_v7 = vpop.f32.mrf.mxu3 }
 0x821   :  { %4950 = vmatmul.msk.f32.gmra.mxu0 %vm80_vm1, %v5369_v17  ;;  %4955 = vmatmul.msk.f32.gmra.mxu1 %vm80_vm1, %v5369_v17  ;;  %v2753_v1 = vadd.f32 %v2752_v37, %v5529_v10  ;;  %v2782_v4 = vadd.f32 %v2781_v7, %v5529_v10 }
 0x823   :  { %v2797_v36 = vmax.f32 %v2753_v1, 0.0  ;;  %v2798_v3 = vmax.f32 %v2782_v4, 0.0 }
 0x828   :  { %v2755_v40 = vpop.f32.mrf.mxu2  ;;  %v2784_v47 = vpop.f32.mrf.mxu3 }
 0x829   :  { %v2756_v29 = vadd.f32 %v2755_v40, %v5527_v63  ;;  %v2785_v48 = vadd.f32 %v2784_v47, %v5527_v63  ;;  %4951 = vmatmul.msk.f32.gmra.mxu0 %vm80_vm1, %v5379_v19  ;;  %4956 = vmatmul.msk.f32.gmra.mxu1 %vm80_vm1, %v5379_v19 }
 0x82b   :  { %v2801_v44 = vmax.f32 %v2756_v29, 0.0  ;;  %v2802_v9 = vmax.f32 %v2785_v48, 0.0 }
 0x82d   :  { %2867 = vmatpush.msrb.mxu2 %v2801_v44  ;;  %2893 = vmatpush.msrb.mxu3 %v2802_v9 }
 0x82f   :  { %2868 = vmatpush.msrb.mxu2 %v2797_v36  ;;  %2894 = vmatpush.msrb.mxu3 %v2798_v3 }
 0x831   :  { %4952 = vmatmul.msk.f32.gmra.mxu0 %vm80_vm1, %v5394_v20  ;;  %4957 = vmatmul.msk.f32.gmra.mxu1 %vm80_vm1, %v5394_v20 }
 0x832   :  { %2869 = vmatpush.msrb.mxu2 %v2793_v51  ;;  %2895 = vmatpush.msrb.mxu3 %v2794_v57 }
 0x834   :  { %2870 = vmatpush.msrb.mxu2 %v2789_v23  ;;  %2896 = vmatpush.msrb.mxu3 %v2790_v35 }
 0x835   :  { %4940 = vmatmul.msk.f32.vlgmr.msrb.gmra.mxu2 %vm433_vm4, %v5544_v28  ;;  %4944 = vmatmul.msk.f32.vlgmr.msrb.gmra.mxu3 %vm433_vm4, %v5544_v28 }
 0x836   :  { %4958 = vmatpush.msk.msra.mxu2 %vm89_vm0, %v2926_v59  ;;  %4963 = vmatpush.msk.msra.mxu3 %vm89_vm0, %v2927_v61 }
 0x838   :  { %4978 = vmatpush.msk.msrb.mxu2 %vm236_vm2, %v3063_v18  ;;  %4983 = vmatpush.msk.msrb.mxu3 %vm236_vm2, %v3064_v26 }
 0x839   :  { %4969 = vmatmul.msk.f32.vlgmr.msrb.gmra.mxu0 %vm227_vm3, %v6160_v56  ;;  %4974 = vmatmul.msk.f32.vlgmr.msrb.gmra.mxu1 %vm227_vm3, %v6160_v56 }
 0x83d   :  { %4941 = vmatmul.msk.f32.gmra.mxu2 %vm433_vm4, %v5560_v2  ;;  %4945 = vmatmul.msk.f32.gmra.mxu3 %vm433_vm4, %v5560_v2 }
 0x841   :  { %4970 = vmatmul.msk.f32.gmra.mxu0 %vm227_vm3, %v6170_v8  ;;  %4975 = vmatmul.msk.f32.gmra.mxu1 %vm227_vm3, %v6170_v8 }
 0x845   :  { %4942 = vmatmul.msk.f32.gmra.mxu2 %vm433_vm4, %v5570_v13  ;;  %4946 = vmatmul.msk.f32.gmra.mxu3 %vm433_vm4, %v5570_v13 }
 0x849   :  { %4971 = vmatmul.msk.f32.gmra.mxu0 %vm227_vm3, %v6182_v30  ;;  %4976 = vmatmul.msk.f32.gmra.mxu1 %vm227_vm3, %v6182_v30 }
 0x84d   :  { %4943 = vmatmul.msk.f32.gmra.mxu2 %vm433_vm4, %v5582_v14  ;;  %4947 = vmatmul.msk.f32.gmra.mxu3 %vm433_vm4, %v5582_v14 }
 0x851   :  { %4972 = vmatmul.msk.f32.gmra.mxu0 %vm227_vm3, %v6192_v34  ;;  %4977 = vmatmul.msk.f32.gmra.mxu1 %vm227_vm3, %v6192_v34 }
 0x855   :  { %4959 = vmatmul.msk.f32.vlgmr.msra.gmra.mxu2 %vm80_vm1, %v5355_v12  ;;  %4964 = vmatmul.msk.f32.vlgmr.msra.gmra.mxu3 %vm80_vm1, %v5355_v12 }
 0x85d   :  { %4960 = vmatmul.msk.f32.gmra.mxu2 %vm80_vm1, %v5369_v17  ;;  %4965 = vmatmul.msk.f32.gmra.mxu3 %vm80_vm1, %v5369_v17 }
 0x865   :  { %4961 = vmatmul.msk.f32.gmra.mxu2 %vm80_vm1, %v5379_v19  ;;  %4966 = vmatmul.msk.f32.gmra.mxu3 %vm80_vm1, %v5379_v19 }
 0x86d   :  { %4962 = vmatmul.msk.f32.gmra.mxu2 %vm80_vm1, %v5394_v20  ;;  %4967 = vmatmul.msk.f32.gmra.mxu3 %vm80_vm1, %v5394_v20 }
 0x875   :  { %4979 = vmatmul.msk.f32.vlgmr.msrb.gmra.mxu2 %vm227_vm3, %v6160_v56  ;;  %4984 = vmatmul.msk.f32.vlgmr.msrb.gmra.mxu3 %vm227_vm3, %v6160_v56 }
 0x876   :  { %v2820_v6 = vpop.f32.mrf.mxu0  ;;  %v2846_v21 = vpop.f32.mrf.mxu1 }
 0x877   :  { %v2847_v33 = vadd.f32 %v2846_v21, %v5664_v0  ;;  %v2821_v32 = vadd.f32 %v2820_v6, %v5664_v0 }
 0x879   :  { %v2911_v27 = vrot.slane %v2847_v33, 4 }
 0x87b   :  { %v2913_v38 = vsel %vm713_vm5, %v2821_v32, %v2911_v27 }
 0x87c   :  { %2918 = vst [vmem:[#allocation8 + $0x40] sm:$0x77] %v2913_v38 }
 0x87d   :  { %4980 = vmatmul.msk.f32.gmra.mxu2 %vm227_vm3, %v6170_v8  ;;  %4985 = vmatmul.msk.f32.gmra.mxu3 %vm227_vm3, %v6170_v8 }
 0x87e   :  { %v2823_v41 = vpop.f32.mrf.mxu0  ;;  %v2849_v45 = vpop.f32.mrf.mxu1 }
 0x885   :  { %4981 = vmatmul.msk.f32.gmra.mxu2 %vm227_vm3, %v6182_v30  ;;  %4986 = vmatmul.msk.f32.gmra.mxu3 %vm227_vm3, %v6182_v30 }
 0x886   :  { %v2825_v56 = vpop.f32.mrf.mxu0  ;;  %v2851_v39 = vpop.f32.mrf.mxu1 }
 0x88d   :  { %4982 = vmatmul.msk.f32.gmra.mxu2 %vm227_vm3, %v6192_v34  ;;  %4987 = vmatmul.msk.f32.gmra.mxu3 %vm227_vm3, %v6192_v34 }
 0x88e   :  { %v2827_v60 = vpop.f32.mrf.mxu0  ;;  %v2853_v46 = vpop.f32.mrf.mxu1 }
 0x896   :  { %v2957_v25 = vpop.f32.mrf.mxu0  ;;  %v2986_v8 = vpop.f32.mrf.mxu1 }
 0x89e   :  { %v2960_v31 = vpop.f32.mrf.mxu0  ;;  %v2989_v58 = vpop.f32.mrf.mxu1 }
 0x8a6   :  { %v2963_v37 = vpop.f32.mrf.mxu0  ;;  %v2992_v7 = vpop.f32.mrf.mxu1 }
 0x8ae   :  { %v2966_v1 = vpop.f32.mrf.mxu0  ;;  %v2995_v40 = vpop.f32.mrf.mxu1 }
 0x8b6   :  { %v3090_v47 = vpop.f32.mrf.mxu0  ;;  %v3119_v30 = vpop.f32.mrf.mxu1 }
 0x8b7   :  { %v3091_v21 = vadd.f32 %v3090_v47, %v2957_v25  ;;  %v3120_v33 = vadd.f32 %v3119_v30, %v2986_v8 }
 0x8b8   :  { %v2872_v4 = vpop.f32.mrf.mxu2  ;;  %v2898_v29 = vpop.f32.mrf.mxu3 }
 0x8b9   :  { %v2899_v48 = vadd.f32 %v2898_v29, %v5664_v0  ;;  %v2873_v44 = vadd.f32 %v2872_v4, %v5664_v0  ;;  %v3190_v25 = vadd.f32 %v3120_v33, %v5465_v5 }
 0x8bb   :  { %v2912_v9 = vrot.slane %v2899_v48, 4  ;;  %v3206_v4 = vmax.f32 %v3190_v25, 0.0 }
 0x8bd   :  { %v2914_v34 = vsel %vm713_vm5, %v2873_v44, %v2912_v9 }
 0x8be   :  { %2919 = vst [vmem:[#allocation8 + $0x48] sm:$0x77] %v2914_v34  ;;  %v3093_v52 = vpop.f32.mrf.mxu0  ;;  %v3122_v24 = vpop.f32.mrf.mxu1 }
 0x8bf   :  { %v3094_v15 = vadd.f32 %v3093_v52, %v2960_v31  ;;  %v3123_v18 = vadd.f32 %v3122_v24, %v2989_v58  ;;  %v3189_v58 = vadd.f32 %v3091_v21, %v5465_v5 }
 0x8c0   :  { %v2875_v36 = vpop.f32.mrf.mxu2  ;;  %v2901_v3 = vpop.f32.mrf.mxu3 }
 0x8c1   :  { %v3193_v39 = vadd.f32 %v3094_v15, %v5459_v62  ;;  %v3194_v60 = vadd.f32 %v3123_v18, %v5459_v62  ;;  %v3205_v30 = vmax.f32 %v3189_v58, 0.0 }
 0x8c6   :  { %v3096_v16 = vpop.f32.mrf.mxu0  ;;  %v3125_v50 = vpop.f32.mrf.mxu1 }
 0x8c7   :  { %v3097_v23 = vadd.f32 %v3096_v16, %v2963_v37  ;;  %v3126_v35 = vadd.f32 %v3125_v50, %v2992_v7  ;;  %v3209_v7 = vmax.f32 %v3193_v39, 0.0 }
 0x8c8   :  { %v2877_v51 = vpop.f32.mrf.mxu2  ;;  %v2903_v57 = vpop.f32.mrf.mxu3 }
 0x8c9   :  { %v3197_v38 = vadd.f32 %v3097_v23, %v5452_v49  ;;  %v3198_v41 = vadd.f32 %v3126_v35, %v5452_v49 }
 0x8cb   :  { %v3213_v8 = vmax.f32 %v3197_v38, 0.0  ;;  %v3214_v37 = vmax.f32 %v3198_v41, 0.0 }
 0x8ce   :  { %v3099_v59 = vpop.f32.mrf.mxu0  ;;  %v3128_v61 = vpop.f32.mrf.mxu1 }
 0x8cf   :  { %v3100_v26 = vadd.f32 %v3099_v59, %v2966_v1  ;;  %v3129_v6 = vadd.f32 %v3128_v61, %v2995_v40  ;;  %v3210_v1 = vmax.f32 %v3194_v60, 0.0 }
 0x8d0   :  { %v2879_v32 = vpop.f32.mrf.mxu2  ;;  %v2905_v27 = vpop.f32.mrf.mxu3 }
 0x8d1   :  { %v3201_v45 = vadd.f32 %v3100_v26, %v5447_v43  ;;  %v3202_v56 = vadd.f32 %v3129_v6, %v5447_v43 }
 0x8d3   :  { %v3217_v46 = vmax.f32 %v3201_v45, 0.0  ;;  %v3218_v31 = vmax.f32 %v3202_v56, 0.0 }
 0x8d5   :  { %3233 = vmatpush.msra.mxu0 %v3217_v46  ;;  %3262 = vmatpush.msra.mxu1 %v3218_v31 }
 0x8d7   :  { %3234 = vmatpush.msra.mxu0 %v3213_v8  ;;  %3263 = vmatpush.msra.mxu1 %v3214_v37 }
 0x8d8   :  { %v3015_v40 = vpop.f32.mrf.mxu2  ;;  %v3044_v47 = vpop.f32.mrf.mxu3 }
 0x8d9   :  { %3235 = vmatpush.msra.mxu0 %v3209_v7  ;;  %3264 = vmatpush.msra.mxu1 %v3210_v1 }
 0x8db   :  { %3236 = vmatpush.msra.mxu0 %v3205_v30  ;;  %3265 = vmatpush.msra.mxu1 %v3206_v4 }
 0x8dc   :  { %4988 = vmatmul.msk.f32.vlgmr.msra.gmra.mxu0 %vm433_vm4, %v5485_v42  ;;  %4992 = vmatmul.msk.f32.vlgmr.msra.gmra.mxu1 %vm433_vm4, %v5485_v42 }
 0x8e0   :  { %v3018_v29 = vpop.f32.mrf.mxu2  ;;  %v3047_v48 = vpop.f32.mrf.mxu3 }
 0x8e4   :  { %4989 = vmatmul.msk.f32.gmra.mxu0 %vm433_vm4, %v5493_v53  ;;  %4993 = vmatmul.msk.f32.gmra.mxu1 %vm433_vm4, %v5493_v53 }
 0x8e8   :  { %v3021_v44 = vpop.f32.mrf.mxu2  ;;  %v3050_v9 = vpop.f32.mrf.mxu3 }
 0x8ec   :  { %4990 = vmatmul.msk.f32.gmra.mxu0 %vm433_vm4, %v5503_v54  ;;  %4994 = vmatmul.msk.f32.gmra.mxu1 %vm433_vm4, %v5503_v54 }
 0x8f0   :  { %v3024_v34 = vpop.f32.mrf.mxu2  ;;  %v3053_v52 = vpop.f32.mrf.mxu3 }
 0x8f4   :  { %4991 = vmatmul.msk.f32.gmra.mxu0 %vm433_vm4, %v5513_v55  ;;  %4995 = vmatmul.msk.f32.gmra.mxu1 %vm433_vm4, %v5513_v55 }
 0x8f8   :  { %v3148_v24 = vpop.f32.mrf.mxu2  ;;  %v3177_v36 = vpop.f32.mrf.mxu3 }
 0x8f9   :  { %v3149_v6 = vadd.f32 %v3148_v24, %v3015_v40  ;;  %v3178_v21 = vadd.f32 %v3177_v36, %v3044_v47 }
 0x8fb   :  { %v3191_v60 = vadd.f32 %v3149_v6, %v5465_v5  ;;  %v3192_v46 = vadd.f32 %v3178_v21, %v5465_v5  ;;  %v3475_v6 = vld [vmem:[#allocation5 + $0xc8] sm:$0x1f]  ;;  %v3471_v21 = vld [vmem:[#allocation2 + $0x60] sm:$0x77] }
 0x8fc   :  { %3608 = vst [vmem:[#allocation1] ss:$2 sm:$0xff] %v3471_v21 }
 0x8fd   :  { %v3207_v37 = vmax.f32 %v3191_v60, 0.0  ;;  %v3208_v7 = vmax.f32 %v3192_v46, 0.0 }
 0x900   :  { %v3151_v3 = vpop.f32.mrf.mxu2  ;;  %v3180_v16 = vpop.f32.mrf.mxu3 }
 0x901   :  { %v3152_v61 = vadd.f32 %v3151_v3, %v3018_v29  ;;  %v3181_v15 = vadd.f32 %v3180_v16, %v3047_v48 }
 0x903   :  { %v3195_v41 = vadd.f32 %v3152_v61, %v5459_v62  ;;  %v3196_v45 = vadd.f32 %v3181_v15, %v5459_v62 }
 0x905   :  { %v3211_v25 = vmax.f32 %v3195_v41, 0.0  ;;  %v3212_v8 = vmax.f32 %v3196_v45, 0.0 }
 0x908   :  { %v3154_v50 = vpop.f32.mrf.mxu2  ;;  %v3183_v51 = vpop.f32.mrf.mxu3 }
 0x909   :  { %v3155_v57 = vadd.f32 %v3154_v50, %v3021_v44  ;;  %v3184_v23 = vadd.f32 %v3183_v51, %v3050_v9 }
 0x90b   :  { %v3199_v33 = vadd.f32 %v3155_v57, %v5452_v49  ;;  %v3200_v32 = vadd.f32 %v3184_v23, %v5452_v49 }
 0x90d   :  { %v3215_v31 = vmax.f32 %v3199_v33, 0.0  ;;  %v3216_v58 = vmax.f32 %v3200_v32, 0.0  ;;  %v3611_v33 = vld.sshfl [vmem:[#allocation1] sm:$0xff pattern:$0x75316420] }
 0x90e   :  { %v3612_v32 = vld.sshfl [vmem:[#allocation1 + $0x8] sm:$0xff pattern:$0x75316420] }
 0x910   :  { %v3157_v35 = vpop.f32.mrf.mxu2  ;;  %v3186_v59 = vpop.f32.mrf.mxu3 }
 0x911   :  { %v3158_v18 = vadd.f32 %v3157_v35, %v3024_v34  ;;  %v3187_v26 = vadd.f32 %v3186_v59, %v3053_v52 }
 0x913   :  { %v3203_v27 = vadd.f32 %v3158_v18, %v5447_v43  ;;  %v3204_v38 = vadd.f32 %v3187_v26, %v5447_v43  ;;  %v3474_v26 = vld [vmem:[#allocation5 + $0xc0] sm:$0x1f] }
 0x915   :  { %v3219_v56 = vmax.f32 %v3203_v27, 0.0  ;;  %v3220_v39 = vmax.f32 %v3204_v38, 0.0 }
 0x917   :  { %3291 = vmatpush.msra.mxu2 %v3219_v56  ;;  %3320 = vmatpush.msra.mxu3 %v3220_v39 }
 0x919   :  { %3292 = vmatpush.msra.mxu2 %v3215_v31  ;;  %3321 = vmatpush.msra.mxu3 %v3216_v58 }
 0x91b   :  { %3293 = vmatpush.msra.mxu2 %v3211_v25  ;;  %3322 = vmatpush.msra.mxu3 %v3212_v8 }
 0x91d   :  { %3294 = vmatpush.msra.mxu2 %v3207_v37  ;;  %3323 = vmatpush.msra.mxu3 %v3208_v7 }
 0x91e   :  { %4996 = vmatmul.msk.f32.vlgmr.msra.gmra.mxu2 %vm433_vm4, %v5485_v42  ;;  %5000 = vmatmul.msk.f32.vlgmr.msra.gmra.mxu3 %vm433_vm4, %v5485_v42 }
 0x926   :  { %4997 = vmatmul.msk.f32.gmra.mxu2 %vm433_vm4, %v5493_v53  ;;  %5001 = vmatmul.msk.f32.gmra.mxu3 %vm433_vm4, %v5493_v53 }
 0x92e   :  { %4998 = vmatmul.msk.f32.gmra.mxu2 %vm433_vm4, %v5503_v54  ;;  %5002 = vmatmul.msk.f32.gmra.mxu3 %vm433_vm4, %v5503_v54 }
 0x936   :  { %4999 = vmatmul.msk.f32.gmra.mxu2 %vm433_vm4, %v5513_v55  ;;  %5003 = vmatmul.msk.f32.gmra.mxu3 %vm433_vm4, %v5513_v55 }
 0x959   :  { %v3238_v1 = vpop.f32.mrf.mxu0  ;;  %v3267_v40 = vpop.f32.mrf.mxu1 }
 0x95a   :  { %v3239_v51 = vadd.f32 %v3238_v1, %v5538_v22  ;;  %v3268_v57 = vadd.f32 %v3267_v40, %v5538_v22 }
 0x95c   :  { %v3337_v15 = vmax.f32 %v3239_v51, 0.0  ;;  %v3338_v18 = vmax.f32 %v3268_v57, 0.0  ;;  %v3472_v51 = vld [vmem:[#allocation2 + $0x68] sm:$0x77] }
 0x95d   :  { %3610 = vst [vmem:[#allocation1 + $0x10] ss:$2 sm:$0xff] %v3472_v51 }
 0x961   :  { %v3241_v47 = vpop.f32.mrf.mxu0  ;;  %v3270_v30 = vpop.f32.mrf.mxu1 }
 0x962   :  { %v3242_v36 = vadd.f32 %v3241_v47, %v5532_v11  ;;  %v3271_v3 = vadd.f32 %v3270_v30, %v5532_v11  ;;  %v6506_v47 = vld [vmem:[#allocation7] sm:$0xff] }
 0x964   :  { %v3341_v59 = vmax.f32 %v3242_v36, 0.0  ;;  %v3342_v61 = vmax.f32 %v3271_v3, 0.0  ;;  %v3477_v36 = vld [vmem:[#allocation5 + $0xd8] sm:$0x1f]  ;;  %v6518_v3 = vld [vmem:[#allocation7 + $0x8] sm:$0xff] }
 0x965   :  { %v3613_v57 = vld.sshfl [vmem:[#allocation1 + $0x10] sm:$0xff pattern:$0x75316420] }
 0x969   :  { %v3244_v4 = vpop.f32.mrf.mxu0  ;;  %v3273_v29 = vpop.f32.mrf.mxu1 }
 0x96a   :  { %v3245_v9 = vadd.f32 %v3244_v4, %v5529_v10  ;;  %v3274_v34 = vadd.f32 %v3273_v29, %v5529_v10 }
 0x96c   :  { %v3345_v23 = vmax.f32 %v3245_v9, 0.0  ;;  %v3346_v35 = vmax.f32 %v3274_v34, 0.0 }
 0x971   :  { %v3247_v48 = vpop.f32.mrf.mxu0  ;;  %v3276_v44 = vpop.f32.mrf.mxu1 }
 0x972   :  { %v3248_v52 = vadd.f32 %v3247_v48, %v5527_v63  ;;  %v3277_v24 = vadd.f32 %v3276_v44, %v5527_v63 }
 0x974   :  { %v3349_v16 = vmax.f32 %v3248_v52, 0.0  ;;  %v3350_v50 = vmax.f32 %v3277_v24, 0.0  ;;  %v3476_v24 = vld [vmem:[#allocation5 + $0xd0] sm:$0x1f] }
 0x976   :  { %3365 = vmatpush.msrb.mxu0 %v3349_v16  ;;  %3391 = vmatpush.msrb.mxu1 %v3350_v50  ;;  %v6530_v16 = vld [vmem:[#allocation7 + $0x10] sm:$0xff]  ;;  %v6540_v50 = vld [vmem:[#allocation7 + $0x18] sm:$0xff] }
 0x978   :  { %3366 = vmatpush.msrb.mxu0 %v3345_v23  ;;  %3392 = vmatpush.msrb.mxu1 %v3346_v35  ;;  %v3614_v23 = vld.sshfl [vmem:[#allocation1 + $0x18] sm:$0xff pattern:$0x75316420] }
 0x97a   :  { %3367 = vmatpush.msrb.mxu0 %v3341_v59  ;;  %3393 = vmatpush.msrb.mxu1 %v3342_v61 }
 0x97c   :  { %3368 = vmatpush.msrb.mxu0 %v3337_v15  ;;  %3394 = vmatpush.msrb.mxu1 %v3338_v18 }
 0x97d   :  { %5004 = vmatmul.msk.f32.vlgmr.msrb.gmra.mxu0 %vm433_vm4, %v5544_v28  ;;  %5008 = vmatmul.msk.f32.vlgmr.msrb.gmra.mxu1 %vm433_vm4, %v5544_v28 }
 0x97e   :  { %5020 = vmatpush.msk.msra.mxu0 %vm89_vm0, %v3474_v26  ;;  %5025 = vmatpush.msk.msra.mxu1 %vm89_vm0, %v3475_v6 }
 0x980   :  { %5040 = vmatpush.msk.msrb.mxu0 %vm236_vm2, %v3611_v33  ;;  %5045 = vmatpush.msk.msrb.mxu1 %vm236_vm2, %v3612_v32 }
 0x985   :  { %5005 = vmatmul.msk.f32.gmra.mxu0 %vm433_vm4, %v5560_v2  ;;  %5009 = vmatmul.msk.f32.gmra.mxu1 %vm433_vm4, %v5560_v2 }
 0x98d   :  { %5006 = vmatmul.msk.f32.gmra.mxu0 %vm433_vm4, %v5570_v13  ;;  %5010 = vmatmul.msk.f32.gmra.mxu1 %vm433_vm4, %v5570_v13 }
 0x995   :  { %5007 = vmatmul.msk.f32.gmra.mxu0 %vm433_vm4, %v5582_v14  ;;  %5011 = vmatmul.msk.f32.gmra.mxu1 %vm433_vm4, %v5582_v14 }
 0x99d   :  { %5021 = vmatmul.msk.f32.vlgmr.msra.gmra.mxu0 %vm80_vm1, %v5355_v12  ;;  %5026 = vmatmul.msk.f32.vlgmr.msra.gmra.mxu1 %vm80_vm1, %v5355_v12 }
 0x9a1   :  { %v3296_v27 = vpop.f32.mrf.mxu2  ;;  %v3325_v38 = vpop.f32.mrf.mxu3 }
 0x9a2   :  { %v3297_v30 = vadd.f32 %v3296_v27, %v5538_v22  ;;  %v3326_v4 = vadd.f32 %v3325_v38, %v5538_v22 }
 0x9a4   :  { %v3339_v34 = vmax.f32 %v3297_v30, 0.0  ;;  %v3340_v52 = vmax.f32 %v3326_v4, 0.0 }
 0x9a5   :  { %5022 = vmatmul.msk.f32.gmra.mxu0 %vm80_vm1, %v5369_v17  ;;  %5027 = vmatmul.msk.f32.gmra.mxu1 %vm80_vm1, %v5369_v17 }
 0x9a9   :  { %v3299_v41 = vpop.f32.mrf.mxu2  ;;  %v3328_v45 = vpop.f32.mrf.mxu3 }
 0x9aa   :  { %v3300_v37 = vadd.f32 %v3299_v41, %v5532_v11  ;;  %v3329_v7 = vadd.f32 %v3328_v45, %v5532_v11 }
 0x9ac   :  { %v3343_v44 = vmax.f32 %v3300_v37, 0.0  ;;  %v3344_v9 = vmax.f32 %v3329_v7, 0.0 }
 0x9ad   :  { %5023 = vmatmul.msk.f32.gmra.mxu0 %vm80_vm1, %v5379_v19  ;;  %5028 = vmatmul.msk.f32.gmra.mxu1 %vm80_vm1, %v5379_v19 }
 0x9b1   :  { %v3302_v56 = vpop.f32.mrf.mxu2  ;;  %v3331_v39 = vpop.f32.mrf.mxu3 }
 0x9b2   :  { %v3303_v31 = vadd.f32 %v3302_v56, %v5529_v10  ;;  %v3332_v58 = vadd.f32 %v3331_v39, %v5529_v10 }
 0x9b4   :  { %v3347_v29 = vmax.f32 %v3303_v31, 0.0  ;;  %v3348_v48 = vmax.f32 %v3332_v58, 0.0 }
 0x9b5   :  { %5024 = vmatmul.msk.f32.gmra.mxu0 %vm80_vm1, %v5394_v20  ;;  %5029 = vmatmul.msk.f32.gmra.mxu1 %vm80_vm1, %v5394_v20 }
 0x9b9   :  { %v3305_v60 = vpop.f32.mrf.mxu2  ;;  %v3334_v46 = vpop.f32.mrf.mxu3 }
 0x9ba   :  { %v3306_v25 = vadd.f32 %v3305_v60, %v5527_v63  ;;  %v3335_v8 = vadd.f32 %v3334_v46, %v5527_v63 }
 0x9bc   :  { %v3351_v1 = vmax.f32 %v3306_v25, 0.0  ;;  %v3352_v40 = vmax.f32 %v3335_v8, 0.0 }
 0x9bd   :  { %5041 = vmatmul.msk.f32.vlgmr.msrb.gmra.mxu0 %vm227_vm3, %v6506_v47  ;;  %5046 = vmatmul.msk.f32.vlgmr.msrb.gmra.mxu1 %vm227_vm3, %v6506_v47 }
 0x9be   :  { %3417 = vmatpush.msrb.mxu2 %v3351_v1  ;;  %3443 = vmatpush.msrb.mxu3 %v3352_v40 }
 0x9c0   :  { %3418 = vmatpush.msrb.mxu2 %v3347_v29  ;;  %3444 = vmatpush.msrb.mxu3 %v3348_v48 }
 0x9c2   :  { %3419 = vmatpush.msrb.mxu2 %v3343_v44  ;;  %3445 = vmatpush.msrb.mxu3 %v3344_v9 }
 0x9c4   :  { %3420 = vmatpush.msrb.mxu2 %v3339_v34  ;;  %3446 = vmatpush.msrb.mxu3 %v3340_v52 }
 0x9c5   :  { %5012 = vmatmul.msk.f32.vlgmr.msrb.gmra.mxu2 %vm433_vm4, %v5544_v28  ;;  %5016 = vmatmul.msk.f32.vlgmr.msrb.gmra.mxu3 %vm433_vm4, %v5544_v28 }
 0x9c6   :  { %5042 = vmatmul.msk.f32.gmra.mxu0 %vm227_vm3, %v6518_v3  ;;  %5047 = vmatmul.msk.f32.gmra.mxu1 %vm227_vm3, %v6518_v3 }
 0x9c7   :  { %5030 = vmatpush.msk.msra.mxu2 %vm89_vm0, %v3476_v24  ;;  %5035 = vmatpush.msk.msra.mxu3 %vm89_vm0, %v3477_v36 }
 0x9c9   :  { %5050 = vmatpush.msk.msrb.mxu2 %vm236_vm2, %v3613_v57  ;;  %5055 = vmatpush.msk.msrb.mxu3 %vm236_vm2, %v3614_v23 }
 0x9cd   :  { %5013 = vmatmul.msk.f32.gmra.mxu2 %vm433_vm4, %v5560_v2  ;;  %5017 = vmatmul.msk.f32.gmra.mxu3 %vm433_vm4, %v5560_v2 }
 0x9ce   :  { %5043 = vmatmul.msk.f32.gmra.mxu0 %vm227_vm3, %v6530_v16  ;;  %5048 = vmatmul.msk.f32.gmra.mxu1 %vm227_vm3, %v6530_v16 }
 0x9d5   :  { %5014 = vmatmul.msk.f32.gmra.mxu2 %vm433_vm4, %v5570_v13  ;;  %5018 = vmatmul.msk.f32.gmra.mxu3 %vm433_vm4, %v5570_v13 }
 0x9d6   :  { %5044 = vmatmul.msk.f32.gmra.mxu0 %vm227_vm3, %v6540_v50  ;;  %5049 = vmatmul.msk.f32.gmra.mxu1 %vm227_vm3, %v6540_v50 }
 0x9dd   :  { %5015 = vmatmul.msk.f32.gmra.mxu2 %vm433_vm4, %v5582_v14  ;;  %5019 = vmatmul.msk.f32.gmra.mxu3 %vm433_vm4, %v5582_v14 }
 0x9e5   :  { %5031 = vmatmul.msk.f32.vlgmr.msra.gmra.mxu2 %vm80_vm1, %v5355_v12  ;;  %5036 = vmatmul.msk.f32.vlgmr.msra.gmra.mxu3 %vm80_vm1, %v5355_v12 }
 0x9ed   :  { %5032 = vmatmul.msk.f32.gmra.mxu2 %vm80_vm1, %v5369_v17  ;;  %5037 = vmatmul.msk.f32.gmra.mxu3 %vm80_vm1, %v5369_v17 }
 0x9f5   :  { %5033 = vmatmul.msk.f32.gmra.mxu2 %vm80_vm1, %v5379_v19  ;;  %5038 = vmatmul.msk.f32.gmra.mxu3 %vm80_vm1, %v5379_v19 }
 0x9fa   :  { %v3370_v35 = vpop.f32.mrf.mxu0  ;;  %v3396_v59 = vpop.f32.mrf.mxu1 }
 0x9fb   :  { %v3397_v61 = vadd.f32 %v3396_v59, %v5664_v0  ;;  %v3371_v15 = vadd.f32 %v3370_v35, %v5664_v0 }
 0x9fd   :  { %v3461_v18 = vrot.slane %v3397_v61, 4  ;;  %5034 = vmatmul.msk.f32.gmra.mxu2 %vm80_vm1, %v5394_v20  ;;  %5039 = vmatmul.msk.f32.gmra.mxu3 %vm80_vm1, %v5394_v20 }
 0x9ff   :  { %v3463_v26 = vsel %vm713_vm5, %v3371_v15, %v3461_v18 }
 0xa00   :  { %3468 = vst [vmem:[#allocation8 + $0x50] sm:$0x77] %v3463_v26 }
 0xa02   :  { %v3373_v6 = vpop.f32.mrf.mxu0  ;;  %v3399_v21 = vpop.f32.mrf.mxu1 }
 0xa05   :  { %5051 = vmatmul.msk.f32.vlgmr.msrb.gmra.mxu2 %vm227_vm3, %v6506_v47  ;;  %5056 = vmatmul.msk.f32.vlgmr.msrb.gmra.mxu3 %vm227_vm3, %v6506_v47 }
 0xa0a   :  { %v3375_v33 = vpop.f32.mrf.mxu0  ;;  %v3401_v32 = vpop.f32.mrf.mxu1 }
 0xa0d   :  { %5052 = vmatmul.msk.f32.gmra.mxu2 %vm227_vm3, %v6518_v3  ;;  %5057 = vmatmul.msk.f32.gmra.mxu3 %vm227_vm3, %v6518_v3 }
 0xa12   :  { %v3377_v27 = vpop.f32.mrf.mxu0  ;;  %v3403_v38 = vpop.f32.mrf.mxu1 }
 0xa15   :  { %5053 = vmatmul.msk.f32.gmra.mxu2 %vm227_vm3, %v6530_v16  ;;  %5058 = vmatmul.msk.f32.gmra.mxu3 %vm227_vm3, %v6530_v16 }
 0xa1a   :  { %v3507_v41 = vpop.f32.mrf.mxu0  ;;  %v3536_v45 = vpop.f32.mrf.mxu1 }
 0xa1d   :  { %5054 = vmatmul.msk.f32.gmra.mxu2 %vm227_vm3, %v6540_v50  ;;  %5059 = vmatmul.msk.f32.gmra.mxu3 %vm227_vm3, %v6540_v50 }
 0xa22   :  { %v3510_v56 = vpop.f32.mrf.mxu0  ;;  %v3539_v39 = vpop.f32.mrf.mxu1 }
 0xa2a   :  { %v3513_v60 = vpop.f32.mrf.mxu0  ;;  %v3542_v46 = vpop.f32.mrf.mxu1 }
 0xa32   :  { %v3516_v31 = vpop.f32.mrf.mxu0  ;;  %v3545_v58 = vpop.f32.mrf.mxu1 }
 0xa3a   :  { %v3640_v25 = vpop.f32.mrf.mxu0  ;;  %v3669_v8 = vpop.f32.mrf.mxu1 }
 0xa3b   :  { %v3641_v15 = vadd.f32 %v3640_v25, %v3507_v41  ;;  %v3670_v18 = vadd.f32 %v3669_v8, %v3536_v45 }
 0xa3d   :  { %v3740_v41 = vadd.f32 %v3670_v18, %v5465_v5 }
 0xa43   :  { %v3643_v37 = vpop.f32.mrf.mxu0  ;;  %v3672_v7 = vpop.f32.mrf.mxu1 }
 0xa44   :  { %v3644_v23 = vadd.f32 %v3643_v37, %v3510_v56  ;;  %v3673_v35 = vadd.f32 %v3672_v7, %v3539_v39  ;;  %v3756_v37 = vmax.f32 %v3740_v41, 0.0 }
 0xa46   :  { %v3743_v32 = vadd.f32 %v3644_v23, %v5459_v62  ;;  %v3744_v27 = vadd.f32 %v3673_v35, %v5459_v62 }
 0xa48   :  { %v3422_v1 = vpop.f32.mrf.mxu2  ;;  %v3448_v40 = vpop.f32.mrf.mxu3  ;;  %v3760_v25 = vmax.f32 %v3744_v27, 0.0 }
 0xa49   :  { %v3449_v30 = vadd.f32 %v3448_v40, %v5664_v0  ;;  %v3423_v4 = vadd.f32 %v3422_v1, %v5664_v0 }
 0xa4b   :  { %v3462_v29 = vrot.slane %v3449_v30, 4  ;;  %v3646_v48 = vpop.f32.mrf.mxu0  ;;  %v3675_v44 = vpop.f32.mrf.mxu1 }
 0xa4c   :  { %v3647_v24 = vadd.f32 %v3646_v48, %v3513_v60  ;;  %v3676_v36 = vadd.f32 %v3675_v44, %v3542_v46  ;;  %v3739_v46 = vadd.f32 %v3641_v15, %v5465_v5 }
 0xa4d   :  { %v3464_v9 = vsel %vm713_vm5, %v3423_v4, %v3462_v29 }
 0xa4e   :  { %3469 = vst [vmem:[#allocation8 + $0x58] sm:$0x77] %v3464_v9  ;;  %v3747_v26 = vadd.f32 %v3647_v24, %v5452_v49  ;;  %v3748_v6 = vadd.f32 %v3676_v36, %v5452_v49  ;;  %v3755_v8 = vmax.f32 %v3739_v46, 0.0 }
 0xa50   :  { %v3425_v34 = vpop.f32.mrf.mxu2  ;;  %v3451_v52 = vpop.f32.mrf.mxu3  ;;  %v3763_v45 = vmax.f32 %v3747_v26, 0.0 }
 0xa53   :  { %v3649_v51 = vpop.f32.mrf.mxu0  ;;  %v3678_v57 = vpop.f32.mrf.mxu1 }
 0xa54   :  { %v3650_v59 = vadd.f32 %v3649_v51, %v3516_v31  ;;  %v3679_v61 = vadd.f32 %v3678_v57, %v3545_v58  ;;  %v3764_v31 = vmax.f32 %v3748_v6, 0.0  ;;  %v3759_v58 = vmax.f32 %v3743_v32, 0.0 }
 0xa56   :  { %v3751_v21 = vadd.f32 %v3650_v59, %v5447_v43  ;;  %v3752_v33 = vadd.f32 %v3679_v61, %v5447_v43 }
 0xa58   :  { %v3767_v38 = vmax.f32 %v3751_v21, 0.0  ;;  %v3768_v60 = vmax.f32 %v3752_v33, 0.0  ;;  %v3427_v56 = vpop.f32.mrf.mxu2  ;;  %v3453_v39 = vpop.f32.mrf.mxu3 }
 0xa5a   :  { %3783 = vmatpush.msra.mxu0 %v3767_v38  ;;  %3812 = vmatpush.msra.mxu1 %v3768_v60 }
 0xa5c   :  { %3784 = vmatpush.msra.mxu0 %v3763_v45  ;;  %3813 = vmatpush.msra.mxu1 %v3764_v31 }
 0xa5e   :  { %3785 = vmatpush.msra.mxu0 %v3759_v58  ;;  %3814 = vmatpush.msra.mxu1 %v3760_v25 }
 0xa60   :  { %3786 = vmatpush.msra.mxu0 %v3755_v8  ;;  %3815 = vmatpush.msra.mxu1 %v3756_v37  ;;  %v3429_v7 = vpop.f32.mrf.mxu2  ;;  %v3455_v1 = vpop.f32.mrf.mxu3 }
 0xa61   :  { %5060 = vmatmul.msk.f32.vlgmr.msra.gmra.mxu0 %vm433_vm4, %v5485_v42  ;;  %5064 = vmatmul.msk.f32.vlgmr.msra.gmra.mxu1 %vm433_vm4, %v5485_v42 }
 0xa68   :  { %v3565_v40 = vpop.f32.mrf.mxu2  ;;  %v3594_v30 = vpop.f32.mrf.mxu3 }
 0xa69   :  { %5061 = vmatmul.msk.f32.gmra.mxu0 %vm433_vm4, %v5493_v53  ;;  %5065 = vmatmul.msk.f32.gmra.mxu1 %vm433_vm4, %v5493_v53 }
 0xa70   :  { %v3568_v4 = vpop.f32.mrf.mxu2  ;;  %v3597_v29 = vpop.f32.mrf.mxu3 }
 0xa71   :  { %5062 = vmatmul.msk.f32.gmra.mxu0 %vm433_vm4, %v5503_v54  ;;  %5066 = vmatmul.msk.f32.gmra.mxu1 %vm433_vm4, %v5503_v54 }
 0xa78   :  { %v3571_v48 = vpop.f32.mrf.mxu2  ;;  %v3600_v44 = vpop.f32.mrf.mxu3 }
 0xa79   :  { %5063 = vmatmul.msk.f32.gmra.mxu0 %vm433_vm4, %v5513_v55  ;;  %5067 = vmatmul.msk.f32.gmra.mxu1 %vm433_vm4, %v5513_v55 }
 0xa80   :  { %v3574_v9 = vpop.f32.mrf.mxu2  ;;  %v3603_v34 = vpop.f32.mrf.mxu3 }
 0xa88   :  { %v3698_v52 = vpop.f32.mrf.mxu2  ;;  %v3727_v24 = vpop.f32.mrf.mxu3 }
 0xa89   :  { %v3699_v33 = vadd.f32 %v3698_v52, %v3565_v40  ;;  %v3728_v32 = vadd.f32 %v3727_v24, %v3594_v30 }
 0xa8b   :  { %v3741_v31 = vadd.f32 %v3699_v33, %v5465_v5  ;;  %v3742_v58 = vadd.f32 %v3728_v32, %v5465_v5 }
 0xa8d   :  { %v3757_v1 = vmax.f32 %v3741_v31, 0.0  ;;  %v3758_v40 = vmax.f32 %v3742_v58, 0.0 }
 0xa90   :  { %v3701_v36 = vpop.f32.mrf.mxu2  ;;  %v3730_v51 = vpop.f32.mrf.mxu3 }
 0xa91   :  { %v3702_v18 = vadd.f32 %v3701_v36, %v3568_v4  ;;  %v3731_v26 = vadd.f32 %v3730_v51, %v3597_v29 }
 0xa93   :  { %v3745_v39 = vadd.f32 %v3702_v18, %v5459_v62  ;;  %v3746_v46 = vadd.f32 %v3731_v26, %v5459_v62 }
 0xa95   :  { %v3761_v37 = vmax.f32 %v3745_v39, 0.0  ;;  %v3762_v7 = vmax.f32 %v3746_v46, 0.0 }
 0xa98   :  { %v3704_v57 = vpop.f32.mrf.mxu2  ;;  %v3733_v23 = vpop.f32.mrf.mxu3 }
 0xa99   :  { %v3705_v35 = vadd.f32 %v3704_v57, %v3571_v48  ;;  %v3734_v59 = vadd.f32 %v3733_v23, %v3600_v44 }
 0xa9b   :  { %v3749_v27 = vadd.f32 %v3705_v35, %v5452_v49  ;;  %v3750_v38 = vadd.f32 %v3734_v59, %v5452_v49 }
 0xa9d   :  { %v3765_v25 = vmax.f32 %v3749_v27, 0.0  ;;  %v3766_v8 = vmax.f32 %v3750_v38, 0.0  ;;  %v4024_v38 = vld [vmem:[#allocation5 + $0xe0] sm:$0x1f] }
 0xaa0   :  { %v3707_v61 = vpop.f32.mrf.mxu2  ;;  %v3736_v15 = vpop.f32.mrf.mxu3 }
 0xaa1   :  { %v3708_v6 = vadd.f32 %v3707_v61, %v3574_v9  ;;  %v3737_v21 = vadd.f32 %v3736_v15, %v3603_v34 }
 0xaa3   :  { %v3753_v60 = vadd.f32 %v3708_v6, %v5447_v43  ;;  %v3754_v56 = vadd.f32 %v3737_v21, %v5447_v43 }
 0xaa5   :  { %v3769_v41 = vmax.f32 %v3753_v60, 0.0  ;;  %v3770_v45 = vmax.f32 %v3754_v56, 0.0  ;;  %v4025_v60 = vld [vmem:[#allocation5 + $0xe8] sm:$0x1f]  ;;  %v4021_v56 = vld [vmem:[#allocation2 + $0x70] sm:$0x77] }
 0xaa6   :  { %4158 = vst [vmem:[#allocation1] ss:$2 sm:$0xff] %v4021_v56 }
 0xaa7   :  { %3841 = vmatpush.msra.mxu2 %v3769_v41  ;;  %3870 = vmatpush.msra.mxu3 %v3770_v45 }
 0xaa9   :  { %3842 = vmatpush.msra.mxu2 %v3765_v25  ;;  %3871 = vmatpush.msra.mxu3 %v3766_v8 }
 0xaab   :  { %3843 = vmatpush.msra.mxu2 %v3761_v37  ;;  %3872 = vmatpush.msra.mxu3 %v3762_v7 }
 0xaad   :  { %3844 = vmatpush.msra.mxu2 %v3757_v1  ;;  %3873 = vmatpush.msra.mxu3 %v3758_v40  ;;  %v4161_v39 = vld.sshfl [vmem:[#allocation1] sm:$0xff pattern:$0x75316420]  ;;  %v4162_v46 = vld.sshfl [vmem:[#allocation1 + $0x8] sm:$0xff pattern:$0x75316420] }
 0xaae   :  { %5068 = vmatmul.msk.f32.vlgmr.msra.gmra.mxu2 %vm433_vm4, %v5485_v42  ;;  %5072 = vmatmul.msk.f32.vlgmr.msra.gmra.mxu3 %vm433_vm4, %v5485_v42 }
 0xab6   :  { %5069 = vmatmul.msk.f32.gmra.mxu2 %vm433_vm4, %v5493_v53  ;;  %5073 = vmatmul.msk.f32.gmra.mxu3 %vm433_vm4, %v5493_v53 }
 0xabe   :  { %5070 = vmatmul.msk.f32.gmra.mxu2 %vm433_vm4, %v5503_v54  ;;  %5074 = vmatmul.msk.f32.gmra.mxu3 %vm433_vm4, %v5503_v54 }
 0xac6   :  { %5071 = vmatmul.msk.f32.gmra.mxu2 %vm433_vm4, %v5513_v55  ;;  %5075 = vmatmul.msk.f32.gmra.mxu3 %vm433_vm4, %v5513_v55 }
 0xade   :  { %v3788_v30 = vpop.f32.mrf.mxu0  ;;  %v3817_v4 = vpop.f32.mrf.mxu1 }
 0xadf   :  { %v3789_v15 = vadd.f32 %v3788_v30, %v5538_v22  ;;  %v3818_v18 = vadd.f32 %v3817_v4, %v5538_v22 }
 0xae1   :  { %v3887_v32 = vmax.f32 %v3789_v15, 0.0  ;;  %v3888_v27 = vmax.f32 %v3818_v18, 0.0  ;;  %v4022_v15 = vld [vmem:[#allocation2 + $0x78] sm:$0x77] }
 0xae2   :  { %4160 = vst [vmem:[#allocation1 + $0x10] ss:$2 sm:$0xff] %v4022_v15 }
 0xae6   :  { %v3791_v29 = vpop.f32.mrf.mxu0  ;;  %v3820_v48 = vpop.f32.mrf.mxu1 }
 0xae7   :  { %v3792_v23 = vadd.f32 %v3791_v29, %v5532_v11  ;;  %v3821_v35 = vadd.f32 %v3820_v48, %v5532_v11 }
 0xae9   :  { %v3891_v21 = vmax.f32 %v3792_v23, 0.0  ;;  %v3892_v33 = vmax.f32 %v3821_v35, 0.0  ;;  %v4163_v18 = vld.sshfl [vmem:[#allocation1 + $0x10] sm:$0xff pattern:$0x75316420] }
 0xaee   :  { %v3794_v44 = vpop.f32.mrf.mxu0  ;;  %v3823_v9 = vpop.f32.mrf.mxu1 }
 0xaef   :  { %v3795_v24 = vadd.f32 %v3794_v44, %v5529_v10  ;;  %v3824_v36 = vadd.f32 %v3823_v9, %v5529_v10 }
 0xaf1   :  { %v3895_v26 = vmax.f32 %v3795_v24, 0.0  ;;  %v3896_v6 = vmax.f32 %v3824_v36, 0.0 }
 0xaf6   :  { %v3797_v34 = vpop.f32.mrf.mxu0  ;;  %v3826_v52 = vpop.f32.mrf.mxu1 }
 0xaf7   :  { %v3798_v51 = vadd.f32 %v3797_v34, %v5527_v63  ;;  %v3827_v57 = vadd.f32 %v3826_v52, %v5527_v63 }
 0xaf9   :  { %v3899_v59 = vmax.f32 %v3798_v51, 0.0  ;;  %v3900_v61 = vmax.f32 %v3827_v57, 0.0 }
 0xafb   :  { %3915 = vmatpush.msrb.mxu0 %v3899_v59  ;;  %3941 = vmatpush.msrb.mxu1 %v3900_v61  ;;  %v4026_v59 = vld [vmem:[#allocation5 + $0xf0] sm:$0x1f]  ;;  %v4027_v61 = vld [vmem:[#allocation5 + $0xf8] sm:$0x1f] }
 0xafd   :  { %3916 = vmatpush.msrb.mxu0 %v3895_v26  ;;  %3942 = vmatpush.msrb.mxu1 %v3896_v6  ;;  %v4164_v26 = vld.sshfl [vmem:[#allocation1 + $0x18] sm:$0xff pattern:$0x75316420] }
 0xaff   :  { %3917 = vmatpush.msrb.mxu0 %v3891_v21  ;;  %3943 = vmatpush.msrb.mxu1 %v3892_v33 }
 0xb01   :  { %3918 = vmatpush.msrb.mxu0 %v3887_v32  ;;  %3944 = vmatpush.msrb.mxu1 %v3888_v27 }
 0xb02   :  { %5076 = vmatmul.msk.f32.vlgmr.msrb.gmra.mxu0 %vm433_vm4, %v5544_v28  ;;  %5080 = vmatmul.msk.f32.vlgmr.msrb.gmra.mxu1 %vm433_vm4, %v5544_v28 }
 0xb03   :  { %5092 = vmatpush.msk.msra.mxu0 %vm89_vm0, %v4024_v38  ;;  %5097 = vmatpush.msk.msra.mxu1 %vm89_vm0, %v4025_v60 }
 0xb05   :  { %5112 = vmatpush.msk.msrb.mxu0 %vm236_vm2, %v4161_v39  ;;  %5117 = vmatpush.msk.msrb.mxu1 %vm236_vm2, %v4162_v46 }
 0xb0a   :  { %5077 = vmatmul.msk.f32.gmra.mxu0 %vm433_vm4, %v5560_v2  ;;  %5081 = vmatmul.msk.f32.gmra.mxu1 %vm433_vm4, %v5560_v2 }
 0xb12   :  { %5078 = vmatmul.msk.f32.gmra.mxu0 %vm433_vm4, %v5570_v13  ;;  %5082 = vmatmul.msk.f32.gmra.mxu1 %vm433_vm4, %v5570_v13 }
 0xb1a   :  { %5079 = vmatmul.msk.f32.gmra.mxu0 %vm433_vm4, %v5582_v14  ;;  %5083 = vmatmul.msk.f32.gmra.mxu1 %vm433_vm4, %v5582_v14 }
 0xb22   :  { %5093 = vmatmul.msk.f32.vlgmr.msra.gmra.mxu0 %vm80_vm1, %v5355_v12  ;;  %5098 = vmatmul.msk.f32.vlgmr.msra.gmra.mxu1 %vm80_vm1, %v5355_v12 }
 0xb2a   :  { %5094 = vmatmul.msk.f32.gmra.mxu0 %vm80_vm1, %v5369_v17  ;;  %5099 = vmatmul.msk.f32.gmra.mxu1 %vm80_vm1, %v5369_v17 }
 0xb31   :  { %v3846_v41 = vpop.f32.mrf.mxu2  ;;  %v3875_v45 = vpop.f32.mrf.mxu3 }
 0xb32   :  { %5095 = vmatmul.msk.f32.gmra.mxu0 %vm80_vm1, %v5379_v19  ;;  %5100 = vmatmul.msk.f32.gmra.mxu1 %vm80_vm1, %v5379_v19  ;;  %v3847_v24 = vadd.f32 %v3846_v41, %v5538_v22  ;;  %v3876_v36 = vadd.f32 %v3875_v45, %v5538_v22 }
 0xb34   :  { %v3889_v23 = vmax.f32 %v3847_v24, 0.0  ;;  %v3890_v35 = vmax.f32 %v3876_v36, 0.0 }
 0xb39   :  { %v3849_v31 = vpop.f32.mrf.mxu2  ;;  %v3878_v58 = vpop.f32.mrf.mxu3 }
 0xb3a   :  { %5096 = vmatmul.msk.f32.gmra.mxu0 %vm80_vm1, %v5394_v20  ;;  %5101 = vmatmul.msk.f32.gmra.mxu1 %vm80_vm1, %v5394_v20  ;;  %v3850_v44 = vadd.f32 %v3849_v31, %v5532_v11  ;;  %v3879_v9 = vadd.f32 %v3878_v58, %v5532_v11 }
 0xb3c   :  { %v3893_v51 = vmax.f32 %v3850_v44, 0.0  ;;  %v3894_v57 = vmax.f32 %v3879_v9, 0.0 }
 0xb41   :  { %v3852_v25 = vpop.f32.mrf.mxu2  ;;  %v3881_v8 = vpop.f32.mrf.mxu3 }
 0xb42   :  { %5113 = vmatmul.msk.f32.vlgmr.msrb.gmra.mxu0 %vm227_vm3, %v6506_v47  ;;  %5118 = vmatmul.msk.f32.vlgmr.msrb.gmra.mxu1 %vm227_vm3, %v6506_v47  ;;  %v3853_v37 = vadd.f32 %v3852_v25, %v5529_v10  ;;  %v3882_v40 = vadd.f32 %v3881_v8, %v5529_v10 }
 0xb44   :  { %v3897_v34 = vmax.f32 %v3853_v37, 0.0  ;;  %v3898_v52 = vmax.f32 %v3882_v40, 0.0 }
 0xb49   :  { %v3855_v7 = vpop.f32.mrf.mxu2  ;;  %v3884_v1 = vpop.f32.mrf.mxu3 }
 0xb4a   :  { %v3856_v30 = vadd.f32 %v3855_v7, %v5527_v63  ;;  %v3885_v4 = vadd.f32 %v3884_v1, %v5527_v63  ;;  %5114 = vmatmul.msk.f32.gmra.mxu0 %vm227_vm3, %v6518_v3  ;;  %5119 = vmatmul.msk.f32.gmra.mxu1 %vm227_vm3, %v6518_v3 }
 0xb4c   :  { %v3901_v29 = vmax.f32 %v3856_v30, 0.0  ;;  %v3902_v48 = vmax.f32 %v3885_v4, 0.0 }
 0xb4e   :  { %3967 = vmatpush.msrb.mxu2 %v3901_v29  ;;  %3993 = vmatpush.msrb.mxu3 %v3902_v48 }
 0xb50   :  { %3968 = vmatpush.msrb.mxu2 %v3897_v34  ;;  %3994 = vmatpush.msrb.mxu3 %v3898_v52 }
 0xb52   :  { %5115 = vmatmul.msk.f32.gmra.mxu0 %vm227_vm3, %v6530_v16  ;;  %5120 = vmatmul.msk.f32.gmra.mxu1 %vm227_vm3, %v6530_v16 }
 0xb53   :  { %3969 = vmatpush.msrb.mxu2 %v3893_v51  ;;  %3995 = vmatpush.msrb.mxu3 %v3894_v57 }
 0xb55   :  { %3970 = vmatpush.msrb.mxu2 %v3889_v23  ;;  %3996 = vmatpush.msrb.mxu3 %v3890_v35 }
 0xb56   :  { %5084 = vmatmul.msk.f32.vlgmr.msrb.gmra.mxu2 %vm433_vm4, %v5544_v28  ;;  %5088 = vmatmul.msk.f32.vlgmr.msrb.gmra.mxu3 %vm433_vm4, %v5544_v28 }
 0xb57   :  { %5102 = vmatpush.msk.msra.mxu2 %vm89_vm0, %v4026_v59  ;;  %5107 = vmatpush.msk.msra.mxu3 %vm89_vm0, %v4027_v61 }
 0xb59   :  { %5122 = vmatpush.msk.msrb.mxu2 %vm236_vm2, %v4163_v18  ;;  %5127 = vmatpush.msk.msrb.mxu3 %vm236_vm2, %v4164_v26 }
 0xb5a   :  { %5116 = vmatmul.msk.f32.gmra.mxu0 %vm227_vm3, %v6540_v50  ;;  %5121 = vmatmul.msk.f32.gmra.mxu1 %vm227_vm3, %v6540_v50 }
 0xb5e   :  { %5085 = vmatmul.msk.f32.gmra.mxu2 %vm433_vm4, %v5560_v2  ;;  %5089 = vmatmul.msk.f32.gmra.mxu3 %vm433_vm4, %v5560_v2 }
 0xb66   :  { %5086 = vmatmul.msk.f32.gmra.mxu2 %vm433_vm4, %v5570_v13  ;;  %5090 = vmatmul.msk.f32.gmra.mxu3 %vm433_vm4, %v5570_v13 }
 0xb6e   :  { %5087 = vmatmul.msk.f32.gmra.mxu2 %vm433_vm4, %v5582_v14  ;;  %5091 = vmatmul.msk.f32.gmra.mxu3 %vm433_vm4, %v5582_v14 }
 0xb76   :  { %5103 = vmatmul.msk.f32.vlgmr.msra.gmra.mxu2 %vm80_vm1, %v5355_v12  ;;  %5108 = vmatmul.msk.f32.vlgmr.msra.gmra.mxu3 %vm80_vm1, %v5355_v12 }
 0xb7e   :  { %5104 = vmatmul.msk.f32.gmra.mxu2 %vm80_vm1, %v5369_v17  ;;  %5109 = vmatmul.msk.f32.gmra.mxu3 %vm80_vm1, %v5369_v17 }
 0xb7f   :  { %v3920_v6 = vpop.f32.mrf.mxu0  ;;  %v3946_v21 = vpop.f32.mrf.mxu1 }
 0xb80   :  { %v3947_v33 = vadd.f32 %v3946_v21, %v5664_v0  ;;  %v3921_v32 = vadd.f32 %v3920_v6, %v5664_v0 }
 0xb82   :  { %v4011_v27 = vrot.slane %v3947_v33, 4 }
 0xb84   :  { %v4013_v38 = vsel %vm713_vm5, %v3921_v32, %v4011_v27 }
 0xb85   :  { %4018 = vst [vmem:[#allocation8 + $0x60] sm:$0x77] %v4013_v38 }
 0xb86   :  { %5105 = vmatmul.msk.f32.gmra.mxu2 %vm80_vm1, %v5379_v19  ;;  %5110 = vmatmul.msk.f32.gmra.mxu3 %vm80_vm1, %v5379_v19 }
 0xb87   :  { %v3923_v12 = vpop.f32.mrf.mxu0  ;;  %v3949_v60 = vpop.f32.mrf.mxu1 }
 0xb8e   :  { %5106 = vmatmul.msk.f32.gmra.mxu2 %vm80_vm1, %v5394_v20  ;;  %5111 = vmatmul.msk.f32.gmra.mxu3 %vm80_vm1, %v5394_v20 }
 0xb8f   :  { %v3925_v17 = vpop.f32.mrf.mxu0  ;;  %v3951_v56 = vpop.f32.mrf.mxu1 }
 0xb96   :  { %5123 = vmatmul.msk.f32.vlgmr.msrb.gmra.mxu2 %vm227_vm3, %v6506_v47  ;;  %5128 = vmatmul.msk.f32.vlgmr.msrb.gmra.mxu3 %vm227_vm3, %v6506_v47 }
 0xb97   :  { %v3927_v39 = vpop.f32.mrf.mxu0  ;;  %v3953_v46 = vpop.f32.mrf.mxu1 }
 0xb9e   :  { %5124 = vmatmul.msk.f32.gmra.mxu2 %vm227_vm3, %v6518_v3  ;;  %5129 = vmatmul.msk.f32.gmra.mxu3 %vm227_vm3, %v6518_v3 }
 0xb9f   :  { %v4057_v19 = vpop.f32.mrf.mxu0  ;;  %v4086_v41 = vpop.f32.mrf.mxu1 }
 0xba6   :  { %5125 = vmatmul.msk.f32.gmra.mxu2 %vm227_vm3, %v6530_v16  ;;  %5130 = vmatmul.msk.f32.gmra.mxu3 %vm227_vm3, %v6530_v16 }
 0xba7   :  { %v4060_v20 = vpop.f32.mrf.mxu0  ;;  %v4089_v45 = vpop.f32.mrf.mxu1 }
 0xbae   :  { %5126 = vmatmul.msk.f32.gmra.mxu2 %vm227_vm3, %v6540_v50  ;;  %5131 = vmatmul.msk.f32.gmra.mxu3 %vm227_vm3, %v6540_v50 }
 0xbaf   :  { %v4063_v47 = vpop.f32.mrf.mxu0  ;;  %v4092_v31 = vpop.f32.mrf.mxu1 }
 0xbb7   :  { %v4066_v58 = vpop.f32.mrf.mxu0  ;;  %v4095_v3 = vpop.f32.mrf.mxu1 }
 0xbbf   :  { %v4190_v25 = vpop.f32.mrf.mxu0  ;;  %v4219_v8 = vpop.f32.mrf.mxu1 }
 0xbc0   :  { %v4191_v52 = vadd.f32 %v4190_v25, %v4057_v19  ;;  %v4220_v50 = vadd.f32 %v4219_v8, %v4086_v41 }
 0xbc2   :  { %v4289_v33 = vadd.f32 %v4191_v52, %v5465_v5  ;;  %v4290_v32 = vadd.f32 %v4220_v50, %v5465_v5 }
 0xbc4   :  { %v4305_v46 = vmax.f32 %v4289_v33, 0.0  ;;  %v4306_v19 = vmax.f32 %v4290_v32, 0.0 }
 0xbc7   :  { %v4193_v37 = vpop.f32.mrf.mxu0  ;;  %v4222_v7 = vpop.f32.mrf.mxu1 }
 0xbc8   :  { %v4194_v4 = vadd.f32 %v4193_v37, %v4060_v20  ;;  %v4223_v29 = vadd.f32 %v4222_v7, %v4089_v45 }
 0xbca   :  { %v4293_v61 = vadd.f32 %v4194_v4, %v5459_v62  ;;  %v4294_v15 = vadd.f32 %v4223_v29, %v5459_v62 }
 0xbcc   :  { %v4309_v60 = vmax.f32 %v4293_v61, 0.0  ;;  %v4310_v17 = vmax.f32 %v4294_v15, 0.0 }
 0xbcf   :  { %v4196_v1 = vpop.f32.mrf.mxu0  ;;  %v4225_v40 = vpop.f32.mrf.mxu1 }
 0xbd0   :  { %v4197_v30 = vadd.f32 %v4196_v1, %v4063_v47  ;;  %v4226_v16 = vadd.f32 %v4225_v40, %v4092_v31 }
 0xbd2   :  { %v4297_v24 = vadd.f32 %v4197_v30, %v5452_v49  ;;  %v4298_v57 = vadd.f32 %v4226_v16, %v5452_v49 }
 0xbd4   :  { %v4313_v27 = vmax.f32 %v4297_v24, 0.0  ;;  %v4314_v38 = vmax.f32 %v4298_v57, 0.0 }
 0xbd7   :  { %v4199_v48 = vpop.f32.mrf.mxu0  ;;  %v4228_v44 = vpop.f32.mrf.mxu1 }
 0xbd8   :  { %v4200_v9 = vadd.f32 %v4199_v48, %v4066_v58  ;;  %v4229_v34 = vadd.f32 %v4228_v44, %v4095_v3 }
 0xbd9   :  { %v3972_v36 = vpop.f32.mrf.mxu2  ;;  %v3998_v51 = vpop.f32.mrf.mxu3 }
 0xbda   :  { %v4301_v23 = vadd.f32 %v4200_v9, %v5447_v43  ;;  %v4302_v35 = vadd.f32 %v4229_v34, %v5447_v43  ;;  %v3999_v59 = vadd.f32 %v3998_v51, %v5664_v0  ;;  %v3973_v6 = vadd.f32 %v3972_v36, %v5664_v0 }
 0xbdc   :  { %v4317_v18 = vmax.f32 %v4301_v23, 0.0  ;;  %v4318_v26 = vmax.f32 %v4302_v35, 0.0  ;;  %v4012_v21 = vrot.slane %v3999_v59, 4 }
 0xbde   :  { %v4014_v12 = vsel %vm713_vm5, %v3973_v6, %v4012_v21  ;;  %4333 = vmatpush.msra.mxu0 %v4317_v18  ;;  %4362 = vmatpush.msra.mxu1 %v4318_v26 }
 0xbdf   :  { %4019 = vst [vmem:[#allocation8 + $0x68] sm:$0x77] %v4014_v12 }
 0xbe0   :  { %4334 = vmatpush.msra.mxu0 %v4313_v27  ;;  %4363 = vmatpush.msra.mxu1 %v4314_v38 }
 0xbe1   :  { %v3975_v56 = vpop.f32.mrf.mxu2  ;;  %v4001_v39 = vpop.f32.mrf.mxu3 }
 0xbe2   :  { %4335 = vmatpush.msra.mxu0 %v4309_v60  ;;  %4364 = vmatpush.msra.mxu1 %v4310_v17 }
 0xbe4   :  { %4336 = vmatpush.msra.mxu0 %v4305_v46  ;;  %4365 = vmatpush.msra.mxu1 %v4306_v19 }
 0xbe5   :  { %5132 = vmatmul.msk.f32.vlgmr.msra.gmra.mxu0 %vm433_vm4, %v5485_v42  ;;  %5136 = vmatmul.msk.f32.vlgmr.msra.gmra.mxu1 %vm433_vm4, %v5485_v42 }
 0xbe9   :  { %v3977_v41 = vpop.f32.mrf.mxu2  ;;  %v4003_v20 = vpop.f32.mrf.mxu3 }
 0xbed   :  { %5133 = vmatmul.msk.f32.gmra.mxu0 %vm433_vm4, %v5493_v53  ;;  %5137 = vmatmul.msk.f32.gmra.mxu1 %vm433_vm4, %v5493_v53 }
 0xbf1   :  { %v3979_v45 = vpop.f32.mrf.mxu2  ;;  %v4005_v47 = vpop.f32.mrf.mxu3 }
 0xbf5   :  { %5134 = vmatmul.msk.f32.gmra.mxu0 %vm433_vm4, %v5503_v54  ;;  %5138 = vmatmul.msk.f32.gmra.mxu1 %vm433_vm4, %v5503_v54 }
 0xbf9   :  { %v4115_v31 = vpop.f32.mrf.mxu2  ;;  %v4144_v58 = vpop.f32.mrf.mxu3 }
 0xbfd   :  { %5135 = vmatmul.msk.f32.gmra.mxu0 %vm433_vm4, %v5513_v55  ;;  %5139 = vmatmul.msk.f32.gmra.mxu1 %vm433_vm4, %v5513_v55 }
 0xc01   :  { %v4118_v3 = vpop.f32.mrf.mxu2  ;;  %v4147_v25 = vpop.f32.mrf.mxu3 }
 0xc09   :  { %v4121_v8 = vpop.f32.mrf.mxu2  ;;  %v4150_v37 = vpop.f32.mrf.mxu3 }
 0xc11   :  { %v4124_v7 = vpop.f32.mrf.mxu2  ;;  %v4153_v1 = vpop.f32.mrf.mxu3 }
 0xc19   :  { %v4248_v40 = vpop.f32.mrf.mxu2  ;;  %v4277_v30 = vpop.f32.mrf.mxu3 }
 0xc1a   :  { %v4249_v57 = vadd.f32 %v4248_v40, %v4115_v31  ;;  %v4278_v23 = vadd.f32 %v4277_v30, %v4144_v58 }
 0xc1c   :  { %v4291_v33 = vadd.f32 %v4249_v57, %v5465_v5  ;;  %v4292_v32 = vadd.f32 %v4278_v23, %v5465_v5 }
 0xc1e   :  { %v4307_v60 = vmax.f32 %v4291_v33, 0.0 }
 0xc21   :  { %v4251_v16 = vpop.f32.mrf.mxu2  ;;  %v4280_v4 = vpop.f32.mrf.mxu3 }
 0xc22   :  { %v4252_v50 = vadd.f32 %v4251_v16, %v4118_v3  ;;  %v4281_v24 = vadd.f32 %v4280_v4, %v4147_v25 }
 0xc24   :  { %v4295_v18 = vadd.f32 %v4252_v50, %v5459_v62  ;;  %v4296_v26 = vadd.f32 %v4281_v24, %v5459_v62 }
 0xc26   :  { %v4311_v12 = vmax.f32 %v4295_v18, 0.0 }
 0xc29   :  { %v4254_v29 = vpop.f32.mrf.mxu2  ;;  %v4283_v48 = vpop.f32.mrf.mxu3 }
 0xc2a   :  { %v4255_v44 = vadd.f32 %v4254_v29, %v4121_v8  ;;  %v4284_v9 = vadd.f32 %v4283_v48, %v4150_v37 }
 0xc2c   :  { %v4299_v35 = vadd.f32 %v4255_v44, %v5452_v49  ;;  %v4300_v59 = vadd.f32 %v4284_v9, %v5452_v49  ;;  %v4312_v49 = vmax.f32 %v4296_v26, 0.0 }
 0xc2e   :  { %v4315_v27 = vmax.f32 %v4299_v35, 0.0  ;;  %v4316_v38 = vmax.f32 %v4300_v59, 0.0 }
 0xc31   :  { %v4257_v34 = vpop.f32.mrf.mxu2  ;;  %v4286_v52 = vpop.f32.mrf.mxu3 }
 0xc32   :  { %v4258_v36 = vadd.f32 %v4257_v34, %v4124_v7  ;;  %v4287_v51 = vadd.f32 %v4286_v52, %v4153_v1 }
 0xc34   :  { %v4303_v61 = vadd.f32 %v4258_v36, %v5447_v43  ;;  %v4304_v15 = vadd.f32 %v4287_v51, %v5447_v43  ;;  %v4308_v43 = vmax.f32 %v4292_v32, 0.0 }
 0xc36   :  { %v4319_v6 = vmax.f32 %v4303_v61, 0.0  ;;  %v4320_v21 = vmax.f32 %v4304_v15, 0.0 }
 0xc38   :  { %4391 = vmatpush.msra.mxu2 %v4319_v6  ;;  %4420 = vmatpush.msra.mxu3 %v4320_v21 }
 0xc3a   :  { %4392 = vmatpush.msra.mxu2 %v4315_v27  ;;  %4421 = vmatpush.msra.mxu3 %v4316_v38 }
 0xc3c   :  { %4393 = vmatpush.msra.mxu2 %v4311_v12  ;;  %4422 = vmatpush.msra.mxu3 %v4312_v49 }
 0xc3e   :  { %4394 = vmatpush.msra.mxu2 %v4307_v60  ;;  %4423 = vmatpush.msra.mxu3 %v4308_v43 }
 0xc3f   :  { %5140 = vmatmul.msk.f32.vlgmr.msra.gmra.mxu2 %vm433_vm4, %v5485_v42  ;;  %5144 = vmatmul.msk.f32.vlgmr.msra.gmra.mxu3 %vm433_vm4, %v5485_v42 }
 0xc47   :  { %5141 = vmatmul.msk.f32.gmra.mxu2 %vm433_vm4, %v5493_v53  ;;  %5145 = vmatmul.msk.f32.gmra.mxu3 %vm433_vm4, %v5493_v53 }
 0xc4f   :  { %5142 = vmatmul.msk.f32.gmra.mxu2 %vm433_vm4, %v5503_v54  ;;  %5146 = vmatmul.msk.f32.gmra.mxu3 %vm433_vm4, %v5503_v54 }
 0xc57   :  { %5143 = vmatmul.msk.f32.gmra.mxu2 %vm433_vm4, %v5513_v55  ;;  %5147 = vmatmul.msk.f32.gmra.mxu3 %vm433_vm4, %v5513_v55 }
 0xc62   :  { %v4338_v62 = vpop.f32.mrf.mxu0  ;;  %v4367_v5 = vpop.f32.mrf.mxu1 }
 0xc63   :  { %v4339_v58 = vadd.f32 %v4338_v62, %v5538_v22  ;;  %v4368_v3 = vadd.f32 %v4367_v5, %v5538_v22 }
 0xc65   :  { %v4437_v1 = vmax.f32 %v4339_v58, 0.0  ;;  %v4438_v40 = vmax.f32 %v4368_v3, 0.0 }
 0xc6a   :  { %v4341_v42 = vpop.f32.mrf.mxu0  ;;  %v4370_v17 = vpop.f32.mrf.mxu1 }
 0xc6b   :  { %v4342_v45 = vadd.f32 %v4341_v42, %v5532_v11  ;;  %v4371_v55 = vadd.f32 %v4370_v17, %v5532_v11 }
 0xc6d   :  { %v4441_v37 = vmax.f32 %v4342_v45, 0.0  ;;  %v4442_v7 = vmax.f32 %v4371_v55, 0.0 }
 0xc72   :  { %v4344_v56 = vpop.f32.mrf.mxu0  ;;  %v4373_v39 = vpop.f32.mrf.mxu1 }
 0xc73   :  { %v4345_v19 = vadd.f32 %v4344_v56, %v5529_v10  ;;  %v4374_v41 = vadd.f32 %v4373_v39, %v5529_v10 }
 0xc75   :  { %v4445_v25 = vmax.f32 %v4345_v19, 0.0  ;;  %v4446_v8 = vmax.f32 %v4374_v41, 0.0 }
 0xc7a   :  { %v4347_v46 = vpop.f32.mrf.mxu0  ;;  %v4376_v53 = vpop.f32.mrf.mxu1 }
 0xc7b   :  { %v4348_v54 = vadd.f32 %v4347_v46, %v5527_v63  ;;  %v4377_v20 = vadd.f32 %v4376_v53, %v5527_v63 }
 0xc7d   :  { %v4449_v47 = vmax.f32 %v4348_v54, 0.0  ;;  %v4450_v31 = vmax.f32 %v4377_v20, 0.0 }
 0xc7f   :  { %4465 = vmatpush.msrb.mxu0 %v4449_v47  ;;  %4491 = vmatpush.msrb.mxu1 %v4450_v31 }
 0xc81   :  { %4466 = vmatpush.msrb.mxu0 %v4445_v25  ;;  %4492 = vmatpush.msrb.mxu1 %v4446_v8 }
 0xc83   :  { %4467 = vmatpush.msrb.mxu0 %v4441_v37  ;;  %4493 = vmatpush.msrb.mxu1 %v4442_v7 }
 0xc85   :  { %4468 = vmatpush.msrb.mxu0 %v4437_v1  ;;  %4494 = vmatpush.msrb.mxu1 %v4438_v40 }
 0xc86   :  { %5148 = vmatmul.msk.f32.vlgmr.msrb.gmra.mxu0 %vm433_vm4, %v5544_v28  ;;  %5152 = vmatmul.msk.f32.vlgmr.msrb.gmra.mxu1 %vm433_vm4, %v5544_v28 }
 0xc8e   :  { %5149 = vmatmul.msk.f32.gmra.mxu0 %vm433_vm4, %v5560_v2  ;;  %5153 = vmatmul.msk.f32.gmra.mxu1 %vm433_vm4, %v5560_v2 }
 0xc96   :  { %5150 = vmatmul.msk.f32.gmra.mxu0 %vm433_vm4, %v5570_v13  ;;  %5154 = vmatmul.msk.f32.gmra.mxu1 %vm433_vm4, %v5570_v13 }
 0xc9e   :  { %5151 = vmatmul.msk.f32.gmra.mxu0 %vm433_vm4, %v5582_v14  ;;  %5155 = vmatmul.msk.f32.gmra.mxu1 %vm433_vm4, %v5582_v14 }
 0xcc2   :  { %v4396_v30 = vpop.f32.mrf.mxu2  ;;  %v4425_v16 = vpop.f32.mrf.mxu3 }
 0xcc3   :  { %v4397_v59 = vadd.f32 %v4396_v30, %v5538_v22  ;;  %v4426_v61 = vadd.f32 %v4425_v16, %v5538_v22 }
 0xcc5   :  { %v4439_v6 = vmax.f32 %v4397_v59, 0.0 }
 0xcca   :  { %v4399_v4 = vpop.f32.mrf.mxu2  ;;  %v4428_v29 = vpop.f32.mrf.mxu3 }
 0xccb   :  { %v4400_v51 = vadd.f32 %v4399_v4, %v5532_v11  ;;  %v4429_v57 = vadd.f32 %v4428_v29, %v5532_v11 }
 0xccd   :  { %v4443_v26 = vmax.f32 %v4400_v51, 0.0 }
 0xcd2   :  { %v4402_v48 = vpop.f32.mrf.mxu2  ;;  %v4431_v44 = vpop.f32.mrf.mxu3 }
 0xcd3   :  { %v4403_v52 = vadd.f32 %v4402_v48, %v5529_v10  ;;  %v4432_v50 = vadd.f32 %v4431_v44, %v5529_v10  ;;  %v4444_v10 = vmax.f32 %v4429_v57, 0.0 }
 0xcd5   :  { %v4447_v15 = vmax.f32 %v4403_v52, 0.0  ;;  %v4448_v18 = vmax.f32 %v4432_v50, 0.0 }
 0xcda   :  { %v4405_v9 = vpop.f32.mrf.mxu2  ;;  %v4434_v34 = vpop.f32.mrf.mxu3 }
 0xcdb   :  { %v4406_v24 = vadd.f32 %v4405_v9, %v5527_v63  ;;  %v4435_v36 = vadd.f32 %v4434_v34, %v5527_v63  ;;  %v4440_v63 = vmax.f32 %v4426_v61, 0.0 }
 0xcdd   :  { %v4451_v23 = vmax.f32 %v4406_v24, 0.0  ;;  %v4452_v35 = vmax.f32 %v4435_v36, 0.0 }
 0xcdf   :  { %4517 = vmatpush.msrb.mxu2 %v4451_v23  ;;  %4543 = vmatpush.msrb.mxu3 %v4452_v35 }
 0xce1   :  { %4518 = vmatpush.msrb.mxu2 %v4447_v15  ;;  %4544 = vmatpush.msrb.mxu3 %v4448_v18 }
 0xce3   :  { %4519 = vmatpush.msrb.mxu2 %v4443_v26  ;;  %4545 = vmatpush.msrb.mxu3 %v4444_v10 }
 0xce5   :  { %4520 = vmatpush.msrb.mxu2 %v4439_v6  ;;  %4546 = vmatpush.msrb.mxu3 %v4440_v63 }
 0xce6   :  { %5156 = vmatmul.msk.f32.vlgmr.msrb.gmra.mxu2 %vm433_vm4, %v5544_v28  ;;  %5160 = vmatmul.msk.f32.vlgmr.msrb.gmra.mxu3 %vm433_vm4, %v5544_v28 }
 0xcee   :  { %5157 = vmatmul.msk.f32.gmra.mxu2 %vm433_vm4, %v5560_v2  ;;  %5161 = vmatmul.msk.f32.gmra.mxu3 %vm433_vm4, %v5560_v2 }
 0xcf6   :  { %5158 = vmatmul.msk.f32.gmra.mxu2 %vm433_vm4, %v5570_v13  ;;  %5162 = vmatmul.msk.f32.gmra.mxu3 %vm433_vm4, %v5570_v13 }
 0xcfe   :  { %5159 = vmatmul.msk.f32.gmra.mxu2 %vm433_vm4, %v5582_v14  ;;  %5163 = vmatmul.msk.f32.gmra.mxu3 %vm433_vm4, %v5582_v14 }
 0xd03   :  { %v4470_v11 = vpop.f32.mrf.mxu0  ;;  %v4496_v22 = vpop.f32.mrf.mxu1 }
 0xd04   :  { %v4497_v28 = vadd.f32 %v4496_v22, %v5664_v0  ;;  %v4471_v21 = vadd.f32 %v4470_v11, %v5664_v0 }
 0xd06   :  { %v4561_v33 = vrot.slane %v4497_v28, 4 }
 0xd08   :  { %v4563_v2 = vsel %vm713_vm5, %v4471_v21, %v4561_v33 }
 0xd09   :  { %4568 = vst [vmem:[#allocation8 + $0x70] sm:$0x77] %v4563_v2 }
 0xd0b   :  { %v4473_v32 = vpop.f32.mrf.mxu0  ;;  %v4499_v27 = vpop.f32.mrf.mxu1 }
 0xd13   :  { %v4475_v38 = vpop.f32.mrf.mxu0  ;;  %v4501_v13 = vpop.f32.mrf.mxu1 }
 0xd1b   :  { %v4477_v12 = vpop.f32.mrf.mxu0  ;;  %v4503_v49 = vpop.f32.mrf.mxu1 }
 0xd69   :  { %v4522_v60 = vpop.f32.mrf.mxu2  ;;  %v4548_v43 = vpop.f32.mrf.mxu3 }
 0xd6a   :  { %v4549_v14 = vadd.f32 %v4548_v43, %v5664_v0  ;;  %v4523_v62 = vadd.f32 %v4522_v60, %v5664_v0 }
 0xd6c   :  { %v4562_v5 = vrot.slane %v4549_v14, 4 }
 0xd6e   :  { %v4564_v42 = vsel %vm713_vm5, %v4523_v62, %v4562_v5 }
 0xd6f   :  { %4569 = vst [vmem:[#allocation8 + $0x78] sm:$0x77] %v4564_v42 }
 0xd70   :  { %4580 = dma.vmem_to_hbm [thread:$0]  %s4576_s30, 2048, %s4578_s6, [#allocation4]  }
 0xd71   :  { %v4525_v17 = vpop.f32.mrf.mxu2  ;;  %v4551_v56 = vpop.f32.mrf.mxu3 }
 0xd79   :  { %v4527_v39 = vpop.f32.mrf.mxu2  ;;  %v4553_v46 = vpop.f32.mrf.mxu3 }
 0xd81   :  { %v4529_v53 = vpop.f32.mrf.mxu2  ;;  %v4555_v19 = vpop.f32.mrf.mxu3 }
 0xd82   :  { %5296 = dma.done.wait [#allocation4], 2048  }
 0xd83   :  { %5297 = vsyncadd [#allocation4], 4294965248 }
 0xd84   :  { %4585 = vsyncpa [#allocation3], 1 }
 0xd85   :  { %4586 = vsyncpa [#allocation6], 1 }
 0xd86   :  { %4587 = vsyncpa [#allocation4], 1 }

</bundles_post_ra>
